<compile_context>
chip_gen: v7x
topology: tpu7x:2x2x1
jax: 0.10.0
libtpu: 0.0.40
codegen_flags: <defaults>
</compile_context>

<pallas_src>
import functools

import jax
import jax.numpy as jnp
from jax.experimental import pallas as pl
from jax.experimental.pallas import tpu as pltpu


def _round_up(x, m):
    return ((x + m - 1) // m) * m


def dnet_kernel(x_ref, w1_ref, b1_ref, w2_ref, b2_ref, w3_ref, b3_ref, o_ref):
    # fc1 + relu   (bf16 x bf16 -> f32 accumulate on the MXU)
    h1 = jnp.dot(x_ref[...], w1_ref[...], preferred_element_type=jnp.float32)
    h1 = jnp.maximum(h1 + b1_ref[...], 0.0)

    # fc2 + relu
    h2 = jnp.dot(h1.astype(jnp.bfloat16), w2_ref[...],
                 preferred_element_type=jnp.float32)
    h2 = jnp.maximum(h2 + b2_ref[...], 0.0)

    # fc3 (output dim == 1): VPU multiply + XLU lane reduction instead of a
    # 1-column MXU matmul; w3_ref is a [1, d_h] f32 row, b3 is a scalar in SMEM.
    h3 = jnp.sum(h2 * w3_ref[...], axis=-1) + b3_ref[0, 0]       # (TM,)
    h3 = jnp.maximum(h3, 0.0)

    # sigmoid(h3) = 1 / (1 + exp(-h3)); exp + approx reciprocal both hit the EUP.
    # Denominator is in (1, 2] so the approx reciprocal is numerically safe.
    sig = pl.reciprocal(1.0 + jnp.exp(-h3), approx=True)

    # Lane-dense store: one (1, TM) row per grid step (unmasked vst for TM >= 128).
    o_ref[...] = sig.reshape(1, -1)


# ~0.35 us per grid step expressed in batch-row equivalents (used to balance
# padding waste against per-step overhead when picking the batch tile).
_STEP_OVERHEAD_ROWS = 32


def _pick_batch_tile(B, tm_max):
    if B <= tm_max:
        return _round_up(B, 8)                 # single tile, minimal sublane pad
    # Multi-tile: 256-aligned candidates (MXU-friendly on v6e/v7x). Pick the one
    # minimizing padded rows + per-step overhead; prefer larger tiles on ties.
    cands = [t for t in (1024, 512, 256) if t <= tm_max] or [256]
    return min(cands,
               key=lambda t: (_round_up(B, t) + _STEP_OVERHEAD_ROWS * pl.cdiv(B, t),
                              -t))


@functools.partial(jax.jit, static_argnames=("tm_max",))
def d_net_forward(x, params, tm_max=1024):
    """x: [B, d_in] float32 (or bf16). params: dict of transposed weights / row biases."""
    B, d_in = x.shape
    w1, b1 = params["w1"], params["b1"]          # [d_in, d_h] bf16, [1, d_h] f32
    w2, b2 = params["w2"], params["b2"]          # [d_h, d_h]  bf16, [1, d_h] f32
    w3, b3 = params["w3"], params["b3"]          # [1, d_h]    f32,  [1, 1]   f32
    d_h = w1.shape[1]

    TM = _pick_batch_tile(B, tm_max)
    pad_B = _round_up(B, TM)

    x_bf = x.astype(jnp.bfloat16)
    if pad_B != B:
        x_bf = jnp.pad(x_bf, ((0, pad_B - B), (0, 0)))

    grid = (pad_B // TM,)

    out_row = pl.pallas_call(
        dnet_kernel,
        out_shape=jax.ShapeDtypeStruct((1, pad_B), jnp.float32),
        grid=grid,
        in_specs=[
            # activations: tiled over the batch
            pl.BlockSpec((TM, d_in), lambda i: (i, 0)),
            # weights / biases: constant block index -> DMA'd once, VMEM-resident
            pl.BlockSpec((d_in, d_h), lambda i: (0, 0)),
            pl.BlockSpec((1, d_h), lambda i: (0, 0)),
            pl.BlockSpec((d_h, d_h), lambda i: (0, 0)),
            pl.BlockSpec((1, d_h), lambda i: (0, 0)),
            pl.BlockSpec((1, d_h), lambda i: (0, 0)),
            # b3: single scalar -> SMEM (no padded VMEM tile / vector DMA)
            pl.BlockSpec(memory_space=pltpu.MemorySpace.SMEM),
        ],
        # Lane-dense output row; each grid step writes its own (1, TM) slab.
        out_specs=pl.BlockSpec((1, TM), lambda i: (0, i)),
        compiler_params=pltpu.CompilerParams(
            dimension_semantics=("parallel",),
            vmem_limit_bytes=48 << 20,
        ),
    )(x_bf, w1, b1, w2, b2, w3, b3)

    return out_row[0, :B].reshape(B, 1)


def init_params(key, d_in=1024, d_h=1024):
    """Deterministic synthetic init (PyTorch nn.Linear-style uniform bounds)."""
    ks = jax.random.split(key, 6)

    def lin(kw, kb, fan_in, fan_out):
        bound = 1.0 / jnp.sqrt(fan_in)
        # stored as [fan_in, fan_out] (transposed vs PyTorch [out, in])
        w = jax.random.uniform(kw, (fan_in, fan_out), jnp.float32, -bound, bound)
        b = jax.random.uniform(kb, (1, fan_out), jnp.float32, -bound, bound)
        return w, b

    w1, b1 = lin(ks[0], ks[1], d_in, d_h)
    w2, b2 = lin(ks[2], ks[3], d_h, d_h)
    w3, b3 = lin(ks[4], ks[5], d_h, 1)
    return {
        # big weights in bf16 (halves HBM traffic; MXU-native input dtype)
        "w1": w1.astype(jnp.bfloat16), "b1": b1,
        "w2": w2.astype(jnp.bfloat16), "b2": b2,
        # fc3 weight kept as an f32 row vector [1, d_h] for the VPU reduce
        "w3": w3.T, "b3": b3,
    }


def d_net_reference(x, p):
    """Pure-JAX reference using the same (bf16-quantized) weights in f32 math."""
    w1 = p["w1"].astype(jnp.float32)
    w2 = p["w2"].astype(jnp.float32)
    h1 = jax.nn.relu(x @ w1 + p["b1"])
    h2 = jax.nn.relu(h1 @ w2 + p["b2"])
    h3 = jax.nn.relu(h2 @ p["w3"].T + p["b3"])
    return jax.nn.sigmoid(h3)


if __name__ == "__main__":
    key = jax.random.PRNGKey(0)
    k_param, k_x, k_x2 = jax.random.split(key, 3)

    d_in, d_h = 1024, 1024          # d_h = 1024 is hard-coded in the PyTorch module
    params = init_params(k_param, d_in=d_in, d_h=d_h)

    # Small inference-style batch (single-tile path).
    B = 8
    x = jax.random.normal(k_x, (B, d_in), dtype=jnp.float32)
    out = jax.block_until_ready(d_net_forward(x, params))
    ref = d_net_reference(x, params)
    assert out.shape == (B, 1), out.shape
    # bf16 activation casts + approx reciprocal -> loosened tolerance
    assert jnp.allclose(out, ref, atol=2e-2, rtol=2e-2), "mismatch vs reference (B=8)"

    # Larger batch exercising the multi-tile, padded, lane-dense output path.
    B2 = 1300
    x2 = jax.random.normal(k_x2, (B2, d_in), dtype=jnp.float32)
    out2 = jax.block_until_ready(d_net_forward(x2, params))
    ref2 = d_net_reference(x2, params)
    assert out2.shape == (B2, 1), out2.shape
    assert jnp.allclose(out2, ref2, atol=2e-2, rtol=2e-2), "mismatch vs reference (B=1300)"

    print("KERNEL_OK")
</pallas_src>

<mosaic_0001>
module attributes {stable_mosaic.version = 11 : i64} {
  func.func @dnet_kernel(%arg0: i32, %arg1: memref<8x1024xbf16, #tpu.memory_space<vmem>>, %arg2: memref<1024x1024xbf16, #tpu.memory_space<vmem>>, %arg3: memref<1x1024xf32, #tpu.memory_space<vmem>>, %arg4: memref<1024x1024xbf16, #tpu.memory_space<vmem>>, %arg5: memref<1x1024xf32, #tpu.memory_space<vmem>>, %arg6: memref<1x1024xf32, #tpu.memory_space<vmem>>, %arg7: memref<1x1xf32, #tpu.memory_space<smem>>, %arg8: memref<1x8xf32, #tpu.memory_space<vmem>>) attributes {dimension_semantics = [#tpu.dimension_semantics<parallel>], iteration_bounds = array<i64: 1>, scalar_prefetch = 0 : i64, scratch_operands = 0 : i64, tpu.core_type = #tpu.core_type<tc>, window_params = [{transform_indices = @transform_0, window_bounds = array<i64: 8, 1024>}, {pipeline_mode = #tpu.pipeline_mode<synchronous>, transform_indices = @transform_1, window_bounds = array<i64: 1024, 1024>}, {pipeline_mode = #tpu.pipeline_mode<synchronous>, transform_indices = @transform_2, window_bounds = array<i64: 1, 1024>}, {pipeline_mode = #tpu.pipeline_mode<synchronous>, transform_indices = @transform_3, window_bounds = array<i64: 1024, 1024>}, {pipeline_mode = #tpu.pipeline_mode<synchronous>, transform_indices = @transform_4, window_bounds = array<i64: 1, 1024>}, {pipeline_mode = #tpu.pipeline_mode<synchronous>, transform_indices = @transform_5, window_bounds = array<i64: 1, 1024>}, {transform_indices = @transform_6, window_bounds = array<i64: 1, 1>}, {transform_indices = @transform_7, window_bounds = array<i64: 1, 8>}]} {
    %c0 = arith.constant 0 : index
    %c0_0 = arith.constant 0 : index
    %0 = vector.load %arg1[%c0, %c0_0] : memref<8x1024xbf16, #tpu.memory_space<vmem>>, vector<8x1024xbf16>
    %c0_1 = arith.constant 0 : index
    %c0_2 = arith.constant 0 : index
    %1 = vector.load %arg2[%c0_1, %c0_2] : memref<1024x1024xbf16, #tpu.memory_space<vmem>>, vector<1024x1024xbf16>
    %cst = arith.constant dense<0.000000e+00> : vector<8x1024xf32>
    %2 = tpu.matmul %0, %1, %cst {dimension_numbers = #tpu.dot_dimension_numbers<[1], [0], [0], [1], [0, 0, 1, 1], [], []>} : vector<8x1024xbf16>, vector<1024x1024xbf16>, vector<8x1024xf32> -> vector<8x1024xf32>
    %c0_3 = arith.constant 0 : index
    %c0_4 = arith.constant 0 : index
    %3 = vector.load %arg3[%c0_3, %c0_4] : memref<1x1024xf32, #tpu.memory_space<vmem>>, vector<1x1024xf32>
    %4 = vector.broadcast %3 : vector<1x1024xf32> to vector<8x1024xf32>
    %5 = arith.addf %2, %4 : vector<8x1024xf32>
    %cst_5 = arith.constant 0.000000e+00 : f32
    %6 = vector.broadcast %cst_5 : f32 to vector<8x1024xf32>
    %7 = arith.maximumf %5, %6 : vector<8x1024xf32>
    %8 = arith.truncf %7 : vector<8x1024xf32> to vector<8x1024xbf16>
    %c0_6 = arith.constant 0 : index
    %c0_7 = arith.constant 0 : index
    %9 = vector.load %arg4[%c0_6, %c0_7] : memref<1024x1024xbf16, #tpu.memory_space<vmem>>, vector<1024x1024xbf16>
    %cst_8 = arith.constant dense<0.000000e+00> : vector<8x1024xf32>
    %10 = tpu.matmul %8, %9, %cst_8 {dimension_numbers = #tpu.dot_dimension_numbers<[1], [0], [0], [1], [0, 0, 1, 1], [], []>} : vector<8x1024xbf16>, vector<1024x1024xbf16>, vector<8x1024xf32> -> vector<8x1024xf32>
    %c0_9 = arith.constant 0 : index
    %c0_10 = arith.constant 0 : index
    %11 = vector.load %arg5[%c0_9, %c0_10] : memref<1x1024xf32, #tpu.memory_space<vmem>>, vector<1x1024xf32>
    %12 = vector.broadcast %11 : vector<1x1024xf32> to vector<8x1024xf32>
    %13 = arith.addf %10, %12 : vector<8x1024xf32>
    %cst_11 = arith.constant 0.000000e+00 : f32
    %14 = vector.broadcast %cst_11 : f32 to vector<8x1024xf32>
    %15 = arith.maximumf %13, %14 : vector<8x1024xf32>
    %c0_12 = arith.constant 0 : index
    %c0_13 = arith.constant 0 : index
    %16 = vector.load %arg6[%c0_12, %c0_13] : memref<1x1024xf32, #tpu.memory_space<vmem>>, vector<1x1024xf32>
    %17 = vector.broadcast %16 : vector<1x1024xf32> to vector<8x1024xf32>
    %18 = arith.mulf %15, %17 : vector<8x1024xf32>
    %cst_14 = arith.constant dense<0.000000e+00> : vector<8xf32>
    %19 = vector.multi_reduction <add>, %18, %cst_14 [1] : vector<8x1024xf32> to vector<8xf32>
    %c0_15 = arith.constant 0 : index
    %c0_16 = arith.constant 0 : index
    %20 = memref.load %arg7[%c0_15, %c0_16] : memref<1x1xf32, #tpu.memory_space<smem>>
    %21 = vector.broadcast %20 : f32 to vector<8xf32>
    %22 = arith.addf %19, %21 : vector<8xf32>
    %cst_17 = arith.constant 0.000000e+00 : f32
    %23 = vector.broadcast %cst_17 : f32 to vector<8xf32>
    %24 = arith.maximumf %22, %23 : vector<8xf32>
    %cst_18 = arith.constant 0.000000e+00 : f32
    %25 = vector.broadcast %cst_18 : f32 to vector<8xf32>
    %26 = arith.subf %25, %24 : vector<8xf32>
    %27 = math.exp %26 : vector<8xf32>
    %cst_19 = arith.constant 1.000000e+00 : f32
    %28 = vector.broadcast %cst_19 : f32 to vector<8xf32>
    %29 = arith.addf %28, %27 : vector<8xf32>
    %30 = tpu.reciprocal %29 {approx = true} : vector<8xf32> -> vector<8xf32>
    %31 = vector.shape_cast %30 : vector<8xf32> to vector<1x8xf32>
    %c0_20 = arith.constant 0 : index
    %c0_21 = arith.constant 0 : index
    %32 = vector.load %arg8[%c0_20, %c0_21] : memref<1x8xf32, #tpu.memory_space<vmem>>, vector<1x8xf32>
    tpu.vector_store %arg8[%c0_20, %c0_21], %31 {strides = array<i32>} : memref<1x8xf32, #tpu.memory_space<vmem>>, vector<1x8xf32>,
    return
  }
  func.func @transform_0(%arg0: i32) -> (i32, i32) {
    %c0_i32 = arith.constant 0 : i32
    %c0_i32_0 = arith.constant 0 : i32
    return %arg0, %c0_i32 : i32, i32
  }
  func.func @transform_1(%arg0: i32) -> (i32, i32) {
    %c0_i32 = arith.constant 0 : i32
    %c0_i32_0 = arith.constant 0 : i32
    %c0_i32_1 = arith.constant 0 : i32
    return %c0_i32, %c0_i32_0 : i32, i32
  }
  func.func @transform_2(%arg0: i32) -> (i32, i32) {
    %c0_i32 = arith.constant 0 : i32
    %c0_i32_0 = arith.constant 0 : i32
    %c0_i32_1 = arith.constant 0 : i32
    return %c0_i32, %c0_i32_0 : i32, i32
  }
  func.func @transform_3(%arg0: i32) -> (i32, i32) {
    %c0_i32 = arith.constant 0 : i32
    %c0_i32_0 = arith.constant 0 : i32
    %c0_i32_1 = arith.constant 0 : i32
    return %c0_i32, %c0_i32_0 : i32, i32
  }
  func.func @transform_4(%arg0: i32) -> (i32, i32) {
    %c0_i32 = arith.constant 0 : i32
    %c0_i32_0 = arith.constant 0 : i32
    %c0_i32_1 = arith.constant 0 : i32
    return %c0_i32, %c0_i32_0 : i32, i32
  }
  func.func @transform_5(%arg0: i32) -> (i32, i32) {
    %c0_i32 = arith.constant 0 : i32
    %c0_i32_0 = arith.constant 0 : i32
    %c0_i32_1 = arith.constant 0 : i32
    return %c0_i32, %c0_i32_0 : i32, i32
  }
  func.func @transform_6(%arg0: i32) -> (i32, i32) {
    %c0_i32 = arith.constant 0 : i32
    %c0_i32_0 = arith.constant 0 : i32
    %c0_i32_1 = arith.constant 0 : i32
    return %c0_i32, %c0_i32_0 : i32, i32
  }
  func.func @transform_7(%arg0: i32) -> (i32, i32) {
    %c0_i32 = arith.constant 0 : i32
    %c0_i32_0 = arith.constant 0 : i32
    return %c0_i32, %arg0 : i32, i32
  }
}

</mosaic_0001>

<bundles_post_ra>
// kernel: d_net_forward.1
= control target key start
LH: loop header
LB: loop body
LE: loop exit
PB: predicated region body
PF: predicated region fallthrough
CT: control target
= control target key end

     0   :  { %13 = vsyncpa [#allocation4], 0  ;;  %s9444_s0 = inlined_call_operand.vmem [shape: bf16[8,1024], index: 0, kind: input, shape index: {}]   ;;  %s9445_s1 = inlined_call_operand.hbm [shape: bf16[1024,1024], index: 1, kind: input, shape index: {}]   ;;  %s9446_s2 = inlined_call_operand.hbm [shape: f32[1,1024], index: 2, kind: input, shape index: {}]   ;;  %s9447_s3 = inlined_call_operand.hbm [shape: bf16[1024,1024], index: 3, kind: input, shape index: {}]   ;;  %s9448_s4 = inlined_call_operand.hbm [shape: f32[1,1024], index: 4, kind: input, shape index: {}]   ;;  %s9449_s5 = inlined_call_operand.hbm [shape: f32[1,1024], index: 5, kind: input, shape index: {}]   ;;  %s9450_s6 = inlined_call_operand.<no memory space> [shape: f32[1,1], index: 6, kind: input, shape index: {}]   ;;  %s9451_s7 = inlined_call_operand.hbm [shape: f32[1,8], index: 7, kind: output, shape index: {}]  }
   0x1   :  { %14 = vsyncpa [#allocation7], 0 }
   0x2   :  { %15 = vsyncpa [#allocation10], 0 }
   0x3   :  { %16 = vsyncpa [#allocation5], 0  ;;  %s9086_s24 = smov [#allocation6]   ;;  %s9087_s26 = smov [#allocation9]  }
   0x4   :  { %s37_s25 = sshll.u32 %s9086_s24, 4  ;;  %s59_s27 = sshll.u32 %s9087_s26, 4  ;;  %s38_s25 = int_to_ptr.vmem [resolvable:$true] %s37_s25  ;;  %s60_s27 = int_to_ptr.vmem [resolvable:$true] %s59_s27 }
   0x5   :  { %s8946_s30 = scalar_lea.hbm %s9446_s2, 128 }
   0x6   :  { %p8947_p0 = scmp.ne.s32.totalorder %s9446_s2, %s8946_s30  ;;  %p8950_p1 = scmp.lt.u32.totalorder %s8946_s30, %s9446_s2 }
   0x8   :  { %p8952_p2 = pnand %p8950_p1, %p8947_p0 }
   0xa   :  { %8955 = shalt.err (!%p8952_p2)
}
   0xb   :  { %s8956_s12 = scalar_lea.vmem %s38_s25, 128  ;;  %p8961_p4 = scmp.lt.s32.totalorder %s38_s25, %s38_s25 }
   0xc   :  { %p8957_p3 = scmp.ne.s32.totalorder %s38_s25, %s8956_s12  ;;  %p8962_p5 = scmp.lt.s32.totalorder %s8956_s12, %s8956_s12 }
   0xe   :  { %p8963_p6 = por %p8962_p5, %p8961_p4 }
  0x10   :  { %p8964_p7 = pnand %p8963_p6, %p8957_p3 }
  0x12   :  { %8967 = shalt.err (!%p8964_p7)
}
  0x13   :  { %40 = dma.hbm_to_vmem [thread:$0]  %s9446_s2, 128, %s38_s25, [#allocation7]  }
  0x14   :  { %s8968_s17 = scalar_lea.hbm %s9448_s4, 128 }
  0x15   :  { %p8969_p8 = scmp.ne.s32.totalorder %s9448_s4, %s8968_s17  ;;  %p8972_p9 = scmp.lt.u32.totalorder %s8968_s17, %s9448_s4 }
  0x17   :  { %p8974_p10 = pnand %p8972_p9, %p8969_p8 }
  0x19   :  { %8977 = shalt.err (!%p8974_p10)
}
  0x1a   :  { %s8978_s22 = scalar_lea.vmem %s60_s27, 128  ;;  %p8983_p12 = scmp.lt.s32.totalorder %s60_s27, %s60_s27 }
  0x1b   :  { %p8979_p11 = scmp.ne.s32.totalorder %s60_s27, %s8978_s22  ;;  %p8984_p13 = scmp.lt.s32.totalorder %s8978_s22, %s8978_s22 }
  0x1d   :  { %p8985_p0 = por %p8984_p13, %p8983_p12 }
  0x1f   :  { %p8986_p1 = pnand %p8985_p0, %p8979_p11 }
  0x21   :  { %8989 = shalt.err (!%p8986_p1)
}
  0x22   :  { %62 = dma.hbm_to_vmem [thread:$0]  %s9448_s4, 128, %s60_s27, [#allocation10]  }
  0x23   :  { %s9088_s24 = smov [#allocation3]   ;;  %s8990_s29 = scalar_lea.hbm %s9445_s1, 65536 }
  0x24   :  { %s24_s25 = sshll.u32 %s9088_s24, 4  ;;  %p8991_p2 = scmp.ne.s32.totalorder %s9445_s1, %s8990_s29  ;;  %s25_s25 = int_to_ptr.vmem [resolvable:$true] %s24_s25 }
  0x25   :  { %p8994_p3 = scmp.lt.u32.totalorder %s8990_s29, %s9445_s1 }
  0x27   :  { %p8996_p4 = pnand %p8994_p3, %p8991_p2 }
  0x29   :  { %8999 = shalt.err (!%p8996_p4)
}
  0x2a   :  { %s9000_s11 = scalar_lea.vmem %s25_s25, 65536  ;;  %p9005_p6 = scmp.lt.s32.totalorder %s25_s25, %s25_s25 }
  0x2b   :  { %p9001_p5 = scmp.ne.s32.totalorder %s25_s25, %s9000_s11  ;;  %p9006_p7 = scmp.lt.s32.totalorder %s9000_s11, %s9000_s11 }
  0x2d   :  { %p9007_p8 = por %p9006_p7, %p9005_p6 }
  0x2f   :  { %p9008_p9 = pnand %p9007_p8, %p9001_p5 }
  0x31   :  { %9011 = shalt.err (!%p9008_p9)
}
  0x32   :  { %s9089_s4 = smov 512   ;;  %s9090_s27 = smov 32  }
  0x33   :  { %30 = dma.hbm_to_vmem [thread:$0]  %s9445_s1, 65536, %s25_s25, [#allocation4], %s9089_s4, %s9089_s4, %s9090_s27  }
  0x34   :  { %s9091_s14 = smov [#allocation8]   ;;  %s9092_s16 = smov [#allocation11]  }
  0x35   :  { %s46_s15 = sshll.u32 %s9091_s14, 4  ;;  %s69_s17 = sshll.u32 %s9092_s16, 4  ;;  %s47_s15 = int_to_ptr.vmem [resolvable:$true] %s46_s15  ;;  %s70_s17 = int_to_ptr.vmem [resolvable:$true] %s69_s17 }
  0x36   :  { %s9012_s20 = scalar_lea.hbm %s9447_s3, 65536 }
  0x37   :  { %p9013_p10 = scmp.ne.s32.totalorder %s9447_s3, %s9012_s20  ;;  %p9016_p11 = scmp.lt.u32.totalorder %s9012_s20, %s9447_s3 }
  0x39   :  { %p9018_p12 = pnand %p9016_p11, %p9013_p10 }
  0x3b   :  { %9021 = shalt.err (!%p9018_p12)
}
  0x3c   :  { %s9022_s1 = scalar_lea.vmem %s47_s15, 65536  ;;  %p9027_p0 = scmp.lt.s32.totalorder %s47_s15, %s47_s15 }
  0x3d   :  { %p9023_p13 = scmp.ne.s32.totalorder %s47_s15, %s9022_s1  ;;  %p9028_p1 = scmp.lt.s32.totalorder %s9022_s1, %s9022_s1 }
  0x3f   :  { %p9029_p2 = por %p9028_p1, %p9027_p0 }
  0x41   :  { %p9030_p3 = pnand %p9029_p2, %p9023_p13 }
  0x43   :  { %9033 = shalt.err (!%p9030_p3)
}
  0x44   :  { %52 = dma.hbm_to_vmem [thread:$0]  %s9447_s3, 65536, %s47_s15, [#allocation7], %s9089_s4, %s9089_s4, %s9090_s27  }
  0x45   :  { %s9034_s29 = scalar_lea.hbm %s9449_s5, 128 }
  0x46   :  { %p9035_p4 = scmp.ne.s32.totalorder %s9449_s5, %s9034_s29  ;;  %p9038_p5 = scmp.lt.u32.totalorder %s9034_s29, %s9449_s5 }
  0x48   :  { %p9040_p6 = pnand %p9038_p5, %p9035_p4 }
  0x4a   :  { %9043 = shalt.err (!%p9040_p6)
}
  0x4b   :  { %s9044_s11 = scalar_lea.vmem %s70_s17, 128  ;;  %p9049_p8 = scmp.lt.s32.totalorder %s70_s17, %s70_s17 }
  0x4c   :  { %p9045_p7 = scmp.ne.s32.totalorder %s70_s17, %s9044_s11  ;;  %p9050_p9 = scmp.lt.s32.totalorder %s9044_s11, %s9044_s11 }
  0x4e   :  { %p9051_p10 = por %p9050_p9, %p9049_p8 }
  0x50   :  { %p9052_p11 = pnand %p9051_p10, %p9045_p7 }
  0x52   :  { %9055 = shalt.err (!%p9052_p11)
}
  0x53   :  { %72 = dma.hbm_to_vmem [thread:$0]  %s9449_s5, 128, %s70_s17, [#allocation10]  }
  0x54   :  { %9078 = dma.done.wait [#allocation4], 65536  }
  0x55   :  { %9079 = vsyncadd [#allocation4], 4294901760 }
  0x56   :  { %9080 = dma.done.wait [#allocation7], 65664  }
  0x57   :  { %9081 = vsyncadd [#allocation7], 4294901632 }
  0x58   :  { %9082 = dma.done.wait [#allocation10], 256  }
  0x59   :  { %9083 = vsyncadd [#allocation10], 4294967040  ;;  %v94_v0 = vld [vmem:[#allocation3] sm:$0xff]  ;;  %v95_v2 = vld [vmem:[#allocation3 + $0x8] sm:$0xff]  ;;  %s9093_s19 = smov [#allocation12]   ;;  %vm7762_vm0 = vcmask 57344  }
  0x5a   :  { %v98_v1 = vld [vmem:[#allocation3 + $0x20] sm:$0xff]  ;;  %v99_v4 = vld [vmem:[#allocation3 + $0x28] sm:$0xff]  ;;  %s7770_s20 = sshll.u32 %s9093_s19, 4  ;;  %s7771_s20 = int_to_ptr.vmem [resolvable:$true] %s7770_s20 }
  0x5b   :  { %v7790_v3 = vcombine.high %v94_v0, %v98_v1  ;;  %v7789_v5 = vcombine.low %v94_v0, %v98_v1  ;;  %v102_v6 = vld [vmem:[#allocation3 + $0x40] sm:$0xff]  ;;  %v7792_v8 = vcombine.high %v95_v2, %v99_v4  ;;  %v7791_v9 = vcombine.low %v95_v2, %v99_v4  ;;  %v103_v11 = vld [vmem:[#allocation3 + $0x48] sm:$0xff]  ;;  %s9060_s21 = scalar_lea.vmem %s7771_s20, 32  ;;  %p9061_p13 = scmp.lt.s32.totalorder %s7771_s20, %s7771_s20 }
  0x5c   :  { %v106_v7 = vld [vmem:[#allocation3 + $0x60] sm:$0xff]  ;;  %v107_v12 = vld [vmem:[#allocation3 + $0x68] sm:$0xff] }
  0x5d   :  { %v7798_v10 = vcombine.high %v102_v6, %v106_v7  ;;  %v110_v13 = vld [vmem:[#allocation3 + $0x80] sm:$0xff]  ;;  %3236 = vmatprep.subr.bf16.mxu0 %v7790_v3  ;;  %v7800_v14 = vcombine.high %v103_v11, %v107_v12  ;;  %v111_v16 = vld [vmem:[#allocation3 + $0x88] sm:$0xff]  ;;  %3400 = vmatprep.subr.bf16.mxu1 %v7792_v8  ;;  %v7797_v18 = vcombine.low %v102_v6, %v106_v7 }
  0x5e   :  { %v114_v15 = vld [vmem:[#allocation3 + $0xa0] sm:$0xff]  ;;  %v115_v17 = vld [vmem:[#allocation3 + $0xa8] sm:$0xff]  ;;  %3237 = vmatpush1.bf16.msra.mxu0 %v7789_v5  ;;  %3401 = vmatpush1.bf16.msra.mxu1 %v7791_v9  ;;  %v7799_v19 = vcombine.low %v103_v11, %v107_v12 }
  0x5f   :  { %3238 = vmatprep.subr.bf16.mxu0 %v7798_v10  ;;  %v7806_v20 = vcombine.high %v110_v13, %v114_v15  ;;  %3402 = vmatprep.subr.bf16.mxu1 %v7800_v14  ;;  %v7808_v21 = vcombine.high %v111_v16, %v115_v17  ;;  %v118_v22 = vld [vmem:[#allocation3 + $0xc0] sm:$0xff]  ;;  %v119_v24 = vld [vmem:[#allocation3 + $0xc8] sm:$0xff]  ;;  %v7805_v26 = vcombine.low %v110_v13, %v114_v15 }
  0x60   :  { %v122_v23 = vld [vmem:[#allocation3 + $0xe0] sm:$0xff]  ;;  %v123_v25 = vld [vmem:[#allocation3 + $0xe8] sm:$0xff]  ;;  %v7807_v27 = vcombine.low %v111_v16, %v115_v17 }
  0x61   :  { %v7814_v28 = vcombine.high %v118_v22, %v122_v23  ;;  %v7816_v29 = vcombine.high %v119_v24, %v123_v25  ;;  %v126_v30 = vld [vmem:[#allocation3 + $0x100] sm:$0xff]  ;;  %v127_v32 = vld [vmem:[#allocation3 + $0x108] sm:$0xff]  ;;  %v7813_v34 = vcombine.low %v118_v22, %v122_v23  ;;  %v7815_v35 = vcombine.low %v119_v24, %v123_v25 }
  0x62   :  { %3239 = vmatpush1.bf16.msra.mxu0 %v7797_v18  ;;  %3403 = vmatpush1.bf16.msra.mxu1 %v7799_v19  ;;  %v130_v31 = vld [vmem:[#allocation3 + $0x120] sm:$0xff]  ;;  %v131_v33 = vld [vmem:[#allocation3 + $0x128] sm:$0xff] }
  0x63   :  { %3240 = vmatprep.subr.bf16.mxu0 %v7806_v20  ;;  %3404 = vmatprep.subr.bf16.mxu1 %v7808_v21  ;;  %v7822_v36 = vcombine.high %v126_v30, %v130_v31  ;;  %v7824_v37 = vcombine.high %v127_v32, %v131_v33  ;;  %v134_v38 = vld [vmem:[#allocation3 + $0x140] sm:$0xff]  ;;  %v135_v40 = vld [vmem:[#allocation3 + $0x148] sm:$0xff]  ;;  %v7821_v42 = vcombine.low %v126_v30, %v130_v31 }
  0x64   :  { %v138_v39 = vld [vmem:[#allocation3 + $0x160] sm:$0xff]  ;;  %v139_v41 = vld [vmem:[#allocation3 + $0x168] sm:$0xff]  ;;  %v7823_v43 = vcombine.low %v127_v32, %v131_v33 }
  0x65   :  { %v7830_v44 = vcombine.high %v134_v38, %v138_v39  ;;  %v7832_v45 = vcombine.high %v135_v40, %v139_v41  ;;  %v142_v46 = vld [vmem:[#allocation3 + $0x180] sm:$0xff]  ;;  %v143_v48 = vld [vmem:[#allocation3 + $0x188] sm:$0xff]  ;;  %v7829_v50 = vcombine.low %v134_v38, %v138_v39  ;;  %v7831_v51 = vcombine.low %v135_v40, %v139_v41 }
  0x66   :  { %3241 = vmatpush1.bf16.msra.mxu0 %v7805_v26  ;;  %3405 = vmatpush1.bf16.msra.mxu1 %v7807_v27  ;;  %v146_v47 = vld [vmem:[#allocation3 + $0x1a0] sm:$0xff]  ;;  %v147_v49 = vld [vmem:[#allocation3 + $0x1a8] sm:$0xff] }
  0x67   :  { %3242 = vmatprep.subr.bf16.mxu0 %v7814_v28  ;;  %3406 = vmatprep.subr.bf16.mxu1 %v7816_v29  ;;  %v7838_v52 = vcombine.high %v142_v46, %v146_v47  ;;  %v9197_v53 = vld [vmem:[%s9444_s0] sm:$0xff]  ;;  %v7840_v54 = vcombine.high %v143_v48, %v147_v49  ;;  %v151_v58 = vld [vmem:[#allocation3 + $0x1c8] sm:$0xff]  ;;  %v7837_v60 = vcombine.low %v142_v46, %v146_v47 }
  0x68   :  { %v150_v55 = vld [vmem:[#allocation3 + $0x1c0] sm:$0xff]  ;;  %v9201_v57 = vcombine.high %v9197_v53, %v9197_v53  ;;  %v155_v59 = vld [vmem:[#allocation3 + $0x1e8] sm:$0xff]  ;;  %v7839_v61 = vcombine.low %v143_v48, %v147_v49 }
  0x69   :  { %v154_v56 = vld [vmem:[#allocation3 + $0x1e0] sm:$0xff]  ;;  %v7848_v63 = vcombine.high %v151_v58, %v155_v59  ;;  %v159_v2 = vld [vmem:[#allocation3 + $0x208] sm:$0xff]  ;;  %v7847_v5 = vcombine.low %v151_v58, %v155_v59 }
  0x6a   :  { %3243 = vmatpush1.bf16.msra.mxu0 %v7813_v34  ;;  %3407 = vmatpush1.bf16.msra.mxu1 %v7815_v35  ;;  %v7846_v62 = vcombine.high %v150_v55, %v154_v56  ;;  %v158_v0 = vld [vmem:[#allocation3 + $0x200] sm:$0xff]  ;;  %v163_v3 = vld [vmem:[#allocation3 + $0x228] sm:$0xff]  ;;  %v7845_v4 = vcombine.low %v150_v55, %v154_v56 }
  0x6b   :  { %3244 = vmatprep.subr.bf16.mxu0 %v7822_v36  ;;  %3408 = vmatprep.subr.bf16.mxu1 %v7824_v37  ;;  %v162_v1 = vld [vmem:[#allocation3 + $0x220] sm:$0xff]  ;;  %v7856_v7 = vcombine.high %v159_v2, %v163_v3  ;;  %v167_v10 = vld [vmem:[#allocation3 + $0x248] sm:$0xff]  ;;  %v7855_v13 = vcombine.low %v159_v2, %v163_v3 }
  0x6c   :  { %3268 = vmatprep.mubr.bf16.mxu0 %v9201_v57  ;;  %3432 = vmatprep.mubr.bf16.mxu1 %v9201_v57  ;;  %v7854_v6 = vcombine.high %v158_v0, %v162_v1  ;;  %v166_v8 = vld [vmem:[#allocation3 + $0x240] sm:$0xff]  ;;  %v171_v11 = vld [vmem:[#allocation3 + $0x268] sm:$0xff]  ;;  %v7853_v12 = vcombine.low %v158_v0, %v162_v1 }
  0x6d   :  { %v170_v9 = vld [vmem:[#allocation3 + $0x260] sm:$0xff]  ;;  %v7864_v15 = vcombine.high %v167_v10, %v171_v11  ;;  %v175_v18 = vld [vmem:[#allocation3 + $0x288] sm:$0xff]  ;;  %v7863_v21 = vcombine.low %v167_v10, %v171_v11 }
  0x6e   :  { %3245 = vmatpush1.bf16.msra.mxu0 %v7821_v42  ;;  %3409 = vmatpush1.bf16.msra.mxu1 %v7823_v43  ;;  %v7862_v14 = vcombine.high %v166_v8, %v170_v9  ;;  %v174_v16 = vld [vmem:[#allocation3 + $0x280] sm:$0xff]  ;;  %v179_v19 = vld [vmem:[#allocation3 + $0x2a8] sm:$0xff]  ;;  %v7861_v20 = vcombine.low %v166_v8, %v170_v9 }
  0x6f   :  { %3246 = vmatprep.subr.bf16.mxu0 %v7830_v44  ;;  %3410 = vmatprep.subr.bf16.mxu1 %v7832_v45  ;;  %v178_v17 = vld [vmem:[#allocation3 + $0x2a0] sm:$0xff]  ;;  %v7872_v23 = vcombine.high %v175_v18, %v179_v19  ;;  %v183_v26 = vld [vmem:[#allocation3 + $0x2c8] sm:$0xff]  ;;  %v7871_v29 = vcombine.low %v175_v18, %v179_v19 }
  0x70   :  { %v7870_v22 = vcombine.high %v174_v16, %v178_v17  ;;  %v182_v24 = vld [vmem:[#allocation3 + $0x2c0] sm:$0xff]  ;;  %v187_v27 = vld [vmem:[#allocation3 + $0x2e8] sm:$0xff]  ;;  %v7869_v28 = vcombine.low %v174_v16, %v178_v17 }
  0x71   :  { %v186_v25 = vld [vmem:[#allocation3 + $0x2e0] sm:$0xff]  ;;  %v7880_v31 = vcombine.high %v183_v26, %v187_v27  ;;  %v191_v34 = vld [vmem:[#allocation3 + $0x308] sm:$0xff]  ;;  %v7879_v37 = vcombine.low %v183_v26, %v187_v27 }
  0x72   :  { %3247 = vmatpush1.bf16.msra.mxu0 %v7829_v50  ;;  %3411 = vmatpush1.bf16.msra.mxu1 %v7831_v51  ;;  %v7878_v30 = vcombine.high %v182_v24, %v186_v25  ;;  %v190_v32 = vld [vmem:[#allocation3 + $0x300] sm:$0xff]  ;;  %v195_v35 = vld [vmem:[#allocation3 + $0x328] sm:$0xff]  ;;  %v7877_v36 = vcombine.low %v182_v24, %v186_v25 }
  0x73   :  { %3248 = vmatprep.subr.bf16.mxu0 %v7838_v52  ;;  %3412 = vmatprep.subr.bf16.mxu1 %v7840_v54  ;;  %v194_v33 = vld [vmem:[#allocation3 + $0x320] sm:$0xff]  ;;  %v7888_v39 = vcombine.high %v191_v34, %v195_v35  ;;  %v199_v42 = vld [vmem:[#allocation3 + $0x348] sm:$0xff]  ;;  %v7887_v45 = vcombine.low %v191_v34, %v195_v35 }
  0x74   :  { %v7886_v38 = vcombine.high %v190_v32, %v194_v33  ;;  %v198_v40 = vld [vmem:[#allocation3 + $0x340] sm:$0xff]  ;;  %v203_v43 = vld [vmem:[#allocation3 + $0x368] sm:$0xff]  ;;  %v7885_v44 = vcombine.low %v190_v32, %v194_v33 }
  0x75   :  { %v202_v41 = vld [vmem:[#allocation3 + $0x360] sm:$0xff]  ;;  %v7896_v47 = vcombine.high %v199_v42, %v203_v43  ;;  %v207_v50 = vld [vmem:[#allocation3 + $0x388] sm:$0xff]  ;;  %v7895_v54 = vcombine.low %v199_v42, %v203_v43 }
  0x76   :  { %3249 = vmatpush1.bf16.msra.mxu0 %v7837_v60  ;;  %3413 = vmatpush1.bf16.msra.mxu1 %v7839_v61  ;;  %v7894_v46 = vcombine.high %v198_v40, %v202_v41  ;;  %v206_v48 = vld [vmem:[#allocation3 + $0x380] sm:$0xff]  ;;  %v211_v51 = vld [vmem:[#allocation3 + $0x3a8] sm:$0xff]  ;;  %v7893_v52 = vcombine.low %v198_v40, %v202_v41 }
  0x77   :  { %3250 = vmatprep.subr.bf16.mxu0 %v7846_v62  ;;  %3414 = vmatprep.subr.bf16.mxu1 %v7848_v63  ;;  %v210_v49 = vld [vmem:[#allocation3 + $0x3a0] sm:$0xff]  ;;  %v7904_v56 = vcombine.high %v207_v50, %v211_v51  ;;  %v215_v60 = vld [vmem:[#allocation3 + $0x3c8] sm:$0xff]  ;;  %v7903_v63 = vcombine.low %v207_v50, %v211_v51 }
  0x78   :  { %v7902_v55 = vcombine.high %v206_v48, %v210_v49  ;;  %v214_v58 = vld [vmem:[#allocation3 + $0x3c0] sm:$0xff]  ;;  %v219_v61 = vld [vmem:[#allocation3 + $0x3e8] sm:$0xff]  ;;  %v7901_v62 = vcombine.low %v206_v48, %v210_v49 }
  0x79   :  { %v218_v59 = vld [vmem:[#allocation3 + $0x3e0] sm:$0xff]  ;;  %v7912_v1 = vcombine.high %v215_v60, %v219_v61 }
  0x7a   :  { %3251 = vmatpush1.bf16.msra.mxu0 %v7845_v4  ;;  %3415 = vmatpush1.bf16.msra.mxu1 %v7847_v5  ;;  %v7910_v0 = vcombine.high %v214_v58, %v218_v59  ;;  %v222_v2 = vld [vmem:[#allocation3 + $0x400] sm:$0xff]  ;;  %v223_v4 = vld [vmem:[#allocation3 + $0x408] sm:$0xff] }
  0x7b   :  { %3252 = vmatprep.subr.bf16.mxu0 %v7854_v6  ;;  %3416 = vmatprep.subr.bf16.mxu1 %v7856_v7  ;;  %v226_v3 = vld [vmem:[#allocation3 + $0x420] sm:$0xff]  ;;  %v227_v5 = vld [vmem:[#allocation3 + $0x428] sm:$0xff]  ;;  %v7909_v6 = vcombine.low %v214_v58, %v218_v59  ;;  %v7911_v7 = vcombine.low %v215_v60, %v219_v61 }
  0x7c   :  { %v7918_v8 = vcombine.high %v222_v2, %v226_v3  ;;  %v7920_v9 = vcombine.high %v223_v4, %v227_v5  ;;  %v230_v10 = vld [vmem:[#allocation3 + $0x440] sm:$0xff]  ;;  %v7917_v16 = vcombine.low %v222_v2, %v226_v3  ;;  %v7919_v17 = vcombine.low %v223_v4, %v227_v5 }
  0x7d   :  { %v234_v11 = vld [vmem:[#allocation3 + $0x460] sm:$0xff] }
  0x7e   :  { %3253 = vmatpush1.bf16.msra.mxu0 %v7853_v12  ;;  %3417 = vmatpush1.bf16.msra.mxu1 %v7855_v13  ;;  %v9207_v12 = vcombine.low %v9197_v53, %v9197_v53  ;;  %v231_v13 = vld [vmem:[#allocation3 + $0x448] sm:$0xff]  ;;  %v7926_v18 = vcombine.high %v230_v10, %v234_v11  ;;  %v7925_v24 = vcombine.low %v230_v10, %v234_v11 }
  0x7f   :  { %3254 = vmatprep.subr.bf16.mxu0 %v7862_v14  ;;  %3418 = vmatprep.subr.bf16.mxu1 %v7864_v15  ;;  %v235_v14 = vld [vmem:[#allocation3 + $0x468] sm:$0xff] }
  0x80   :  { %v9212_v15 = vld [vmem:[%s9444_s0 + $0x8] sm:$0xff]  ;;  %v7928_v19 = vcombine.high %v231_v13, %v235_v14  ;;  %v7927_v25 = vcombine.low %v231_v13, %v235_v14 }
  0x81   :  { %v9216_v53 = vcombine.high %v9212_v15, %v9212_v15 }
  0x82   :  { %3255 = vmatpush1.bf16.msra.mxu0 %v7861_v20  ;;  %3419 = vmatpush1.bf16.msra.mxu1 %v7863_v21  ;;  %v238_v20 = vld [vmem:[#allocation3 + $0x480] sm:$0xff] }
  0x83   :  { %3256 = vmatprep.subr.bf16.mxu0 %v7870_v22  ;;  %3420 = vmatprep.subr.bf16.mxu1 %v7872_v23  ;;  %v242_v21 = vld [vmem:[#allocation3 + $0x4a0] sm:$0xff]  ;;  %v239_v22 = vld [vmem:[#allocation3 + $0x488] sm:$0xff] }
  0x84   :  { %v243_v23 = vld [vmem:[#allocation3 + $0x4a8] sm:$0xff]  ;;  %v7934_v26 = vcombine.high %v238_v20, %v242_v21  ;;  %v7933_v32 = vcombine.low %v238_v20, %v242_v21 }
  0x85   :  { %v7936_v27 = vcombine.high %v239_v22, %v243_v23  ;;  %v7935_v33 = vcombine.low %v239_v22, %v243_v23 }
  0x86   :  { %3257 = vmatpush1.bf16.msra.mxu0 %v7869_v28  ;;  %3421 = vmatpush1.bf16.msra.mxu1 %v7871_v29  ;;  %v246_v28 = vld [vmem:[#allocation3 + $0x4c0] sm:$0xff] }
  0x87   :  { %3258 = vmatprep.subr.bf16.mxu0 %v7878_v30  ;;  %3422 = vmatprep.subr.bf16.mxu1 %v7880_v31  ;;  %v250_v29 = vld [vmem:[#allocation3 + $0x4e0] sm:$0xff]  ;;  %v247_v30 = vld [vmem:[#allocation3 + $0x4c8] sm:$0xff] }
  0x88   :  { %v251_v31 = vld [vmem:[#allocation3 + $0x4e8] sm:$0xff]  ;;  %v7942_v34 = vcombine.high %v246_v28, %v250_v29  ;;  %v7941_v40 = vcombine.low %v246_v28, %v250_v29 }
  0x89   :  { %v7944_v35 = vcombine.high %v247_v30, %v251_v31  ;;  %v7943_v41 = vcombine.low %v247_v30, %v251_v31 }
  0x8a   :  { %3259 = vmatpush1.bf16.msra.mxu0 %v7877_v36  ;;  %3423 = vmatpush1.bf16.msra.mxu1 %v7879_v37  ;;  %v254_v36 = vld [vmem:[#allocation3 + $0x500] sm:$0xff] }
  0x8b   :  { %3260 = vmatprep.subr.bf16.mxu0 %v7886_v38  ;;  %3424 = vmatprep.subr.bf16.mxu1 %v7888_v39  ;;  %v258_v37 = vld [vmem:[#allocation3 + $0x520] sm:$0xff]  ;;  %v255_v38 = vld [vmem:[#allocation3 + $0x508] sm:$0xff] }
  0x8c   :  { %v259_v39 = vld [vmem:[#allocation3 + $0x528] sm:$0xff]  ;;  %v7950_v42 = vcombine.high %v254_v36, %v258_v37  ;;  %v7949_v48 = vcombine.low %v254_v36, %v258_v37 }
  0x8d   :  { %v7952_v43 = vcombine.high %v255_v38, %v259_v39  ;;  %v7951_v49 = vcombine.low %v255_v38, %v259_v39 }
  0x8e   :  { %3261 = vmatpush1.bf16.msra.mxu0 %v7885_v44  ;;  %3425 = vmatpush1.bf16.msra.mxu1 %v7887_v45  ;;  %v262_v44 = vld [vmem:[#allocation3 + $0x540] sm:$0xff] }
  0x8f   :  { %3262 = vmatprep.subr.bf16.mxu0 %v7894_v46  ;;  %3426 = vmatprep.subr.bf16.mxu1 %v7896_v47  ;;  %v266_v45 = vld [vmem:[#allocation3 + $0x560] sm:$0xff]  ;;  %v263_v46 = vld [vmem:[#allocation3 + $0x548] sm:$0xff] }
  0x90   :  { %v267_v47 = vld [vmem:[#allocation3 + $0x568] sm:$0xff]  ;;  %v7958_v50 = vcombine.high %v262_v44, %v266_v45  ;;  %v7957_v58 = vcombine.low %v262_v44, %v266_v45 }
  0x91   :  { %v7960_v51 = vcombine.high %v263_v46, %v267_v47  ;;  %v7959_v59 = vcombine.low %v263_v46, %v267_v47 }
  0x92   :  { %3263 = vmatpush1.bf16.msra.mxu0 %v7893_v52  ;;  %3427 = vmatpush1.bf16.msra.mxu1 %v7895_v54  ;;  %v270_v52 = vld [vmem:[#allocation3 + $0x580] sm:$0xff] }
  0x93   :  { %3264 = vmatprep.subr.bf16.mxu0 %v7902_v55  ;;  %3428 = vmatprep.subr.bf16.mxu1 %v7904_v56  ;;  %v274_v54 = vld [vmem:[#allocation3 + $0x5a0] sm:$0xff]  ;;  %v271_v55 = vld [vmem:[#allocation3 + $0x588] sm:$0xff] }
  0x94   :  { %v275_v56 = vld [vmem:[#allocation3 + $0x5a8] sm:$0xff]  ;;  %v7966_v60 = vcombine.high %v270_v52, %v274_v54  ;;  %v7965_v2 = vcombine.low %v270_v52, %v274_v54 }
  0x95   :  { %v7968_v61 = vcombine.high %v271_v55, %v275_v56  ;;  %v7967_v3 = vcombine.low %v271_v55, %v275_v56 }
  0x96   :  { %3265 = vmatpush1.bf16.msra.mxu0 %v7901_v62  ;;  %3429 = vmatpush1.bf16.msra.mxu1 %v7903_v63  ;;  %v278_v62 = vld [vmem:[#allocation3 + $0x5c0] sm:$0xff] }
  0x97   :  { %3266 = vmatprep.subr.bf16.mxu0 %v7910_v0  ;;  %3430 = vmatprep.subr.bf16.mxu1 %v7912_v1  ;;  %v282_v63 = vld [vmem:[#allocation3 + $0x5e0] sm:$0xff]  ;;  %v279_v0 = vld [vmem:[#allocation3 + $0x5c8] sm:$0xff] }
  0x98   :  { %v283_v1 = vld [vmem:[#allocation3 + $0x5e8] sm:$0xff]  ;;  %v7974_v4 = vcombine.high %v278_v62, %v282_v63  ;;  %v7973_v10 = vcombine.low %v278_v62, %v282_v63 }
  0x99   :  { %v7976_v5 = vcombine.high %v279_v0, %v283_v1  ;;  %v7975_v11 = vcombine.low %v279_v0, %v283_v1 }
  0x9a   :  { %3267 = vmatpush1.bf16.msra.mxu0 %v7909_v6  ;;  %3431 = vmatpush1.bf16.msra.mxu1 %v7911_v7  ;;  %v286_v6 = vld [vmem:[#allocation3 + $0x600] sm:$0xff] }
  0x9b   :  { %3277 = vmatprep.subr.bf16.mxu0 %v7918_v8  ;;  %3441 = vmatprep.subr.bf16.mxu1 %v7920_v9  ;;  %v290_v7 = vld [vmem:[#allocation3 + $0x620] sm:$0xff]  ;;  %v287_v8 = vld [vmem:[#allocation3 + $0x608] sm:$0xff] }
  0x9c   :  { %v291_v9 = vld [vmem:[#allocation3 + $0x628] sm:$0xff]  ;;  %v7982_v13 = vcombine.high %v286_v6, %v290_v7  ;;  %v7981_v20 = vcombine.low %v286_v6, %v290_v7 }
  0x9d   :  { %3269 = vmatmul.mubr.bf16.vlgmr.msra.gmra.mrb[0].mxu0 %v9207_v12  ;;  %3433 = vmatmul.mubr.bf16.vlgmr.msra.gmra.mrb[0].mxu1 %v9207_v12  ;;  %v7984_v14 = vcombine.high %v287_v8, %v291_v9  ;;  %v7983_v21 = vcombine.low %v287_v8, %v291_v9 }
  0x9e   :  { %3278 = vmatpush1.bf16.msra.mxu0 %v7917_v16  ;;  %3442 = vmatpush1.bf16.msra.mxu1 %v7919_v17  ;;  %v294_v16 = vld [vmem:[#allocation3 + $0x640] sm:$0xff] }
  0x9f   :  { %3279 = vmatprep.subr.bf16.mxu0 %v7926_v18  ;;  %3443 = vmatprep.subr.bf16.mxu1 %v7928_v19  ;;  %v298_v17 = vld [vmem:[#allocation3 + $0x660] sm:$0xff]  ;;  %v295_v18 = vld [vmem:[#allocation3 + $0x648] sm:$0xff] }
  0xa0   :  { %3309 = vmatprep.mubr.bf16.mxu0 %v9216_v53  ;;  %3473 = vmatprep.mubr.bf16.mxu1 %v9216_v53  ;;  %v299_v19 = vld [vmem:[#allocation3 + $0x668] sm:$0xff]  ;;  %v7990_v22 = vcombine.high %v294_v16, %v298_v17  ;;  %v7989_v28 = vcombine.low %v294_v16, %v298_v17 }
  0xa1   :  { %v7992_v23 = vcombine.high %v295_v18, %v299_v19  ;;  %v7991_v29 = vcombine.low %v295_v18, %v299_v19 }
  0xa2   :  { %3280 = vmatpush1.bf16.msra.mxu0 %v7925_v24  ;;  %3444 = vmatpush1.bf16.msra.mxu1 %v7927_v25  ;;  %v302_v24 = vld [vmem:[#allocation3 + $0x680] sm:$0xff] }
  0xa3   :  { %3281 = vmatprep.subr.bf16.mxu0 %v7934_v26  ;;  %3445 = vmatprep.subr.bf16.mxu1 %v7936_v27  ;;  %v306_v25 = vld [vmem:[#allocation3 + $0x6a0] sm:$0xff]  ;;  %v303_v26 = vld [vmem:[#allocation3 + $0x688] sm:$0xff] }
  0xa4   :  { %v307_v27 = vld [vmem:[#allocation3 + $0x6a8] sm:$0xff]  ;;  %v7998_v30 = vcombine.high %v302_v24, %v306_v25  ;;  %v7997_v36 = vcombine.low %v302_v24, %v306_v25  ;;  %v9229_v25 = vld [vmem:[%s9444_s0 + $0x10] sm:$0xff] }
  0xa5   :  { %v8000_v31 = vcombine.high %v303_v26, %v307_v27  ;;  %v7999_v37 = vcombine.low %v303_v26, %v307_v27  ;;  %v363_v24 = vld [vmem:[#allocation3 + $0x868] sm:$0xff] }
  0xa6   :  { %3282 = vmatpush1.bf16.msra.mxu0 %v7933_v32  ;;  %3446 = vmatpush1.bf16.msra.mxu1 %v7935_v33  ;;  %v310_v32 = vld [vmem:[#allocation3 + $0x6c0] sm:$0xff] }
  0xa7   :  { %3283 = vmatprep.subr.bf16.mxu0 %v7942_v34  ;;  %3447 = vmatprep.subr.bf16.mxu1 %v7944_v35  ;;  %v314_v33 = vld [vmem:[#allocation3 + $0x6e0] sm:$0xff]  ;;  %v311_v34 = vld [vmem:[#allocation3 + $0x6c8] sm:$0xff] }
  0xa8   :  { %v315_v35 = vld [vmem:[#allocation3 + $0x6e8] sm:$0xff]  ;;  %v8006_v38 = vcombine.high %v310_v32, %v314_v33  ;;  %v8005_v44 = vcombine.low %v310_v32, %v314_v33 }
  0xa9   :  { %v8008_v39 = vcombine.high %v311_v34, %v315_v35  ;;  %v8007_v45 = vcombine.low %v311_v34, %v315_v35  ;;  %v367_v32 = vld [vmem:[#allocation3 + $0x888] sm:$0xff] }
  0xaa   :  { %3284 = vmatpush1.bf16.msra.mxu0 %v7941_v40  ;;  %3448 = vmatpush1.bf16.msra.mxu1 %v7943_v41  ;;  %v318_v40 = vld [vmem:[#allocation3 + $0x700] sm:$0xff]  ;;  %v371_v33 = vld [vmem:[#allocation3 + $0x8a8] sm:$0xff] }
  0xab   :  { %3285 = vmatprep.subr.bf16.mxu0 %v7950_v42  ;;  %3449 = vmatprep.subr.bf16.mxu1 %v7952_v43  ;;  %v322_v41 = vld [vmem:[#allocation3 + $0x720] sm:$0xff]  ;;  %v319_v42 = vld [vmem:[#allocation3 + $0x708] sm:$0xff] }
  0xac   :  { %v323_v43 = vld [vmem:[#allocation3 + $0x728] sm:$0xff]  ;;  %v8014_v46 = vcombine.high %v318_v40, %v322_v41  ;;  %v8013_v52 = vcombine.low %v318_v40, %v322_v41 }
  0xad   :  { %v8016_v47 = vcombine.high %v319_v42, %v323_v43  ;;  %v8015_v54 = vcombine.low %v319_v42, %v323_v43  ;;  %v375_v40 = vld [vmem:[#allocation3 + $0x8c8] sm:$0xff]  ;;  %v8063_v43 = vcombine.low %v367_v32, %v371_v33 }
  0xae   :  { %3286 = vmatpush1.bf16.msra.mxu0 %v7949_v48  ;;  %3450 = vmatpush1.bf16.msra.mxu1 %v7951_v49  ;;  %v326_v48 = vld [vmem:[#allocation3 + $0x740] sm:$0xff]  ;;  %v379_v41 = vld [vmem:[#allocation3 + $0x8e8] sm:$0xff] }
  0xaf   :  { %3287 = vmatprep.subr.bf16.mxu0 %v7958_v50  ;;  %3451 = vmatprep.subr.bf16.mxu1 %v7960_v51  ;;  %v330_v49 = vld [vmem:[#allocation3 + $0x760] sm:$0xff]  ;;  %v327_v50 = vld [vmem:[#allocation3 + $0x748] sm:$0xff] }
  0xb0   :  { %v331_v51 = vld [vmem:[#allocation3 + $0x768] sm:$0xff]  ;;  %v8022_v55 = vcombine.high %v326_v48, %v330_v49  ;;  %v8021_v62 = vcombine.low %v326_v48, %v330_v49 }
  0xb1   :  { %v8024_v56 = vcombine.high %v327_v50, %v331_v51  ;;  %v8023_v63 = vcombine.low %v327_v50, %v331_v51  ;;  %v383_v48 = vld [vmem:[#allocation3 + $0x908] sm:$0xff]  ;;  %v8071_v51 = vcombine.low %v375_v40, %v379_v41 }
  0xb2   :  { %3288 = vmatpush1.bf16.msra.mxu0 %v7957_v58  ;;  %3452 = vmatpush1.bf16.msra.mxu1 %v7959_v59  ;;  %v334_v58 = vld [vmem:[#allocation3 + $0x780] sm:$0xff]  ;;  %v387_v49 = vld [vmem:[#allocation3 + $0x928] sm:$0xff] }
  0xb3   :  { %3289 = vmatprep.subr.bf16.mxu0 %v7966_v60  ;;  %3453 = vmatprep.subr.bf16.mxu1 %v7968_v61  ;;  %v338_v59 = vld [vmem:[#allocation3 + $0x7a0] sm:$0xff]  ;;  %v335_v60 = vld [vmem:[#allocation3 + $0x788] sm:$0xff] }
  0xb4   :  { %v339_v61 = vld [vmem:[#allocation3 + $0x7a8] sm:$0xff]  ;;  %v8030_v0 = vcombine.high %v334_v58, %v338_v59  ;;  %v8029_v6 = vcombine.low %v334_v58, %v338_v59 }
  0xb5   :  { %v8032_v1 = vcombine.high %v335_v60, %v339_v61  ;;  %v8031_v7 = vcombine.low %v335_v60, %v339_v61  ;;  %v391_v58 = vld [vmem:[#allocation3 + $0x948] sm:$0xff]  ;;  %v8079_v61 = vcombine.low %v383_v48, %v387_v49 }
  0xb6   :  { %3290 = vmatpush1.bf16.msra.mxu0 %v7965_v2  ;;  %3454 = vmatpush1.bf16.msra.mxu1 %v7967_v3  ;;  %v342_v2 = vld [vmem:[#allocation3 + $0x7c0] sm:$0xff]  ;;  %v395_v59 = vld [vmem:[#allocation3 + $0x968] sm:$0xff] }
  0xb7   :  { %3291 = vmatprep.subr.bf16.mxu0 %v7974_v4  ;;  %3455 = vmatprep.subr.bf16.mxu1 %v7976_v5  ;;  %v346_v3 = vld [vmem:[#allocation3 + $0x7e0] sm:$0xff]  ;;  %v343_v4 = vld [vmem:[#allocation3 + $0x7c8] sm:$0xff] }
  0xb8   :  { %v347_v5 = vld [vmem:[#allocation3 + $0x7e8] sm:$0xff]  ;;  %v8038_v8 = vcombine.high %v342_v2, %v346_v3  ;;  %v8037_v16 = vcombine.low %v342_v2, %v346_v3 }
  0xb9   :  { %v8040_v9 = vcombine.high %v343_v4, %v347_v5  ;;  %v8039_v17 = vcombine.low %v343_v4, %v347_v5  ;;  %v399_v2 = vld [vmem:[#allocation3 + $0x988] sm:$0xff]  ;;  %v8087_v5 = vcombine.low %v391_v58, %v395_v59 }
  0xba   :  { %3292 = vmatpush1.bf16.msra.mxu0 %v7973_v10  ;;  %3456 = vmatpush1.bf16.msra.mxu1 %v7975_v11  ;;  %v350_v10 = vld [vmem:[#allocation3 + $0x800] sm:$0xff]  ;;  %v403_v3 = vld [vmem:[#allocation3 + $0x9a8] sm:$0xff] }
  0xbb   :  { %3293 = vmatprep.subr.bf16.mxu0 %v7982_v13  ;;  %3457 = vmatprep.subr.bf16.mxu1 %v7984_v14  ;;  %v354_v11 = vld [vmem:[#allocation3 + $0x820] sm:$0xff]  ;;  %v351_v13 = vld [vmem:[#allocation3 + $0x808] sm:$0xff] }
  0xbc   :  { %v355_v14 = vld [vmem:[#allocation3 + $0x828] sm:$0xff]  ;;  %v8046_v18 = vcombine.high %v350_v10, %v354_v11  ;;  %v8045_v26 = vcombine.low %v350_v10, %v354_v11 }
  0xbd   :  { %v8048_v19 = vcombine.high %v351_v13, %v355_v14  ;;  %v8047_v27 = vcombine.low %v351_v13, %v355_v14  ;;  %v407_v10 = vld [vmem:[#allocation3 + $0x9c8] sm:$0xff]  ;;  %v8095_v14 = vcombine.low %v399_v2, %v403_v3 }
  0xbe   :  { %3294 = vmatpush1.bf16.msra.mxu0 %v7981_v20  ;;  %3458 = vmatpush1.bf16.msra.mxu1 %v7983_v21  ;;  %v358_v20 = vld [vmem:[#allocation3 + $0x840] sm:$0xff]  ;;  %v411_v11 = vld [vmem:[#allocation3 + $0x9e8] sm:$0xff] }
  0xbf   :  { %3295 = vmatprep.subr.bf16.mxu0 %v7990_v22  ;;  %3459 = vmatprep.subr.bf16.mxu1 %v7992_v23  ;;  %v362_v21 = vld [vmem:[#allocation3 + $0x860] sm:$0xff]  ;;  %v9224_v22 = vcombine.low %v9212_v15, %v9212_v15  ;;  %v359_v23 = vld [vmem:[#allocation3 + $0x848] sm:$0xff]  ;;  %v9233_v15 = vcombine.high %v9229_v25, %v9229_v25 }
  0xc0   :  { %v8053_v34 = vcombine.low %v358_v20, %v362_v21  ;;  %v8055_v35 = vcombine.low %v359_v23, %v363_v24 }
  0xc2   :  { %3296 = vmatpush1.bf16.msra.mxu0 %v7989_v28  ;;  %3460 = vmatpush1.bf16.msra.mxu1 %v7991_v29  ;;  %v8054_v28 = vcombine.high %v358_v20, %v362_v21  ;;  %v8056_v29 = vcombine.high %v359_v23, %v363_v24  ;;  %v415_v20 = vld [vmem:[#allocation3 + $0xa08] sm:$0xff]  ;;  %v8103_v24 = vcombine.low %v407_v10, %v411_v11 }
  0xc3   :  { %3297 = vmatprep.subr.bf16.mxu0 %v7998_v30  ;;  %3461 = vmatprep.subr.bf16.mxu1 %v8000_v31  ;;  %v366_v30 = vld [vmem:[#allocation3 + $0x880] sm:$0xff]  ;;  %v419_v21 = vld [vmem:[#allocation3 + $0xa28] sm:$0xff] }
  0xc4   :  { %v370_v31 = vld [vmem:[#allocation3 + $0x8a0] sm:$0xff] }
  0xc5   :  { %v8061_v42 = vcombine.low %v366_v30, %v370_v31 }
  0xc6   :  { %3298 = vmatpush1.bf16.msra.mxu0 %v7997_v36  ;;  %3462 = vmatpush1.bf16.msra.mxu1 %v7999_v37  ;;  %v8062_v36 = vcombine.high %v366_v30, %v370_v31  ;;  %v8064_v37 = vcombine.high %v367_v32, %v371_v33  ;;  %v423_v30 = vld [vmem:[#allocation3 + $0xa48] sm:$0xff]  ;;  %v8111_v33 = vcombine.low %v415_v20, %v419_v21 }
  0xc7   :  { %3299 = vmatprep.subr.bf16.mxu0 %v8006_v38  ;;  %3463 = vmatprep.subr.bf16.mxu1 %v8008_v39  ;;  %v374_v38 = vld [vmem:[#allocation3 + $0x8c0] sm:$0xff]  ;;  %v427_v31 = vld [vmem:[#allocation3 + $0xa68] sm:$0xff] }
  0xc8   :  { %v378_v39 = vld [vmem:[#allocation3 + $0x8e0] sm:$0xff] }
  0xc9   :  { %v8069_v50 = vcombine.low %v374_v38, %v378_v39 }
  0xca   :  { %3300 = vmatpush1.bf16.msra.mxu0 %v8005_v44  ;;  %3464 = vmatpush1.bf16.msra.mxu1 %v8007_v45  ;;  %v8070_v44 = vcombine.high %v374_v38, %v378_v39  ;;  %v8072_v45 = vcombine.high %v375_v40, %v379_v41  ;;  %v431_v38 = vld [vmem:[#allocation3 + $0xa88] sm:$0xff]  ;;  %v8119_v41 = vcombine.low %v423_v30, %v427_v31 }
  0xcb   :  { %3301 = vmatprep.subr.bf16.mxu0 %v8014_v46  ;;  %3465 = vmatprep.subr.bf16.mxu1 %v8016_v47  ;;  %v382_v46 = vld [vmem:[#allocation3 + $0x900] sm:$0xff]  ;;  %v435_v39 = vld [vmem:[#allocation3 + $0xaa8] sm:$0xff] }
  0xcc   :  { %v386_v47 = vld [vmem:[#allocation3 + $0x920] sm:$0xff] }
  0xcd   :  { %v8077_v60 = vcombine.low %v382_v46, %v386_v47 }
  0xce   :  { %3302 = vmatpush1.bf16.msra.mxu0 %v8013_v52  ;;  %3466 = vmatpush1.bf16.msra.mxu1 %v8015_v54  ;;  %v8078_v52 = vcombine.high %v382_v46, %v386_v47  ;;  %v8080_v54 = vcombine.high %v383_v48, %v387_v49  ;;  %v439_v46 = vld [vmem:[#allocation3 + $0xac8] sm:$0xff]  ;;  %v8127_v49 = vcombine.low %v431_v38, %v435_v39 }
  0xcf   :  { %3303 = vmatprep.subr.bf16.mxu0 %v8022_v55  ;;  %3467 = vmatprep.subr.bf16.mxu1 %v8024_v56  ;;  %v390_v55 = vld [vmem:[#allocation3 + $0x940] sm:$0xff]  ;;  %v443_v47 = vld [vmem:[#allocation3 + $0xae8] sm:$0xff] }
  0xd0   :  { %v394_v56 = vld [vmem:[#allocation3 + $0x960] sm:$0xff] }
  0xd1   :  { %v8085_v4 = vcombine.low %v390_v55, %v394_v56 }
  0xd2   :  { %3304 = vmatpush1.bf16.msra.mxu0 %v8021_v62  ;;  %3468 = vmatpush1.bf16.msra.mxu1 %v8023_v63  ;;  %v8086_v62 = vcombine.high %v390_v55, %v394_v56  ;;  %v8088_v63 = vcombine.high %v391_v58, %v395_v59  ;;  %v447_v55 = vld [vmem:[#allocation3 + $0xb08] sm:$0xff]  ;;  %v8135_v59 = vcombine.low %v439_v46, %v443_v47 }
  0xd3   :  { %3305 = vmatprep.subr.bf16.mxu0 %v8030_v0  ;;  %3469 = vmatprep.subr.bf16.mxu1 %v8032_v1  ;;  %v398_v0 = vld [vmem:[#allocation3 + $0x980] sm:$0xff]  ;;  %v451_v56 = vld [vmem:[#allocation3 + $0xb28] sm:$0xff] }
  0xd4   :  { %v402_v1 = vld [vmem:[#allocation3 + $0x9a0] sm:$0xff] }
  0xd5   :  { %v8093_v13 = vcombine.low %v398_v0, %v402_v1 }
  0xd6   :  { %3306 = vmatpush1.bf16.msra.mxu0 %v8029_v6  ;;  %3470 = vmatpush1.bf16.msra.mxu1 %v8031_v7  ;;  %v8094_v6 = vcombine.high %v398_v0, %v402_v1  ;;  %v8096_v7 = vcombine.high %v399_v2, %v403_v3  ;;  %v455_v0 = vld [vmem:[#allocation3 + $0xb48] sm:$0xff]  ;;  %v8143_v3 = vcombine.low %v447_v55, %v451_v56 }
  0xd7   :  { %3307 = vmatprep.subr.bf16.mxu0 %v8038_v8  ;;  %3471 = vmatprep.subr.bf16.mxu1 %v8040_v9  ;;  %v406_v8 = vld [vmem:[#allocation3 + $0x9c0] sm:$0xff]  ;;  %v459_v1 = vld [vmem:[#allocation3 + $0xb68] sm:$0xff] }
  0xd8   :  { %v410_v9 = vld [vmem:[#allocation3 + $0x9e0] sm:$0xff] }
  0xd9   :  { %v8101_v23 = vcombine.low %v406_v8, %v410_v9 }
  0xda   :  { %3308 = vmatpush1.bf16.msra.mxu0 %v8037_v16  ;;  %3472 = vmatpush1.bf16.msra.mxu1 %v8039_v17  ;;  %v8102_v16 = vcombine.high %v406_v8, %v410_v9  ;;  %v8104_v17 = vcombine.high %v407_v10, %v411_v11  ;;  %v463_v8 = vld [vmem:[#allocation3 + $0xb88] sm:$0xff]  ;;  %v8151_v11 = vcombine.low %v455_v0, %v459_v1 }
  0xdb   :  { %3318 = vmatprep.subr.bf16.mxu0 %v8046_v18  ;;  %3482 = vmatprep.subr.bf16.mxu1 %v8048_v19  ;;  %v414_v18 = vld [vmem:[#allocation3 + $0xa00] sm:$0xff]  ;;  %v467_v9 = vld [vmem:[#allocation3 + $0xba8] sm:$0xff] }
  0xdc   :  { %v418_v19 = vld [vmem:[#allocation3 + $0xa20] sm:$0xff] }
  0xdd   :  { %3310 = vmatmul.mubr.bf16.vlgmr.msra.gmra.mrb[0].mxu0 %v9224_v22  ;;  %3474 = vmatmul.mubr.bf16.vlgmr.msra.gmra.mrb[0].mxu1 %v9224_v22  ;;  %v8109_v32 = vcombine.low %v414_v18, %v418_v19 }
  0xde   :  { %3319 = vmatpush1.bf16.msra.mxu0 %v8045_v26  ;;  %3483 = vmatpush1.bf16.msra.mxu1 %v8047_v27  ;;  %v8110_v26 = vcombine.high %v414_v18, %v418_v19  ;;  %v8112_v27 = vcombine.high %v415_v20, %v419_v21  ;;  %v471_v18 = vld [vmem:[#allocation3 + $0xbc8] sm:$0xff]  ;;  %v8159_v21 = vcombine.low %v463_v8, %v467_v9 }
  0xdf   :  { %3320 = vmatprep.subr.bf16.mxu0 %v8054_v28  ;;  %3484 = vmatprep.subr.bf16.mxu1 %v8056_v29  ;;  %v422_v28 = vld [vmem:[#allocation3 + $0xa40] sm:$0xff]  ;;  %v475_v19 = vld [vmem:[#allocation3 + $0xbe8] sm:$0xff] }
  0xe0   :  { %3350 = vmatprep.mubr.bf16.mxu0 %v9233_v15  ;;  %3514 = vmatprep.mubr.bf16.mxu1 %v9233_v15  ;;  %v426_v29 = vld [vmem:[#allocation3 + $0xa60] sm:$0xff] }
  0xe1   :  { %v8117_v40 = vcombine.low %v422_v28, %v426_v29 }
  0xe2   :  { %3321 = vmatpush1.bf16.msra.mxu0 %v8053_v34  ;;  %3485 = vmatpush1.bf16.msra.mxu1 %v8055_v35  ;;  %v8118_v34 = vcombine.high %v422_v28, %v426_v29  ;;  %v8120_v35 = vcombine.high %v423_v30, %v427_v31  ;;  %v479_v28 = vld [vmem:[#allocation3 + $0xc08] sm:$0xff]  ;;  %v8167_v31 = vcombine.low %v471_v18, %v475_v19 }
  0xe3   :  { %3322 = vmatprep.subr.bf16.mxu0 %v8062_v36  ;;  %3486 = vmatprep.subr.bf16.mxu1 %v8064_v37  ;;  %v430_v36 = vld [vmem:[#allocation3 + $0xa80] sm:$0xff]  ;;  %v483_v29 = vld [vmem:[#allocation3 + $0xc28] sm:$0xff] }
  0xe4   :  { %v434_v37 = vld [vmem:[#allocation3 + $0xaa0] sm:$0xff] }
  0xe5   :  { %v8125_v48 = vcombine.low %v430_v36, %v434_v37 }
  0xe6   :  { %3323 = vmatpush1.bf16.msra.mxu0 %v8061_v42  ;;  %3487 = vmatpush1.bf16.msra.mxu1 %v8063_v43  ;;  %v8126_v42 = vcombine.high %v430_v36, %v434_v37  ;;  %v8128_v43 = vcombine.high %v431_v38, %v435_v39  ;;  %v9241_v36 = vcombine.low %v9229_v25, %v9229_v25  ;;  %v487_v37 = vld [vmem:[#allocation3 + $0xc48] sm:$0xff]  ;;  %v9246_v39 = vld [vmem:[%s9444_s0 + $0x18] sm:$0xff] }
  0xe7   :  { %3324 = vmatprep.subr.bf16.mxu0 %v8070_v44  ;;  %3488 = vmatprep.subr.bf16.mxu1 %v8072_v45  ;;  %v438_v44 = vld [vmem:[#allocation3 + $0xac0] sm:$0xff]  ;;  %v491_v38 = vld [vmem:[#allocation3 + $0xc68] sm:$0xff]  ;;  %v9250_v25 = vcombine.high %v9246_v39, %v9246_v39 }
  0xe8   :  { %v442_v45 = vld [vmem:[#allocation3 + $0xae0] sm:$0xff] }
  0xe9   :  { %v8133_v58 = vcombine.low %v438_v44, %v442_v45 }
  0xea   :  { %3325 = vmatpush1.bf16.msra.mxu0 %v8069_v50  ;;  %3489 = vmatpush1.bf16.msra.mxu1 %v8071_v51  ;;  %v8134_v50 = vcombine.high %v438_v44, %v442_v45  ;;  %v8136_v51 = vcombine.high %v439_v46, %v443_v47  ;;  %v494_v44 = vld [vmem:[#allocation3 + $0xc80] sm:$0xff]  ;;  %v495_v46 = vld [vmem:[#allocation3 + $0xc88] sm:$0xff] }
  0xeb   :  { %3326 = vmatprep.subr.bf16.mxu0 %v8078_v52  ;;  %3490 = vmatprep.subr.bf16.mxu1 %v8080_v54  ;;  %v446_v52 = vld [vmem:[#allocation3 + $0xb00] sm:$0xff]  ;;  %v499_v47 = vld [vmem:[#allocation3 + $0xca8] sm:$0xff] }
  0xec   :  { %v450_v54 = vld [vmem:[#allocation3 + $0xb20] sm:$0xff] }
  0xed   :  { %v8141_v2 = vcombine.low %v446_v52, %v450_v54  ;;  %v498_v45 = vld [vmem:[#allocation3 + $0xca0] sm:$0xff] }
  0xee   :  { %3327 = vmatpush1.bf16.msra.mxu0 %v8077_v60  ;;  %3491 = vmatpush1.bf16.msra.mxu1 %v8079_v61  ;;  %v8142_v60 = vcombine.high %v446_v52, %v450_v54  ;;  %v8144_v61 = vcombine.high %v447_v55, %v451_v56  ;;  %v502_v52 = vld [vmem:[#allocation3 + $0xcc0] sm:$0xff]  ;;  %v503_v55 = vld [vmem:[#allocation3 + $0xcc8] sm:$0xff] }
  0xef   :  { %3328 = vmatprep.subr.bf16.mxu0 %v8086_v62  ;;  %3492 = vmatprep.subr.bf16.mxu1 %v8088_v63  ;;  %v454_v62 = vld [vmem:[#allocation3 + $0xb40] sm:$0xff]  ;;  %v507_v56 = vld [vmem:[#allocation3 + $0xce8] sm:$0xff] }
  0xf0   :  { %v458_v63 = vld [vmem:[#allocation3 + $0xb60] sm:$0xff] }
  0xf1   :  { %v8149_v10 = vcombine.low %v454_v62, %v458_v63  ;;  %v506_v54 = vld [vmem:[#allocation3 + $0xce0] sm:$0xff] }
  0xf2   :  { %3329 = vmatpush1.bf16.msra.mxu0 %v8085_v4  ;;  %3493 = vmatpush1.bf16.msra.mxu1 %v8087_v5  ;;  %v8150_v4 = vcombine.high %v454_v62, %v458_v63  ;;  %v8152_v5 = vcombine.high %v455_v0, %v459_v1  ;;  %v510_v62 = vld [vmem:[#allocation3 + $0xd00] sm:$0xff]  ;;  %v511_v0 = vld [vmem:[#allocation3 + $0xd08] sm:$0xff] }
  0xf3   :  { %3330 = vmatprep.subr.bf16.mxu0 %v8094_v6  ;;  %3494 = vmatprep.subr.bf16.mxu1 %v8096_v7  ;;  %v462_v6 = vld [vmem:[#allocation3 + $0xb80] sm:$0xff]  ;;  %v515_v1 = vld [vmem:[#allocation3 + $0xd28] sm:$0xff] }
  0xf4   :  { %v466_v7 = vld [vmem:[#allocation3 + $0xba0] sm:$0xff] }
  0xf5   :  { %v8157_v20 = vcombine.low %v462_v6, %v466_v7  ;;  %v514_v63 = vld [vmem:[#allocation3 + $0xd20] sm:$0xff] }
  0xf6   :  { %3331 = vmatpush1.bf16.msra.mxu0 %v8093_v13  ;;  %3495 = vmatpush1.bf16.msra.mxu1 %v8095_v14  ;;  %v8158_v13 = vcombine.high %v462_v6, %v466_v7  ;;  %v8160_v14 = vcombine.high %v463_v8, %v467_v9  ;;  %v518_v6 = vld [vmem:[#allocation3 + $0xd40] sm:$0xff]  ;;  %v519_v8 = vld [vmem:[#allocation3 + $0xd48] sm:$0xff] }
  0xf7   :  { %3332 = vmatprep.subr.bf16.mxu0 %v8102_v16  ;;  %3496 = vmatprep.subr.bf16.mxu1 %v8104_v17  ;;  %v470_v16 = vld [vmem:[#allocation3 + $0xbc0] sm:$0xff]  ;;  %v523_v9 = vld [vmem:[#allocation3 + $0xd68] sm:$0xff] }
  0xf8   :  { %v474_v17 = vld [vmem:[#allocation3 + $0xbe0] sm:$0xff] }
  0xf9   :  { %v8165_v30 = vcombine.low %v470_v16, %v474_v17  ;;  %v522_v7 = vld [vmem:[#allocation3 + $0xd60] sm:$0xff] }
  0xfa   :  { %3333 = vmatpush1.bf16.msra.mxu0 %v8101_v23  ;;  %3497 = vmatpush1.bf16.msra.mxu1 %v8103_v24  ;;  %v8166_v23 = vcombine.high %v470_v16, %v474_v17  ;;  %v8168_v24 = vcombine.high %v471_v18, %v475_v19  ;;  %v526_v16 = vld [vmem:[#allocation3 + $0xd80] sm:$0xff]  ;;  %v527_v18 = vld [vmem:[#allocation3 + $0xd88] sm:$0xff] }
  0xfb   :  { %3334 = vmatprep.subr.bf16.mxu0 %v8110_v26  ;;  %3498 = vmatprep.subr.bf16.mxu1 %v8112_v27  ;;  %v478_v26 = vld [vmem:[#allocation3 + $0xc00] sm:$0xff]  ;;  %v531_v19 = vld [vmem:[#allocation3 + $0xda8] sm:$0xff] }
  0xfc   :  { %v482_v27 = vld [vmem:[#allocation3 + $0xc20] sm:$0xff] }
  0xfd   :  { %v530_v17 = vld [vmem:[#allocation3 + $0xda0] sm:$0xff] }
  0xfe   :  { %3335 = vmatpush1.bf16.msra.mxu0 %v8109_v32  ;;  %3499 = vmatpush1.bf16.msra.mxu1 %v8111_v33  ;;  %v8174_v32 = vcombine.high %v478_v26, %v482_v27  ;;  %v8176_v33 = vcombine.high %v479_v28, %v483_v29 }
  0xff   :  { %3336 = vmatprep.subr.bf16.mxu0 %v8118_v34  ;;  %3500 = vmatprep.subr.bf16.mxu1 %v8120_v35  ;;  %v486_v34 = vld [vmem:[#allocation3 + $0xc40] sm:$0xff] }
 0x100   :  { %v490_v35 = vld [vmem:[#allocation3 + $0xc60] sm:$0xff] }
 0x102   :  { %3337 = vmatpush1.bf16.msra.mxu0 %v8117_v40  ;;  %3501 = vmatpush1.bf16.msra.mxu1 %v8119_v41  ;;  %v8173_v40 = vcombine.low %v478_v26, %v482_v27  ;;  %v8175_v41 = vcombine.low %v479_v28, %v483_v29  ;;  %v534_v26 = vld [vmem:[#allocation3 + $0xdc0] sm:$0xff]  ;;  %v535_v28 = vld [vmem:[#allocation3 + $0xdc8] sm:$0xff] }
 0x103   :  { %3338 = vmatprep.subr.bf16.mxu0 %v8126_v42  ;;  %3502 = vmatprep.subr.bf16.mxu1 %v8128_v43  ;;  %v8182_v42 = vcombine.high %v486_v34, %v490_v35  ;;  %v8184_v43 = vcombine.high %v487_v37, %v491_v38  ;;  %v538_v27 = vld [vmem:[#allocation3 + $0xde0] sm:$0xff]  ;;  %v539_v29 = vld [vmem:[#allocation3 + $0xde8] sm:$0xff] }
 0x106   :  { %3339 = vmatpush1.bf16.msra.mxu0 %v8125_v48  ;;  %3503 = vmatpush1.bf16.msra.mxu1 %v8127_v49  ;;  %v8181_v48 = vcombine.low %v486_v34, %v490_v35  ;;  %v8183_v49 = vcombine.low %v487_v37, %v491_v38  ;;  %v542_v34 = vld [vmem:[#allocation3 + $0xe00] sm:$0xff]  ;;  %v543_v37 = vld [vmem:[#allocation3 + $0xe08] sm:$0xff] }
 0x107   :  { %3340 = vmatprep.subr.bf16.mxu0 %v8134_v50  ;;  %3504 = vmatprep.subr.bf16.mxu1 %v8136_v51  ;;  %v8190_v50 = vcombine.high %v494_v44, %v498_v45  ;;  %v8192_v51 = vcombine.high %v495_v46, %v499_v47  ;;  %v546_v35 = vld [vmem:[#allocation3 + $0xe20] sm:$0xff]  ;;  %v547_v38 = vld [vmem:[#allocation3 + $0xe28] sm:$0xff] }
 0x10a   :  { %3341 = vmatpush1.bf16.msra.mxu0 %v8133_v58  ;;  %3505 = vmatpush1.bf16.msra.mxu1 %v8135_v59  ;;  %v8189_v58 = vcombine.low %v494_v44, %v498_v45  ;;  %v8191_v59 = vcombine.low %v495_v46, %v499_v47  ;;  %v550_v44 = vld [vmem:[#allocation3 + $0xe40] sm:$0xff]  ;;  %v551_v46 = vld [vmem:[#allocation3 + $0xe48] sm:$0xff] }
 0x10b   :  { %3342 = vmatprep.subr.bf16.mxu0 %v8142_v60  ;;  %3506 = vmatprep.subr.bf16.mxu1 %v8144_v61  ;;  %v8198_v60 = vcombine.high %v502_v52, %v506_v54  ;;  %v8200_v61 = vcombine.high %v503_v55, %v507_v56  ;;  %v554_v45 = vld [vmem:[#allocation3 + $0xe60] sm:$0xff]  ;;  %v555_v47 = vld [vmem:[#allocation3 + $0xe68] sm:$0xff] }
 0x10e   :  { %3343 = vmatpush1.bf16.msra.mxu0 %v8141_v2  ;;  %3507 = vmatpush1.bf16.msra.mxu1 %v8143_v3  ;;  %v8197_v2 = vcombine.low %v502_v52, %v506_v54  ;;  %v8199_v3 = vcombine.low %v503_v55, %v507_v56  ;;  %v558_v52 = vld [vmem:[#allocation3 + $0xe80] sm:$0xff]  ;;  %v559_v55 = vld [vmem:[#allocation3 + $0xe88] sm:$0xff] }
 0x10f   :  { %3344 = vmatprep.subr.bf16.mxu0 %v8150_v4  ;;  %3508 = vmatprep.subr.bf16.mxu1 %v8152_v5  ;;  %v8206_v4 = vcombine.high %v510_v62, %v514_v63  ;;  %v8208_v5 = vcombine.high %v511_v0, %v515_v1  ;;  %v562_v54 = vld [vmem:[#allocation3 + $0xea0] sm:$0xff]  ;;  %v563_v56 = vld [vmem:[#allocation3 + $0xea8] sm:$0xff] }
 0x112   :  { %3345 = vmatpush1.bf16.msra.mxu0 %v8149_v10  ;;  %3509 = vmatpush1.bf16.msra.mxu1 %v8151_v11  ;;  %v8205_v10 = vcombine.low %v510_v62, %v514_v63  ;;  %v8207_v11 = vcombine.low %v511_v0, %v515_v1  ;;  %v566_v62 = vld [vmem:[#allocation3 + $0xec0] sm:$0xff]  ;;  %v567_v0 = vld [vmem:[#allocation3 + $0xec8] sm:$0xff] }
 0x113   :  { %3346 = vmatprep.subr.bf16.mxu0 %v8158_v13  ;;  %3510 = vmatprep.subr.bf16.mxu1 %v8160_v14  ;;  %v8214_v13 = vcombine.high %v518_v6, %v522_v7  ;;  %v8216_v14 = vcombine.high %v519_v8, %v523_v9  ;;  %v570_v63 = vld [vmem:[#allocation3 + $0xee0] sm:$0xff]  ;;  %v571_v1 = vld [vmem:[#allocation3 + $0xee8] sm:$0xff] }
 0x116   :  { %3347 = vmatpush1.bf16.msra.mxu0 %v8157_v20  ;;  %3511 = vmatpush1.bf16.msra.mxu1 %v8159_v21  ;;  %v8213_v20 = vcombine.low %v518_v6, %v522_v7  ;;  %v8215_v21 = vcombine.low %v519_v8, %v523_v9  ;;  %v574_v6 = vld [vmem:[#allocation3 + $0xf00] sm:$0xff]  ;;  %v575_v8 = vld [vmem:[#allocation3 + $0xf08] sm:$0xff] }
 0x117   :  { %3348 = vmatprep.subr.bf16.mxu0 %v8166_v23  ;;  %3512 = vmatprep.subr.bf16.mxu1 %v8168_v24  ;;  %v8222_v23 = vcombine.high %v526_v16, %v530_v17  ;;  %v8224_v24 = vcombine.high %v527_v18, %v531_v19  ;;  %v578_v7 = vld [vmem:[#allocation3 + $0xf20] sm:$0xff]  ;;  %v579_v9 = vld [vmem:[#allocation3 + $0xf28] sm:$0xff] }
 0x11a   :  { %3349 = vmatpush1.bf16.msra.mxu0 %v8165_v30  ;;  %3513 = vmatpush1.bf16.msra.mxu1 %v8167_v31  ;;  %v8221_v30 = vcombine.low %v526_v16, %v530_v17  ;;  %v8223_v31 = vcombine.low %v527_v18, %v531_v19  ;;  %v582_v16 = vld [vmem:[#allocation3 + $0xf40] sm:$0xff]  ;;  %v583_v18 = vld [vmem:[#allocation3 + $0xf48] sm:$0xff] }
 0x11b   :  { %3359 = vmatprep.subr.bf16.mxu0 %v8174_v32  ;;  %3523 = vmatprep.subr.bf16.mxu1 %v8176_v33  ;;  %v8230_v32 = vcombine.high %v534_v26, %v538_v27  ;;  %v8232_v33 = vcombine.high %v535_v28, %v539_v29  ;;  %v586_v17 = vld [vmem:[#allocation3 + $0xf60] sm:$0xff]  ;;  %v587_v19 = vld [vmem:[#allocation3 + $0xf68] sm:$0xff] }
 0x11d   :  { %3351 = vmatmul.mubr.bf16.vlgmr.msra.gmra.mrb[0].mxu0 %v9241_v36  ;;  %3515 = vmatmul.mubr.bf16.vlgmr.msra.gmra.mrb[0].mxu1 %v9241_v36 }
 0x11e   :  { %3360 = vmatpush1.bf16.msra.mxu0 %v8173_v40  ;;  %3524 = vmatpush1.bf16.msra.mxu1 %v8175_v41  ;;  %v8229_v40 = vcombine.low %v534_v26, %v538_v27  ;;  %v8231_v41 = vcombine.low %v535_v28, %v539_v29  ;;  %v590_v26 = vld [vmem:[#allocation3 + $0xf80] sm:$0xff]  ;;  %v591_v28 = vld [vmem:[#allocation3 + $0xf88] sm:$0xff] }
 0x11f   :  { %3361 = vmatprep.subr.bf16.mxu0 %v8182_v42  ;;  %3525 = vmatprep.subr.bf16.mxu1 %v8184_v43  ;;  %v8238_v42 = vcombine.high %v542_v34, %v546_v35  ;;  %v8240_v43 = vcombine.high %v543_v37, %v547_v38  ;;  %v594_v27 = vld [vmem:[#allocation3 + $0xfa0] sm:$0xff]  ;;  %v595_v29 = vld [vmem:[#allocation3 + $0xfa8] sm:$0xff] }
 0x120   :  { %3391 = vmatprep.mubr.bf16.mxu0 %v9250_v25  ;;  %3555 = vmatprep.mubr.bf16.mxu1 %v9250_v25 }
 0x122   :  { %3362 = vmatpush1.bf16.msra.mxu0 %v8181_v48  ;;  %3526 = vmatpush1.bf16.msra.mxu1 %v8183_v49  ;;  %v8237_v48 = vcombine.low %v542_v34, %v546_v35  ;;  %v8239_v49 = vcombine.low %v543_v37, %v547_v38  ;;  %v598_v34 = vld [vmem:[#allocation3 + $0xfc0] sm:$0xff]  ;;  %v599_v37 = vld [vmem:[#allocation3 + $0xfc8] sm:$0xff] }
 0x123   :  { %3363 = vmatprep.subr.bf16.mxu0 %v8190_v50  ;;  %3527 = vmatprep.subr.bf16.mxu1 %v8192_v51  ;;  %v8246_v50 = vcombine.high %v550_v44, %v554_v45  ;;  %v8248_v51 = vcombine.high %v551_v46, %v555_v47  ;;  %v602_v35 = vld [vmem:[#allocation3 + $0xfe0] sm:$0xff]  ;;  %v603_v38 = vld [vmem:[#allocation3 + $0xfe8] sm:$0xff] }
 0x126   :  { %3364 = vmatpush1.bf16.msra.mxu0 %v8189_v58  ;;  %3528 = vmatpush1.bf16.msra.mxu1 %v8191_v59  ;;  %v8245_v58 = vcombine.low %v550_v44, %v554_v45  ;;  %v8247_v59 = vcombine.low %v551_v46, %v555_v47  ;;  %v96_v44 = vld [vmem:[#allocation3 + $0x10] sm:$0xff]  ;;  %v97_v46 = vld [vmem:[#allocation3 + $0x18] sm:$0xff] }
 0x127   :  { %3365 = vmatprep.subr.bf16.mxu0 %v8198_v60  ;;  %3529 = vmatprep.subr.bf16.mxu1 %v8200_v61  ;;  %v8254_v60 = vcombine.high %v558_v52, %v562_v54  ;;  %v8256_v61 = vcombine.high %v559_v55, %v563_v56  ;;  %v100_v45 = vld [vmem:[#allocation3 + $0x30] sm:$0xff]  ;;  %v101_v47 = vld [vmem:[#allocation3 + $0x38] sm:$0xff] }
 0x12a   :  { %3366 = vmatpush1.bf16.msra.mxu0 %v8197_v2  ;;  %3530 = vmatpush1.bf16.msra.mxu1 %v8199_v3  ;;  %v8253_v2 = vcombine.low %v558_v52, %v562_v54  ;;  %v8255_v3 = vcombine.low %v559_v55, %v563_v56  ;;  %v104_v52 = vld [vmem:[#allocation3 + $0x50] sm:$0xff]  ;;  %v9258_v55 = vcombine.low %v9246_v39, %v9246_v39  ;;  %v105_v56 = vld [vmem:[#allocation3 + $0x58] sm:$0xff] }
 0x12b   :  { %3367 = vmatprep.subr.bf16.mxu0 %v8206_v4  ;;  %3531 = vmatprep.subr.bf16.mxu1 %v8208_v5  ;;  %v8262_v4 = vcombine.high %v566_v62, %v570_v63  ;;  %v8264_v5 = vcombine.high %v567_v0, %v571_v1  ;;  %v108_v54 = vld [vmem:[#allocation3 + $0x70] sm:$0xff] }
 0x12c   :  { %v7801_v39 = vcombine.low %v104_v52, %v108_v54 }
 0x12e   :  { %3368 = vmatpush1.bf16.msra.mxu0 %v8205_v10  ;;  %3532 = vmatpush1.bf16.msra.mxu1 %v8207_v11  ;;  %v8261_v10 = vcombine.low %v566_v62, %v570_v63  ;;  %v8263_v11 = vcombine.low %v567_v0, %v571_v1  ;;  %v112_v63 = vld [vmem:[#allocation3 + $0x90] sm:$0xff]  ;;  %v113_v1 = vld [vmem:[#allocation3 + $0x98] sm:$0xff] }
 0x12f   :  { %3369 = vmatprep.subr.bf16.mxu0 %v8214_v13  ;;  %3533 = vmatprep.subr.bf16.mxu1 %v8216_v14  ;;  %v8270_v13 = vcombine.high %v574_v6, %v578_v7  ;;  %v8272_v14 = vcombine.high %v575_v8, %v579_v9  ;;  %v116_v0 = vld [vmem:[#allocation3 + $0xb0] sm:$0xff] }
 0x132   :  { %3370 = vmatpush1.bf16.msra.mxu0 %v8213_v20  ;;  %3534 = vmatpush1.bf16.msra.mxu1 %v8215_v21  ;;  %v8269_v20 = vcombine.low %v574_v6, %v578_v7  ;;  %v8271_v21 = vcombine.low %v575_v8, %v579_v9  ;;  %v120_v6 = vld [vmem:[#allocation3 + $0xd0] sm:$0xff]  ;;  %v121_v8 = vld [vmem:[#allocation3 + $0xd8] sm:$0xff] }
 0x133   :  { %3371 = vmatprep.subr.bf16.mxu0 %v8222_v23  ;;  %3535 = vmatprep.subr.bf16.mxu1 %v8224_v24  ;;  %v8278_v23 = vcombine.high %v582_v16, %v586_v17  ;;  %v8280_v24 = vcombine.high %v583_v18, %v587_v19  ;;  %v124_v7 = vld [vmem:[#allocation3 + $0xf0] sm:$0xff]  ;;  %v125_v9 = vld [vmem:[#allocation3 + $0xf8] sm:$0xff] }
 0x136   :  { %3372 = vmatpush1.bf16.msra.mxu0 %v8221_v30  ;;  %3536 = vmatpush1.bf16.msra.mxu1 %v8223_v31  ;;  %v8277_v30 = vcombine.low %v582_v16, %v586_v17  ;;  %v8279_v31 = vcombine.low %v583_v18, %v587_v19  ;;  %v128_v16 = vld [vmem:[#allocation3 + $0x110] sm:$0xff]  ;;  %v129_v18 = vld [vmem:[#allocation3 + $0x118] sm:$0xff] }
 0x137   :  { %3373 = vmatprep.subr.bf16.mxu0 %v8230_v32  ;;  %3537 = vmatprep.subr.bf16.mxu1 %v8232_v33  ;;  %v8286_v32 = vcombine.high %v590_v26, %v594_v27  ;;  %v8288_v33 = vcombine.high %v591_v28, %v595_v29  ;;  %v132_v17 = vld [vmem:[#allocation3 + $0x130] sm:$0xff]  ;;  %v133_v19 = vld [vmem:[#allocation3 + $0x138] sm:$0xff] }
 0x13a   :  { %3374 = vmatpush1.bf16.msra.mxu0 %v8229_v40  ;;  %3538 = vmatpush1.bf16.msra.mxu1 %v8231_v41  ;;  %v8285_v40 = vcombine.low %v590_v26, %v594_v27  ;;  %v8287_v41 = vcombine.low %v591_v28, %v595_v29  ;;  %v140_v26 = vld [vmem:[#allocation3 + $0x170] sm:$0xff]  ;;  %v137_v27 = vld [vmem:[#allocation3 + $0x158] sm:$0xff]  ;;  %v7825_v29 = vcombine.low %v128_v16, %v132_v17 }
 0x13b   :  { %3375 = vmatprep.subr.bf16.mxu0 %v8238_v42  ;;  %3539 = vmatprep.subr.bf16.mxu1 %v8240_v43  ;;  %v8294_v42 = vcombine.high %v598_v34, %v602_v35  ;;  %v8296_v43 = vcombine.high %v599_v37, %v603_v38  ;;  %v141_v28 = vld [vmem:[#allocation3 + $0x178] sm:$0xff] }
 0x13e   :  { %3376 = vmatpush1.bf16.msra.mxu0 %v8237_v48  ;;  %3540 = vmatpush1.bf16.msra.mxu1 %v8239_v49  ;;  %v8293_v48 = vcombine.low %v598_v34, %v602_v35  ;;  %v8295_v49 = vcombine.low %v599_v37, %v603_v38  ;;  %v148_v34 = vld [vmem:[#allocation3 + $0x1b0] sm:$0xff]  ;;  %v145_v35 = vld [vmem:[#allocation3 + $0x198] sm:$0xff] }
 0x13f   :  { %3377 = vmatprep.subr.bf16.mxu0 %v8246_v50  ;;  %3541 = vmatprep.subr.bf16.mxu1 %v8248_v51  ;;  %v7794_v50 = vcombine.high %v96_v44, %v100_v45  ;;  %v7796_v51 = vcombine.high %v97_v46, %v101_v47  ;;  %v149_v37 = vld [vmem:[#allocation3 + $0x1b8] sm:$0xff] }
 0x142   :  { %3378 = vmatpush1.bf16.msra.mxu0 %v8245_v58  ;;  %3542 = vmatpush1.bf16.msra.mxu1 %v8247_v59  ;;  %v109_v58 = vld [vmem:[#allocation3 + $0x78] sm:$0xff]  ;;  %v7793_v59 = vcombine.low %v96_v44, %v100_v45  ;;  %v156_v44 = vld [vmem:[#allocation3 + $0x1f0] sm:$0xff] }
 0x143   :  { %3379 = vmatprep.subr.bf16.mxu0 %v8254_v60  ;;  %3543 = vmatprep.subr.bf16.mxu1 %v8256_v61  ;;  %v7795_v60 = vcombine.low %v97_v46, %v101_v47  ;;  %v7802_v61 = vcombine.high %v104_v52, %v108_v54  ;;  %v7804_v62 = vcombine.high %v105_v56, %v109_v58  ;;  %v153_v45 = vld [vmem:[#allocation3 + $0x1d8] sm:$0xff]  ;;  %v164_v52 = vld [vmem:[#allocation3 + $0x230] sm:$0xff] }
 0x144   :  { %v157_v46 = vld [vmem:[#allocation3 + $0x1f8] sm:$0xff] }
 0x145   :  { %v161_v54 = vld [vmem:[#allocation3 + $0x218] sm:$0xff] }
 0x146   :  { %3380 = vmatpush1.bf16.msra.mxu0 %v8253_v2  ;;  %3544 = vmatpush1.bf16.msra.mxu1 %v8255_v3  ;;  %v117_v2 = vld [vmem:[#allocation3 + $0xb8] sm:$0xff]  ;;  %v7803_v3 = vcombine.low %v105_v56, %v109_v58 }
 0x147   :  { %3381 = vmatprep.subr.bf16.mxu0 %v8262_v4  ;;  %3545 = vmatprep.subr.bf16.mxu1 %v8264_v5  ;;  %v7810_v4 = vcombine.high %v112_v63, %v116_v0  ;;  %v7812_v5 = vcombine.high %v113_v1, %v117_v2  ;;  %v165_v56 = vld [vmem:[#allocation3 + $0x238] sm:$0xff] }
 0x14a   :  { %3382 = vmatpush1.bf16.msra.mxu0 %v8261_v10  ;;  %3546 = vmatpush1.bf16.msra.mxu1 %v8263_v11  ;;  %v7809_v10 = vcombine.low %v112_v63, %v116_v0  ;;  %v7811_v11 = vcombine.low %v113_v1, %v117_v2  ;;  %v172_v63 = vld [vmem:[#allocation3 + $0x270] sm:$0xff]  ;;  %v169_v0 = vld [vmem:[#allocation3 + $0x258] sm:$0xff] }
 0x14b   :  { %3383 = vmatprep.subr.bf16.mxu0 %v8270_v13  ;;  %3547 = vmatprep.subr.bf16.mxu1 %v8272_v14  ;;  %v7818_v13 = vcombine.high %v120_v6, %v124_v7  ;;  %v7820_v14 = vcombine.high %v121_v8, %v125_v9  ;;  %v173_v1 = vld [vmem:[#allocation3 + $0x278] sm:$0xff] }
 0x14e   :  { %3384 = vmatpush1.bf16.msra.mxu0 %v8269_v20  ;;  %3548 = vmatpush1.bf16.msra.mxu1 %v8271_v21  ;;  %v7817_v20 = vcombine.low %v120_v6, %v124_v7  ;;  %v7819_v21 = vcombine.low %v121_v8, %v125_v9  ;;  %v180_v6 = vld [vmem:[#allocation3 + $0x2b0] sm:$0xff]  ;;  %v177_v7 = vld [vmem:[#allocation3 + $0x298] sm:$0xff] }
 0x14f   :  { %3385 = vmatprep.subr.bf16.mxu0 %v8278_v23  ;;  %3549 = vmatprep.subr.bf16.mxu1 %v8280_v24  ;;  %v7826_v23 = vcombine.high %v128_v16, %v132_v17  ;;  %v136_v24 = vld [vmem:[#allocation3 + $0x150] sm:$0xff]  ;;  %v181_v8 = vld [vmem:[#allocation3 + $0x2b8] sm:$0xff] }
 0x150   :  { %v7833_v38 = vcombine.low %v136_v24, %v140_v26  ;;  %v188_v16 = vld [vmem:[#allocation3 + $0x2f0] sm:$0xff]  ;;  %v185_v17 = vld [vmem:[#allocation3 + $0x2d8] sm:$0xff] }
 0x152   :  { %3386 = vmatpush1.bf16.msra.mxu0 %v8277_v30  ;;  %3550 = vmatpush1.bf16.msra.mxu1 %v8279_v31  ;;  %v7827_v30 = vcombine.low %v129_v18, %v133_v19  ;;  %v7834_v31 = vcombine.high %v136_v24, %v140_v26  ;;  %v196_v24 = vld [vmem:[#allocation3 + $0x330] sm:$0xff]  ;;  %v193_v26 = vld [vmem:[#allocation3 + $0x318] sm:$0xff] }
 0x153   :  { %3387 = vmatprep.subr.bf16.mxu0 %v8286_v32  ;;  %3551 = vmatprep.subr.bf16.mxu1 %v8288_v33  ;;  %v7836_v32 = vcombine.high %v137_v27, %v141_v28  ;;  %v144_v33 = vld [vmem:[#allocation3 + $0x190] sm:$0xff] }
 0x154   :  { %v7841_v47 = vcombine.low %v144_v33, %v148_v34 }
 0x156   :  { %3388 = vmatpush1.bf16.msra.mxu0 %v8285_v40  ;;  %3552 = vmatpush1.bf16.msra.mxu1 %v8287_v41  ;;  %v7835_v40 = vcombine.low %v137_v27, %v141_v28  ;;  %v7842_v41 = vcombine.high %v144_v33, %v148_v34  ;;  %v197_v27 = vld [vmem:[#allocation3 + $0x338] sm:$0xff]  ;;  %v204_v33 = vld [vmem:[#allocation3 + $0x370] sm:$0xff] }
 0x157   :  { %3389 = vmatprep.subr.bf16.mxu0 %v8294_v42  ;;  %3553 = vmatprep.subr.bf16.mxu1 %v8296_v43  ;;  %v7844_v42 = vcombine.high %v145_v35, %v149_v37  ;;  %v152_v43 = vld [vmem:[#allocation3 + $0x1d0] sm:$0xff]  ;;  %v201_v34 = vld [vmem:[#allocation3 + $0x358] sm:$0xff] }
 0x158   :  { %v7849_v58 = vcombine.low %v152_v43, %v156_v44 }
 0x15a   :  { %3390 = vmatpush1.bf16.msra.mxu0 %v8293_v48  ;;  %3554 = vmatpush1.bf16.msra.mxu1 %v8295_v49  ;;  %v7843_v48 = vcombine.low %v145_v35, %v149_v37  ;;  %v7850_v49 = vcombine.high %v152_v43, %v156_v44  ;;  %v205_v35 = vld [vmem:[#allocation3 + $0x378] sm:$0xff]  ;;  %v212_v43 = vld [vmem:[#allocation3 + $0x3b0] sm:$0xff] }
 0x15b   :  { %3564 = vmatprep.subr.bf16.mxu0 %v7794_v50  ;;  %3728 = vmatprep.subr.bf16.mxu1 %v7796_v51  ;;  %v7852_v50 = vcombine.high %v153_v45, %v157_v46  ;;  %v160_v51 = vld [vmem:[#allocation3 + $0x210] sm:$0xff]  ;;  %v209_v44 = vld [vmem:[#allocation3 + $0x398] sm:$0xff] }
 0x15c   :  { %v7857_v2 = vcombine.low %v160_v51, %v164_v52 }
 0x15d   :  { %3392 = vmatmul.mubr.bf16.vlgmr.msra.gmra.mrb[0].mxu0 %v9258_v55  ;;  %3556 = vmatmul.mubr.bf16.vlgmr.msra.gmra.mrb[0].mxu1 %v9258_v55 }
 0x15e   :  { %3565 = vmatpush1.bf16.msra.mxu0 %v7793_v59  ;;  %3729 = vmatpush1.bf16.msra.mxu1 %v7795_v60  ;;  %v7851_v59 = vcombine.low %v153_v45, %v157_v46  ;;  %v7858_v60 = vcombine.high %v160_v51, %v164_v52  ;;  %v213_v45 = vld [vmem:[#allocation3 + $0x3b8] sm:$0xff]  ;;  %v220_v51 = vld [vmem:[#allocation3 + $0x3f0] sm:$0xff] }
 0x15f   :  { %3566 = vmatprep.subr.bf16.mxu0 %v7802_v61  ;;  %3730 = vmatprep.subr.bf16.mxu1 %v7804_v62  ;;  %v7860_v61 = vcombine.high %v161_v54, %v165_v56  ;;  %v168_v62 = vld [vmem:[#allocation3 + $0x250] sm:$0xff]  ;;  %v217_v52 = vld [vmem:[#allocation3 + $0x3d8] sm:$0xff] }
 0x160   :  { %3596 = vmatprep.mubr.bf16.mxu0 %v9201_v57  ;;  %3760 = vmatprep.mubr.bf16.mxu1 %v9201_v57  ;;  %v7828_v57 = vcombine.high %v129_v18, %v133_v19  ;;  %v7865_v9 = vcombine.low %v168_v62, %v172_v63  ;;  %v189_v18 = vld [vmem:[#allocation3 + $0x2f8] sm:$0xff] }
 0x162   :  { %3567 = vmatpush1.bf16.msra.mxu0 %v7801_v39  ;;  %3731 = vmatpush1.bf16.msra.mxu1 %v7803_v3  ;;  %v7859_v39 = vcombine.low %v161_v54, %v165_v56  ;;  %v7866_v3 = vcombine.high %v168_v62, %v172_v63  ;;  %v221_v54 = vld [vmem:[#allocation3 + $0x3f8] sm:$0xff]  ;;  %v228_v62 = vld [vmem:[#allocation3 + $0x430] sm:$0xff] }
 0x163   :  { %3568 = vmatprep.subr.bf16.mxu0 %v7810_v4  ;;  %3732 = vmatprep.subr.bf16.mxu1 %v7812_v5  ;;  %v7868_v4 = vcombine.high %v169_v0, %v173_v1  ;;  %v176_v5 = vld [vmem:[#allocation3 + $0x290] sm:$0xff]  ;;  %v225_v63 = vld [vmem:[#allocation3 + $0x418] sm:$0xff] }
 0x164   :  { %v7873_v19 = vcombine.low %v176_v5, %v180_v6 }
 0x166   :  { %3569 = vmatpush1.bf16.msra.mxu0 %v7809_v10  ;;  %3733 = vmatpush1.bf16.msra.mxu1 %v7811_v11  ;;  %v7867_v10 = vcombine.low %v169_v0, %v173_v1  ;;  %v7874_v11 = vcombine.high %v176_v5, %v180_v6  ;;  %v229_v0 = vld [vmem:[#allocation3 + $0x438] sm:$0xff]  ;;  %v236_v5 = vld [vmem:[#allocation3 + $0x470] sm:$0xff] }
 0x167   :  { %3570 = vmatprep.subr.bf16.mxu0 %v7818_v13  ;;  %3734 = vmatprep.subr.bf16.mxu1 %v7820_v14  ;;  %v7876_v13 = vcombine.high %v177_v7, %v181_v8  ;;  %v184_v14 = vld [vmem:[#allocation3 + $0x2d0] sm:$0xff]  ;;  %v233_v6 = vld [vmem:[#allocation3 + $0x458] sm:$0xff] }
 0x168   :  { %v7881_v28 = vcombine.low %v184_v14, %v188_v16 }
 0x16a   :  { %3571 = vmatpush1.bf16.msra.mxu0 %v7817_v20  ;;  %3735 = vmatpush1.bf16.msra.mxu1 %v7819_v21  ;;  %v7875_v20 = vcombine.low %v177_v7, %v181_v8  ;;  %v7882_v21 = vcombine.high %v184_v14, %v188_v16  ;;  %v237_v7 = vld [vmem:[#allocation3 + $0x478] sm:$0xff]  ;;  %v244_v14 = vld [vmem:[#allocation3 + $0x4b0] sm:$0xff] }
 0x16b   :  { %3572 = vmatprep.subr.bf16.mxu0 %v7826_v23  ;;  %3736 = vmatprep.subr.bf16.mxu1 %v7828_v57  ;;  %v7884_v23 = vcombine.high %v185_v17, %v189_v18  ;;  %v192_v57 = vld [vmem:[#allocation3 + $0x310] sm:$0xff]  ;;  %v241_v16 = vld [vmem:[#allocation3 + $0x498] sm:$0xff] }
 0x16c   :  { %v7889_v37 = vcombine.low %v192_v57, %v196_v24 }
 0x16e   :  { %3573 = vmatpush1.bf16.msra.mxu0 %v7825_v29  ;;  %3737 = vmatpush1.bf16.msra.mxu1 %v7827_v30  ;;  %v7883_v29 = vcombine.low %v185_v17, %v189_v18  ;;  %v7890_v30 = vcombine.high %v192_v57, %v196_v24  ;;  %v245_v17 = vld [vmem:[#allocation3 + $0x4b8] sm:$0xff]  ;;  %v252_v57 = vld [vmem:[#allocation3 + $0x4f0] sm:$0xff] }
 0x16f   :  { %3574 = vmatprep.subr.bf16.mxu0 %v7834_v31  ;;  %3738 = vmatprep.subr.bf16.mxu1 %v7836_v32  ;;  %v7892_v31 = vcombine.high %v193_v26, %v197_v27  ;;  %v200_v32 = vld [vmem:[#allocation3 + $0x350] sm:$0xff]  ;;  %v249_v24 = vld [vmem:[#allocation3 + $0x4d8] sm:$0xff] }
 0x170   :  { %v7897_v46 = vcombine.low %v200_v32, %v204_v33 }
 0x172   :  { %3575 = vmatpush1.bf16.msra.mxu0 %v7833_v38  ;;  %3739 = vmatpush1.bf16.msra.mxu1 %v7835_v40  ;;  %v7891_v38 = vcombine.low %v193_v26, %v197_v27  ;;  %v7898_v40 = vcombine.high %v200_v32, %v204_v33  ;;  %v253_v26 = vld [vmem:[#allocation3 + $0x4f8] sm:$0xff] }
 0x173   :  { %3576 = vmatprep.subr.bf16.mxu0 %v7842_v41  ;;  %3740 = vmatprep.subr.bf16.mxu1 %v7844_v42  ;;  %v7900_v41 = vcombine.high %v201_v34, %v205_v35  ;;  %v208_v42 = vld [vmem:[#allocation3 + $0x390] sm:$0xff]  ;;  %v257_v32 = vld [vmem:[#allocation3 + $0x518] sm:$0xff] }
 0x174   :  { %v7905_v56 = vcombine.low %v208_v42, %v212_v43  ;;  %v261_v33 = vld [vmem:[#allocation3 + $0x538] sm:$0xff] }
 0x176   :  { %3577 = vmatpush1.bf16.msra.mxu0 %v7841_v47  ;;  %3741 = vmatpush1.bf16.msra.mxu1 %v7843_v48  ;;  %v7899_v47 = vcombine.low %v201_v34, %v205_v35  ;;  %v7906_v48 = vcombine.high %v208_v42, %v212_v43  ;;  %v7947_v35 = vcombine.low %v249_v24, %v253_v26  ;;  %v269_v42 = vld [vmem:[#allocation3 + $0x578] sm:$0xff] }
 0x177   :  { %3578 = vmatprep.subr.bf16.mxu0 %v7850_v49  ;;  %3742 = vmatprep.subr.bf16.mxu1 %v7852_v50  ;;  %v7908_v49 = vcombine.high %v209_v44, %v213_v45  ;;  %v216_v50 = vld [vmem:[#allocation3 + $0x3d0] sm:$0xff] }
 0x178   :  { %v7913_v1 = vcombine.low %v216_v50, %v220_v51 }
 0x17a   :  { %3579 = vmatpush1.bf16.msra.mxu0 %v7849_v58  ;;  %3743 = vmatpush1.bf16.msra.mxu1 %v7851_v59  ;;  %v7907_v58 = vcombine.low %v209_v44, %v213_v45  ;;  %v7914_v59 = vcombine.high %v216_v50, %v220_v51  ;;  %v7955_v44 = vcombine.low %v257_v32, %v261_v33  ;;  %v277_v50 = vld [vmem:[#allocation3 + $0x5b8] sm:$0xff] }
 0x17b   :  { %3580 = vmatprep.subr.bf16.mxu0 %v7858_v60  ;;  %3744 = vmatprep.subr.bf16.mxu1 %v7860_v61  ;;  %v7916_v60 = vcombine.high %v217_v52, %v221_v54  ;;  %v224_v61 = vld [vmem:[#allocation3 + $0x410] sm:$0xff] }
 0x17c   :  { %v7921_v8 = vcombine.low %v224_v61, %v228_v62 }
 0x17e   :  { %3581 = vmatpush1.bf16.msra.mxu0 %v7857_v2  ;;  %3745 = vmatpush1.bf16.msra.mxu1 %v7859_v39  ;;  %v7915_v2 = vcombine.low %v217_v52, %v221_v54  ;;  %v7922_v39 = vcombine.high %v224_v61, %v228_v62  ;;  %v285_v61 = vld [vmem:[#allocation3 + $0x5f8] sm:$0xff] }
 0x17f   :  { %3582 = vmatprep.subr.bf16.mxu0 %v7866_v3  ;;  %3746 = vmatprep.subr.bf16.mxu1 %v7868_v4  ;;  %v7924_v3 = vcombine.high %v225_v63, %v229_v0  ;;  %v232_v4 = vld [vmem:[#allocation3 + $0x450] sm:$0xff] }
 0x180   :  { %v7929_v18 = vcombine.low %v232_v4, %v236_v5 }
 0x182   :  { %3583 = vmatpush1.bf16.msra.mxu0 %v7865_v9  ;;  %3747 = vmatpush1.bf16.msra.mxu1 %v7867_v10  ;;  %v7923_v9 = vcombine.low %v225_v63, %v229_v0  ;;  %v7930_v10 = vcombine.high %v232_v4, %v236_v5  ;;  %v293_v4 = vld [vmem:[#allocation3 + $0x638] sm:$0xff] }
 0x183   :  { %3584 = vmatprep.subr.bf16.mxu0 %v7874_v11  ;;  %3748 = vmatprep.subr.bf16.mxu1 %v7876_v13  ;;  %v7932_v11 = vcombine.high %v233_v6, %v237_v7  ;;  %v240_v13 = vld [vmem:[#allocation3 + $0x490] sm:$0xff] }
 0x184   :  { %v7937_v27 = vcombine.low %v240_v13, %v244_v14 }
 0x186   :  { %3585 = vmatpush1.bf16.msra.mxu0 %v7873_v19  ;;  %3749 = vmatpush1.bf16.msra.mxu1 %v7875_v20  ;;  %v7931_v19 = vcombine.low %v233_v6, %v237_v7  ;;  %v7938_v20 = vcombine.high %v240_v13, %v244_v14  ;;  %v301_v13 = vld [vmem:[#allocation3 + $0x678] sm:$0xff] }
 0x187   :  { %3586 = vmatprep.subr.bf16.mxu0 %v7882_v21  ;;  %3750 = vmatprep.subr.bf16.mxu1 %v7884_v23  ;;  %v7940_v21 = vcombine.high %v241_v16, %v245_v17  ;;  %v248_v23 = vld [vmem:[#allocation3 + $0x4d0] sm:$0xff] }
 0x188   :  { %v7945_v34 = vcombine.low %v248_v23, %v252_v57 }
 0x18a   :  { %3587 = vmatpush1.bf16.msra.mxu0 %v7881_v28  ;;  %3751 = vmatpush1.bf16.msra.mxu1 %v7883_v29  ;;  %v7946_v28 = vcombine.high %v248_v23, %v252_v57  ;;  %v7948_v29 = vcombine.high %v249_v24, %v253_v26  ;;  %v309_v23 = vld [vmem:[#allocation3 + $0x6b8] sm:$0xff] }
 0x18b   :  { %3588 = vmatprep.subr.bf16.mxu0 %v7890_v30  ;;  %3752 = vmatprep.subr.bf16.mxu1 %v7892_v31  ;;  %v256_v30 = vld [vmem:[#allocation3 + $0x510] sm:$0xff] }
 0x18c   :  { %v260_v31 = vld [vmem:[#allocation3 + $0x530] sm:$0xff] }
 0x18d   :  { %v7953_v43 = vcombine.low %v256_v30, %v260_v31 }
 0x18e   :  { %3589 = vmatpush1.bf16.msra.mxu0 %v7889_v37  ;;  %3753 = vmatpush1.bf16.msra.mxu1 %v7891_v38  ;;  %v7954_v37 = vcombine.high %v256_v30, %v260_v31  ;;  %v264_v38 = vld [vmem:[#allocation3 + $0x550] sm:$0xff]  ;;  %v317_v30 = vld [vmem:[#allocation3 + $0x6f8] sm:$0xff] }
 0x18f   :  { %3590 = vmatprep.subr.bf16.mxu0 %v7898_v40  ;;  %3754 = vmatprep.subr.bf16.mxu1 %v7900_v41  ;;  %v268_v40 = vld [vmem:[#allocation3 + $0x570] sm:$0xff]  ;;  %v265_v41 = vld [vmem:[#allocation3 + $0x558] sm:$0xff] }
 0x190   :  { %v7962_v45 = vcombine.high %v264_v38, %v268_v40  ;;  %v7961_v51 = vcombine.low %v264_v38, %v268_v40  ;;  %v7963_v52 = vcombine.low %v265_v41, %v269_v42  ;;  %v325_v38 = vld [vmem:[#allocation3 + $0x738] sm:$0xff] }
 0x192   :  { %3591 = vmatpush1.bf16.msra.mxu0 %v7897_v46  ;;  %3755 = vmatpush1.bf16.msra.mxu1 %v7899_v47  ;;  %v7964_v46 = vcombine.high %v265_v41, %v269_v42  ;;  %v272_v47 = vld [vmem:[#allocation3 + $0x590] sm:$0xff] }
 0x193   :  { %3592 = vmatprep.subr.bf16.mxu0 %v7906_v48  ;;  %3756 = vmatprep.subr.bf16.mxu1 %v7908_v49  ;;  %v276_v48 = vld [vmem:[#allocation3 + $0x5b0] sm:$0xff]  ;;  %v273_v49 = vld [vmem:[#allocation3 + $0x598] sm:$0xff] }
 0x194   :  { %v7970_v54 = vcombine.high %v272_v47, %v276_v48  ;;  %v7969_v62 = vcombine.low %v272_v47, %v276_v48  ;;  %v7971_v63 = vcombine.low %v273_v49, %v277_v50  ;;  %v333_v47 = vld [vmem:[#allocation3 + $0x778] sm:$0xff] }
 0x196   :  { %3593 = vmatpush1.bf16.msra.mxu0 %v7905_v56  ;;  %3757 = vmatpush1.bf16.msra.mxu1 %v7907_v58  ;;  %v7972_v56 = vcombine.high %v273_v49, %v277_v50  ;;  %v280_v58 = vld [vmem:[#allocation3 + $0x5d0] sm:$0xff] }
 0x197   :  { %3594 = vmatprep.subr.bf16.mxu0 %v7914_v59  ;;  %3758 = vmatprep.subr.bf16.mxu1 %v7916_v60  ;;  %v284_v59 = vld [vmem:[#allocation3 + $0x5f0] sm:$0xff]  ;;  %v281_v60 = vld [vmem:[#allocation3 + $0x5d8] sm:$0xff] }
 0x198   :  { %v7978_v0 = vcombine.high %v280_v58, %v284_v59  ;;  %v7977_v5 = vcombine.low %v280_v58, %v284_v59  ;;  %v7979_v6 = vcombine.low %v281_v60, %v285_v61  ;;  %v341_v58 = vld [vmem:[#allocation3 + $0x7b8] sm:$0xff] }
 0x19a   :  { %3595 = vmatpush1.bf16.msra.mxu0 %v7913_v1  ;;  %3759 = vmatpush1.bf16.msra.mxu1 %v7915_v2  ;;  %v7980_v1 = vcombine.high %v281_v60, %v285_v61  ;;  %v288_v2 = vld [vmem:[#allocation3 + $0x610] sm:$0xff] }
 0x19b   :  { %3605 = vmatprep.subr.bf16.mxu0 %v7922_v39  ;;  %3769 = vmatprep.subr.bf16.mxu1 %v7924_v3  ;;  %v292_v39 = vld [vmem:[#allocation3 + $0x630] sm:$0xff]  ;;  %v289_v3 = vld [vmem:[#allocation3 + $0x618] sm:$0xff] }
 0x19c   :  { %v7986_v7 = vcombine.high %v288_v2, %v292_v39  ;;  %v7985_v14 = vcombine.low %v288_v2, %v292_v39  ;;  %v349_v2 = vld [vmem:[#allocation3 + $0x7f8] sm:$0xff] }
 0x19d   :  { %3597 = vmatmul.mubr.bf16.vlgmr.msra.gmra.mrb[4].mxu0 %v9207_v12  ;;  %3761 = vmatmul.mubr.bf16.vlgmr.msra.gmra.mrb[4].mxu1 %v9207_v12  ;;  %v7939_v12 = vcombine.low %v241_v16, %v245_v17  ;;  %v7987_v16 = vcombine.low %v289_v3, %v293_v4 }
 0x19e   :  { %3606 = vmatpush1.bf16.msra.mxu0 %v7921_v8  ;;  %3770 = vmatpush1.bf16.msra.mxu1 %v7923_v9  ;;  %v7988_v8 = vcombine.high %v289_v3, %v293_v4  ;;  %v296_v9 = vld [vmem:[#allocation3 + $0x650] sm:$0xff] }
 0x19f   :  { %3607 = vmatprep.subr.bf16.mxu0 %v7930_v10  ;;  %3771 = vmatprep.subr.bf16.mxu1 %v7932_v11  ;;  %v300_v10 = vld [vmem:[#allocation3 + $0x670] sm:$0xff]  ;;  %v297_v11 = vld [vmem:[#allocation3 + $0x658] sm:$0xff] }
 0x1a0   :  { %3637 = vmatprep.mubr.bf16.mxu0 %v9216_v53  ;;  %3801 = vmatprep.mubr.bf16.mxu1 %v9216_v53  ;;  %v7956_v53 = vcombine.high %v257_v32, %v261_v33  ;;  %v7994_v17 = vcombine.high %v296_v9, %v300_v10  ;;  %v7993_v57 = vcombine.low %v296_v9, %v300_v10  ;;  %v357_v9 = vld [vmem:[#allocation3 + $0x838] sm:$0xff] }
 0x1a1   :  { %v7995_v24 = vcombine.low %v297_v11, %v301_v13 }
 0x1a2   :  { %3608 = vmatpush1.bf16.msra.mxu0 %v7929_v18  ;;  %3772 = vmatpush1.bf16.msra.mxu1 %v7931_v19  ;;  %v7996_v18 = vcombine.high %v297_v11, %v301_v13  ;;  %v304_v19 = vld [vmem:[#allocation3 + $0x690] sm:$0xff] }
 0x1a3   :  { %3609 = vmatprep.subr.bf16.mxu0 %v7938_v20  ;;  %3773 = vmatprep.subr.bf16.mxu1 %v7940_v21  ;;  %v308_v20 = vld [vmem:[#allocation3 + $0x6b0] sm:$0xff]  ;;  %v305_v21 = vld [vmem:[#allocation3 + $0x698] sm:$0xff] }
 0x1a4   :  { %v8002_v26 = vcombine.high %v304_v19, %v308_v20  ;;  %v8001_v31 = vcombine.low %v304_v19, %v308_v20  ;;  %v8003_v32 = vcombine.low %v305_v21, %v309_v23  ;;  %v365_v19 = vld [vmem:[#allocation3 + $0x878] sm:$0xff] }
 0x1a6   :  { %3610 = vmatpush1.bf16.msra.mxu0 %v7937_v27  ;;  %3774 = vmatpush1.bf16.msra.mxu1 %v7939_v12  ;;  %v8004_v27 = vcombine.high %v305_v21, %v309_v23  ;;  %v312_v12 = vld [vmem:[#allocation3 + $0x6d0] sm:$0xff] }
 0x1a7   :  { %3611 = vmatprep.subr.bf16.mxu0 %v7946_v28  ;;  %3775 = vmatprep.subr.bf16.mxu1 %v7948_v29  ;;  %v316_v28 = vld [vmem:[#allocation3 + $0x6f0] sm:$0xff]  ;;  %v313_v29 = vld [vmem:[#allocation3 + $0x6d8] sm:$0xff] }
 0x1a8   :  { %v8010_v33 = vcombine.high %v312_v12, %v316_v28  ;;  %v8009_v40 = vcombine.low %v312_v12, %v316_v28  ;;  %v8011_v41 = vcombine.low %v313_v29, %v317_v30  ;;  %v373_v12 = vld [vmem:[#allocation3 + $0x8b8] sm:$0xff] }
 0x1aa   :  { %3612 = vmatpush1.bf16.msra.mxu0 %v7945_v34  ;;  %3776 = vmatpush1.bf16.msra.mxu1 %v7947_v35  ;;  %v8012_v34 = vcombine.high %v313_v29, %v317_v30  ;;  %v320_v35 = vld [vmem:[#allocation3 + $0x710] sm:$0xff] }
 0x1ab   :  { %3613 = vmatprep.subr.bf16.mxu0 %v7954_v37  ;;  %3777 = vmatprep.subr.bf16.mxu1 %v7956_v53  ;;  %v324_v37 = vld [vmem:[#allocation3 + $0x730] sm:$0xff]  ;;  %v321_v53 = vld [vmem:[#allocation3 + $0x718] sm:$0xff] }
 0x1ac   :  { %v8018_v42 = vcombine.high %v320_v35, %v324_v37  ;;  %v8017_v48 = vcombine.low %v320_v35, %v324_v37  ;;  %v8019_v49 = vcombine.low %v321_v53, %v325_v38  ;;  %v381_v35 = vld [vmem:[#allocation3 + $0x8f8] sm:$0xff] }
 0x1ae   :  { %3614 = vmatpush1.bf16.msra.mxu0 %v7953_v43  ;;  %3778 = vmatpush1.bf16.msra.mxu1 %v7955_v44  ;;  %v8020_v43 = vcombine.high %v321_v53, %v325_v38  ;;  %v328_v44 = vld [vmem:[#allocation3 + $0x750] sm:$0xff] }
 0x1af   :  { %3615 = vmatprep.subr.bf16.mxu0 %v7962_v45  ;;  %3779 = vmatprep.subr.bf16.mxu1 %v7964_v46  ;;  %v332_v45 = vld [vmem:[#allocation3 + $0x770] sm:$0xff]  ;;  %v329_v46 = vld [vmem:[#allocation3 + $0x758] sm:$0xff] }
 0x1b0   :  { %v8026_v50 = vcombine.high %v328_v44, %v332_v45  ;;  %v8025_v59 = vcombine.low %v328_v44, %v332_v45  ;;  %v8027_v60 = vcombine.low %v329_v46, %v333_v47 }
 0x1b2   :  { %3616 = vmatpush1.bf16.msra.mxu0 %v7961_v51  ;;  %3780 = vmatpush1.bf16.msra.mxu1 %v7963_v52  ;;  %v8028_v51 = vcombine.high %v329_v46, %v333_v47  ;;  %v336_v52 = vld [vmem:[#allocation3 + $0x790] sm:$0xff] }
 0x1b3   :  { %3617 = vmatprep.subr.bf16.mxu0 %v7970_v54  ;;  %3781 = vmatprep.subr.bf16.mxu1 %v7972_v56  ;;  %v340_v54 = vld [vmem:[#allocation3 + $0x7b0] sm:$0xff]  ;;  %v337_v56 = vld [vmem:[#allocation3 + $0x798] sm:$0xff] }
 0x1b4   :  { %v8034_v61 = vcombine.high %v336_v52, %v340_v54  ;;  %v8033_v39 = vcombine.low %v336_v52, %v340_v54  ;;  %v8035_v3 = vcombine.low %v337_v56, %v341_v58  ;;  %v392_v47 = vld [vmem:[#allocation3 + $0x950] sm:$0xff] }
 0x1b6   :  { %3618 = vmatpush1.bf16.msra.mxu0 %v7969_v62  ;;  %3782 = vmatpush1.bf16.msra.mxu1 %v7971_v63  ;;  %v8036_v62 = vcombine.high %v337_v56, %v341_v58  ;;  %v344_v63 = vld [vmem:[#allocation3 + $0x7d0] sm:$0xff] }
 0x1b7   :  { %3619 = vmatprep.subr.bf16.mxu0 %v7978_v0  ;;  %3783 = vmatprep.subr.bf16.mxu1 %v7980_v1  ;;  %v348_v0 = vld [vmem:[#allocation3 + $0x7f0] sm:$0xff]  ;;  %v345_v1 = vld [vmem:[#allocation3 + $0x7d8] sm:$0xff] }
 0x1b8   :  { %v8042_v4 = vcombine.high %v344_v63, %v348_v0  ;;  %v8041_v10 = vcombine.low %v344_v63, %v348_v0  ;;  %v8043_v11 = vcombine.low %v345_v1, %v349_v2  ;;  %v400_v58 = vld [vmem:[#allocation3 + $0x990] sm:$0xff] }
 0x1ba   :  { %3620 = vmatpush1.bf16.msra.mxu0 %v7977_v5  ;;  %3784 = vmatpush1.bf16.msra.mxu1 %v7979_v6  ;;  %v8044_v5 = vcombine.high %v345_v1, %v349_v2  ;;  %v352_v6 = vld [vmem:[#allocation3 + $0x810] sm:$0xff] }
 0x1bb   :  { %3621 = vmatprep.subr.bf16.mxu0 %v7986_v7  ;;  %3785 = vmatprep.subr.bf16.mxu1 %v7988_v8  ;;  %v356_v7 = vld [vmem:[#allocation3 + $0x830] sm:$0xff]  ;;  %v353_v8 = vld [vmem:[#allocation3 + $0x818] sm:$0xff] }
 0x1bc   :  { %v8050_v13 = vcombine.high %v352_v6, %v356_v7  ;;  %v8049_v20 = vcombine.low %v352_v6, %v356_v7  ;;  %v8051_v21 = vcombine.low %v353_v8, %v357_v9  ;;  %v408_v2 = vld [vmem:[#allocation3 + $0x9d0] sm:$0xff] }
 0x1be   :  { %3622 = vmatpush1.bf16.msra.mxu0 %v7985_v14  ;;  %3786 = vmatpush1.bf16.msra.mxu1 %v7987_v16  ;;  %v8052_v14 = vcombine.high %v353_v8, %v357_v9  ;;  %v360_v16 = vld [vmem:[#allocation3 + $0x850] sm:$0xff] }
 0x1bf   :  { %3623 = vmatprep.subr.bf16.mxu0 %v7994_v17  ;;  %3787 = vmatprep.subr.bf16.mxu1 %v7996_v18  ;;  %v364_v17 = vld [vmem:[#allocation3 + $0x870] sm:$0xff]  ;;  %v361_v18 = vld [vmem:[#allocation3 + $0x858] sm:$0xff] }
 0x1c0   :  { %v8058_v23 = vcombine.high %v360_v16, %v364_v17  ;;  %v8057_v28 = vcombine.low %v360_v16, %v364_v17  ;;  %v8059_v29 = vcombine.low %v361_v18, %v365_v19  ;;  %v416_v9 = vld [vmem:[#allocation3 + $0xa10] sm:$0xff] }
 0x1c2   :  { %3624 = vmatpush1.bf16.msra.mxu0 %v7993_v57  ;;  %3788 = vmatpush1.bf16.msra.mxu1 %v7995_v24  ;;  %v8060_v57 = vcombine.high %v361_v18, %v365_v19  ;;  %v368_v24 = vld [vmem:[#allocation3 + $0x890] sm:$0xff] }
 0x1c3   :  { %3625 = vmatprep.subr.bf16.mxu0 %v8002_v26  ;;  %3789 = vmatprep.subr.bf16.mxu1 %v8004_v27  ;;  %v372_v26 = vld [vmem:[#allocation3 + $0x8b0] sm:$0xff]  ;;  %v369_v27 = vld [vmem:[#allocation3 + $0x898] sm:$0xff] }
 0x1c4   :  { %v8066_v30 = vcombine.high %v368_v24, %v372_v26  ;;  %v8065_v37 = vcombine.low %v368_v24, %v372_v26  ;;  %v424_v19 = vld [vmem:[#allocation3 + $0xa50] sm:$0xff] }
 0x1c6   :  { %3626 = vmatpush1.bf16.msra.mxu0 %v8001_v31  ;;  %3790 = vmatpush1.bf16.msra.mxu1 %v8003_v32  ;;  %v8068_v31 = vcombine.high %v369_v27, %v373_v12  ;;  %v376_v32 = vld [vmem:[#allocation3 + $0x8d0] sm:$0xff] }
 0x1c7   :  { %3627 = vmatprep.subr.bf16.mxu0 %v8010_v33  ;;  %3791 = vmatprep.subr.bf16.mxu1 %v8012_v34  ;;  %v380_v33 = vld [vmem:[#allocation3 + $0x8f0] sm:$0xff]  ;;  %v377_v34 = vld [vmem:[#allocation3 + $0x8d8] sm:$0xff] }
 0x1c8   :  { %v8074_v53 = vcombine.high %v376_v32, %v380_v33  ;;  %v8076_v38 = vcombine.high %v377_v34, %v381_v35  ;;  %v8073_v44 = vcombine.low %v376_v32, %v380_v33  ;;  %v8075_v45 = vcombine.low %v377_v34, %v381_v35  ;;  %v440_v35 = vld [vmem:[#allocation3 + $0xad0] sm:$0xff] }
 0x1ca   :  { %3628 = vmatpush1.bf16.msra.mxu0 %v8009_v40  ;;  %3792 = vmatpush1.bf16.msra.mxu1 %v8011_v41  ;;  %v384_v40 = vld [vmem:[#allocation3 + $0x910] sm:$0xff] }
 0x1cb   :  { %3629 = vmatprep.subr.bf16.mxu0 %v8018_v42  ;;  %3793 = vmatprep.subr.bf16.mxu1 %v8020_v43  ;;  %v388_v41 = vld [vmem:[#allocation3 + $0x930] sm:$0xff]  ;;  %v385_v42 = vld [vmem:[#allocation3 + $0x918] sm:$0xff] }
 0x1cc   :  { %v389_v43 = vld [vmem:[#allocation3 + $0x938] sm:$0xff]  ;;  %v8082_v46 = vcombine.high %v384_v40, %v388_v41 }
 0x1cd   :  { %v8083_v52 = vcombine.low %v385_v42, %v389_v43 }
 0x1ce   :  { %3630 = vmatpush1.bf16.msra.mxu0 %v8017_v48  ;;  %3794 = vmatpush1.bf16.msra.mxu1 %v8019_v49  ;;  %v396_v48 = vld [vmem:[#allocation3 + $0x970] sm:$0xff]  ;;  %v393_v49 = vld [vmem:[#allocation3 + $0x958] sm:$0xff] }
 0x1cf   :  { %3631 = vmatprep.subr.bf16.mxu0 %v8026_v50  ;;  %3795 = vmatprep.subr.bf16.mxu1 %v8028_v51  ;;  %v397_v50 = vld [vmem:[#allocation3 + $0x978] sm:$0xff]  ;;  %v8081_v51 = vcombine.low %v384_v40, %v388_v41  ;;  %v8090_v54 = vcombine.high %v392_v47, %v396_v48 }
 0x1d0   :  { %v8092_v56 = vcombine.high %v393_v49, %v397_v50  ;;  %v8091_v63 = vcombine.low %v393_v49, %v397_v50  ;;  %v456_v50 = vld [vmem:[#allocation3 + $0xb50] sm:$0xff] }
 0x1d2   :  { %3632 = vmatpush1.bf16.msra.mxu0 %v8025_v59  ;;  %3796 = vmatpush1.bf16.msra.mxu1 %v8027_v60  ;;  %v404_v59 = vld [vmem:[#allocation3 + $0x9b0] sm:$0xff]  ;;  %v401_v60 = vld [vmem:[#allocation3 + $0x998] sm:$0xff] }
 0x1d3   :  { %3633 = vmatprep.subr.bf16.mxu0 %v8034_v61  ;;  %3797 = vmatprep.subr.bf16.mxu1 %v8036_v62  ;;  %v405_v61 = vld [vmem:[#allocation3 + $0x9b8] sm:$0xff]  ;;  %v8089_v62 = vcombine.low %v392_v47, %v396_v48  ;;  %v8098_v0 = vcombine.high %v400_v58, %v404_v59 }
 0x1d4   :  { %v8100_v1 = vcombine.high %v401_v60, %v405_v61  ;;  %v8099_v6 = vcombine.low %v401_v60, %v405_v61  ;;  %v464_v61 = vld [vmem:[#allocation3 + $0xb90] sm:$0xff] }
 0x1d6   :  { %3634 = vmatpush1.bf16.msra.mxu0 %v8033_v39  ;;  %3798 = vmatpush1.bf16.msra.mxu1 %v8035_v3  ;;  %v412_v39 = vld [vmem:[#allocation3 + $0x9f0] sm:$0xff]  ;;  %v409_v3 = vld [vmem:[#allocation3 + $0x9d8] sm:$0xff] }
 0x1d7   :  { %3635 = vmatprep.subr.bf16.mxu0 %v8042_v4  ;;  %3799 = vmatprep.subr.bf16.mxu1 %v8044_v5  ;;  %v413_v4 = vld [vmem:[#allocation3 + $0x9f8] sm:$0xff]  ;;  %v8097_v5 = vcombine.low %v400_v58, %v404_v59  ;;  %v8106_v7 = vcombine.high %v408_v2, %v412_v39 }
 0x1d8   :  { %v8108_v8 = vcombine.high %v409_v3, %v413_v4  ;;  %v8107_v16 = vcombine.low %v409_v3, %v413_v4  ;;  %v472_v4 = vld [vmem:[#allocation3 + $0xbd0] sm:$0xff] }
 0x1da   :  { %3636 = vmatpush1.bf16.msra.mxu0 %v8041_v10  ;;  %3800 = vmatpush1.bf16.msra.mxu1 %v8043_v11  ;;  %v420_v10 = vld [vmem:[#allocation3 + $0xa30] sm:$0xff]  ;;  %v417_v11 = vld [vmem:[#allocation3 + $0xa18] sm:$0xff] }
 0x1db   :  { %3646 = vmatprep.subr.bf16.mxu0 %v8050_v13  ;;  %3810 = vmatprep.subr.bf16.mxu1 %v8052_v14  ;;  %v421_v13 = vld [vmem:[#allocation3 + $0xa38] sm:$0xff]  ;;  %v8105_v14 = vcombine.low %v408_v2, %v412_v39  ;;  %v8114_v17 = vcombine.high %v416_v9, %v420_v10 }
 0x1dc   :  { %v8116_v18 = vcombine.high %v417_v11, %v421_v13  ;;  %v8115_v24 = vcombine.low %v417_v11, %v421_v13  ;;  %v480_v13 = vld [vmem:[#allocation3 + $0xc10] sm:$0xff] }
 0x1dd   :  { %3638 = vmatmul.mubr.bf16.vlgmr.msra.gmra.mrb[4].mxu0 %v9224_v22  ;;  %3802 = vmatmul.mubr.bf16.vlgmr.msra.gmra.mrb[4].mxu1 %v9224_v22  ;;  %v8067_v22 = vcombine.low %v369_v27, %v373_v12  ;;  %v432_v12 = vld [vmem:[#allocation3 + $0xa90] sm:$0xff] }
 0x1de   :  { %3647 = vmatpush1.bf16.msra.mxu0 %v8049_v20  ;;  %3811 = vmatpush1.bf16.msra.mxu1 %v8051_v21  ;;  %v428_v20 = vld [vmem:[#allocation3 + $0xa70] sm:$0xff]  ;;  %v425_v21 = vld [vmem:[#allocation3 + $0xa58] sm:$0xff] }
 0x1df   :  { %3648 = vmatprep.subr.bf16.mxu0 %v8058_v23  ;;  %3812 = vmatprep.subr.bf16.mxu1 %v8060_v57  ;;  %v429_v23 = vld [vmem:[#allocation3 + $0xa78] sm:$0xff]  ;;  %v8113_v57 = vcombine.low %v416_v9, %v420_v10  ;;  %v8122_v26 = vcombine.high %v424_v19, %v428_v20 }
 0x1e0   :  { %3678 = vmatprep.mubr.bf16.mxu0 %v9233_v15  ;;  %3842 = vmatprep.mubr.bf16.mxu1 %v9233_v15  ;;  %v8084_v15 = vcombine.high %v385_v42, %v389_v43  ;;  %v8124_v27 = vcombine.high %v425_v21, %v429_v23  ;;  %v8123_v32 = vcombine.low %v425_v21, %v429_v23  ;;  %v448_v43 = vld [vmem:[#allocation3 + $0xb10] sm:$0xff] }
 0x1e1   :  { %v488_v23 = vld [vmem:[#allocation3 + $0xc50] sm:$0xff] }
 0x1e2   :  { %3649 = vmatpush1.bf16.msra.mxu0 %v8057_v28  ;;  %3813 = vmatpush1.bf16.msra.mxu1 %v8059_v29  ;;  %v436_v28 = vld [vmem:[#allocation3 + $0xab0] sm:$0xff]  ;;  %v433_v29 = vld [vmem:[#allocation3 + $0xa98] sm:$0xff] }
 0x1e3   :  { %3650 = vmatprep.subr.bf16.mxu0 %v8066_v30  ;;  %3814 = vmatprep.subr.bf16.mxu1 %v8068_v31  ;;  %v437_v30 = vld [vmem:[#allocation3 + $0xab8] sm:$0xff]  ;;  %v8121_v31 = vcombine.low %v424_v19, %v428_v20  ;;  %v8130_v33 = vcombine.high %v432_v12, %v436_v28 }
 0x1e4   :  { %v8132_v34 = vcombine.high %v433_v29, %v437_v30  ;;  %v8131_v40 = vcombine.low %v433_v29, %v437_v30  ;;  %v496_v30 = vld [vmem:[#allocation3 + $0xc90] sm:$0xff] }
 0x1e6   :  { %3651 = vmatpush1.bf16.msra.mxu0 %v8065_v37  ;;  %3815 = vmatpush1.bf16.msra.mxu1 %v8067_v22  ;;  %v444_v37 = vld [vmem:[#allocation3 + $0xaf0] sm:$0xff]  ;;  %v441_v22 = vld [vmem:[#allocation3 + $0xad8] sm:$0xff] }
 0x1e7   :  { %3652 = vmatprep.subr.bf16.mxu0 %v8074_v53  ;;  %3816 = vmatprep.subr.bf16.mxu1 %v8076_v38  ;;  %v445_v53 = vld [vmem:[#allocation3 + $0xaf8] sm:$0xff]  ;;  %v8129_v38 = vcombine.low %v432_v12, %v436_v28  ;;  %v8138_v41 = vcombine.high %v440_v35, %v444_v37 }
 0x1e8   :  { %v8140_v42 = vcombine.high %v441_v22, %v445_v53  ;;  %v8139_v47 = vcombine.low %v441_v22, %v445_v53  ;;  %v504_v53 = vld [vmem:[#allocation3 + $0xcd0] sm:$0xff] }
 0x1ea   :  { %3653 = vmatpush1.bf16.msra.mxu0 %v8073_v44  ;;  %3817 = vmatpush1.bf16.msra.mxu1 %v8075_v45  ;;  %v452_v44 = vld [vmem:[#allocation3 + $0xb30] sm:$0xff]  ;;  %v449_v45 = vld [vmem:[#allocation3 + $0xb18] sm:$0xff] }
 0x1eb   :  { %3654 = vmatprep.subr.bf16.mxu0 %v8082_v46  ;;  %3818 = vmatprep.subr.bf16.mxu1 %v8084_v15  ;;  %v453_v46 = vld [vmem:[#allocation3 + $0xb38] sm:$0xff]  ;;  %v8137_v15 = vcombine.low %v440_v35, %v444_v37  ;;  %v8146_v48 = vcombine.high %v448_v43, %v452_v44 }
 0x1ec   :  { %v8148_v49 = vcombine.high %v449_v45, %v453_v46  ;;  %v8147_v58 = vcombine.low %v449_v45, %v453_v46  ;;  %v512_v45 = vld [vmem:[#allocation3 + $0xd10] sm:$0xff] }
 0x1ed   :  { %v516_v46 = vld [vmem:[#allocation3 + $0xd30] sm:$0xff] }
 0x1ee   :  { %3655 = vmatpush1.bf16.msra.mxu0 %v8081_v51  ;;  %3819 = vmatpush1.bf16.msra.mxu1 %v8083_v52  ;;  %v460_v51 = vld [vmem:[#allocation3 + $0xb70] sm:$0xff]  ;;  %v457_v52 = vld [vmem:[#allocation3 + $0xb58] sm:$0xff] }
 0x1ef   :  { %3656 = vmatprep.subr.bf16.mxu0 %v8090_v54  ;;  %3820 = vmatprep.subr.bf16.mxu1 %v8092_v56  ;;  %v461_v54 = vld [vmem:[#allocation3 + $0xb78] sm:$0xff]  ;;  %v8145_v56 = vcombine.low %v448_v43, %v452_v44  ;;  %v8154_v59 = vcombine.high %v456_v50, %v460_v51 }
 0x1f0   :  { %v8156_v60 = vcombine.high %v457_v52, %v461_v54  ;;  %v8155_v2 = vcombine.low %v457_v52, %v461_v54  ;;  %v524_v52 = vld [vmem:[#allocation3 + $0xd70] sm:$0xff]  ;;  %v521_v54 = vld [vmem:[#allocation3 + $0xd58] sm:$0xff] }
 0x1f2   :  { %3657 = vmatpush1.bf16.msra.mxu0 %v8089_v62  ;;  %3821 = vmatpush1.bf16.msra.mxu1 %v8091_v63  ;;  %v468_v62 = vld [vmem:[#allocation3 + $0xbb0] sm:$0xff]  ;;  %v465_v63 = vld [vmem:[#allocation3 + $0xb98] sm:$0xff] }
 0x1f3   :  { %3658 = vmatprep.subr.bf16.mxu0 %v8098_v0  ;;  %3822 = vmatprep.subr.bf16.mxu1 %v8100_v1  ;;  %v469_v0 = vld [vmem:[#allocation3 + $0xbb8] sm:$0xff]  ;;  %v8153_v1 = vcombine.low %v456_v50, %v460_v51  ;;  %v8162_v39 = vcombine.high %v464_v61, %v468_v62  ;;  %v8210_v50 = vcombine.high %v512_v45, %v516_v46  ;;  %v520_v51 = vld [vmem:[#allocation3 + $0xd50] sm:$0xff] }
 0x1f4   :  { %v8164_v3 = vcombine.high %v465_v63, %v469_v0  ;;  %v8163_v9 = vcombine.low %v465_v63, %v469_v0  ;;  %v532_v63 = vld [vmem:[#allocation3 + $0xdb0] sm:$0xff]  ;;  %v529_v0 = vld [vmem:[#allocation3 + $0xd98] sm:$0xff] }
 0x1f6   :  { %3659 = vmatpush1.bf16.msra.mxu0 %v8097_v5  ;;  %3823 = vmatpush1.bf16.msra.mxu1 %v8099_v6  ;;  %v476_v5 = vld [vmem:[#allocation3 + $0xbf0] sm:$0xff]  ;;  %v473_v6 = vld [vmem:[#allocation3 + $0xbd8] sm:$0xff] }
 0x1f7   :  { %3660 = vmatprep.subr.bf16.mxu0 %v8106_v7  ;;  %3824 = vmatprep.subr.bf16.mxu1 %v8108_v8  ;;  %v477_v7 = vld [vmem:[#allocation3 + $0xbf8] sm:$0xff]  ;;  %v8161_v8 = vcombine.low %v464_v61, %v468_v62  ;;  %v8170_v10 = vcombine.high %v472_v4, %v476_v5  ;;  %v528_v62 = vld [vmem:[#allocation3 + $0xd90] sm:$0xff] }
 0x1f8   :  { %v8172_v11 = vcombine.high %v473_v6, %v477_v7  ;;  %v8171_v19 = vcombine.low %v473_v6, %v477_v7  ;;  %v536_v6 = vld [vmem:[#allocation3 + $0xdd0] sm:$0xff] }
 0x1f9   :  { %v540_v7 = vld [vmem:[#allocation3 + $0xdf0] sm:$0xff] }
 0x1fa   :  { %3661 = vmatpush1.bf16.msra.mxu0 %v8105_v14  ;;  %3825 = vmatpush1.bf16.msra.mxu1 %v8107_v16  ;;  %v484_v14 = vld [vmem:[#allocation3 + $0xc30] sm:$0xff]  ;;  %v481_v16 = vld [vmem:[#allocation3 + $0xc18] sm:$0xff] }
 0x1fb   :  { %3662 = vmatprep.subr.bf16.mxu0 %v8114_v17  ;;  %3826 = vmatprep.subr.bf16.mxu1 %v8116_v18  ;;  %v485_v17 = vld [vmem:[#allocation3 + $0xc38] sm:$0xff]  ;;  %v8169_v18 = vcombine.low %v472_v4, %v476_v5  ;;  %v8178_v20 = vcombine.high %v480_v13, %v484_v14 }
 0x1fc   :  { %v8180_v21 = vcombine.high %v481_v16, %v485_v17  ;;  %v8179_v12 = vcombine.low %v481_v16, %v485_v17  ;;  %v8225_v16 = vcombine.low %v528_v62, %v532_v63 }
 0x1fe   :  { %3663 = vmatpush1.bf16.msra.mxu0 %v8113_v57  ;;  %3827 = vmatpush1.bf16.msra.mxu1 %v8115_v24  ;;  %v492_v57 = vld [vmem:[#allocation3 + $0xc70] sm:$0xff]  ;;  %v489_v24 = vld [vmem:[#allocation3 + $0xc58] sm:$0xff] }
 0x1ff   :  { %3664 = vmatprep.subr.bf16.mxu0 %v8122_v26  ;;  %3828 = vmatprep.subr.bf16.mxu1 %v8124_v27  ;;  %v493_v26 = vld [vmem:[#allocation3 + $0xc78] sm:$0xff]  ;;  %v8177_v27 = vcombine.low %v480_v13, %v484_v14  ;;  %v8186_v28 = vcombine.high %v488_v23, %v492_v57 }
 0x200   :  { %v8188_v29 = vcombine.high %v489_v24, %v493_v26  ;;  %v8187_v35 = vcombine.low %v489_v24, %v493_v26  ;;  %v548_v24 = vld [vmem:[#allocation3 + $0xe30] sm:$0xff]  ;;  %v545_v26 = vld [vmem:[#allocation3 + $0xe18] sm:$0xff] }
 0x202   :  { %3665 = vmatpush1.bf16.msra.mxu0 %v8121_v31  ;;  %3829 = vmatpush1.bf16.msra.mxu1 %v8123_v32  ;;  %v500_v31 = vld [vmem:[#allocation3 + $0xcb0] sm:$0xff]  ;;  %v497_v32 = vld [vmem:[#allocation3 + $0xc98] sm:$0xff] }
 0x203   :  { %3666 = vmatprep.subr.bf16.mxu0 %v8130_v33  ;;  %3830 = vmatprep.subr.bf16.mxu1 %v8132_v34  ;;  %v501_v33 = vld [vmem:[#allocation3 + $0xcb8] sm:$0xff]  ;;  %v8185_v34 = vcombine.low %v488_v23, %v492_v57  ;;  %v8194_v37 = vcombine.high %v496_v30, %v500_v31  ;;  %v544_v57 = vld [vmem:[#allocation3 + $0xe10] sm:$0xff] }
 0x204   :  { %v8196_v22 = vcombine.high %v497_v32, %v501_v33 }
 0x206   :  { %3667 = vmatpush1.bf16.msra.mxu0 %v8129_v38  ;;  %3831 = vmatpush1.bf16.msra.mxu1 %v8131_v40  ;;  %v508_v38 = vld [vmem:[#allocation3 + $0xcf0] sm:$0xff]  ;;  %v505_v40 = vld [vmem:[#allocation3 + $0xcd8] sm:$0xff] }
 0x207   :  { %3668 = vmatprep.subr.bf16.mxu0 %v8138_v41  ;;  %3832 = vmatprep.subr.bf16.mxu1 %v8140_v42  ;;  %v509_v41 = vld [vmem:[#allocation3 + $0xcf8] sm:$0xff]  ;;  %v8193_v42 = vcombine.low %v496_v30, %v500_v31  ;;  %v8202_v43 = vcombine.high %v504_v53, %v508_v38  ;;  %v552_v31 = vld [vmem:[#allocation3 + $0xe50] sm:$0xff] }
 0x208   :  { %v8204_v44 = vcombine.high %v505_v40, %v509_v41 }
 0x20a   :  { %3669 = vmatpush1.bf16.msra.mxu0 %v8137_v15  ;;  %3833 = vmatpush1.bf16.msra.mxu1 %v8139_v47  ;;  %v513_v15 = vld [vmem:[#allocation3 + $0xd18] sm:$0xff] }
 0x20b   :  { %3670 = vmatprep.subr.bf16.mxu0 %v8146_v48  ;;  %3834 = vmatprep.subr.bf16.mxu1 %v8148_v49  ;;  %v517_v47 = vld [vmem:[#allocation3 + $0xd38] sm:$0xff]  ;;  %v8201_v48 = vcombine.low %v504_v53, %v508_v38  ;;  %v8203_v49 = vcombine.low %v505_v40, %v509_v41  ;;  %v560_v38 = vld [vmem:[#allocation3 + $0xe90] sm:$0xff] }
 0x20c   :  { %v564_v40 = vld [vmem:[#allocation3 + $0xeb0] sm:$0xff]  ;;  %v561_v41 = vld [vmem:[#allocation3 + $0xe98] sm:$0xff] }
 0x20e   :  { %3671 = vmatpush1.bf16.msra.mxu0 %v8145_v56  ;;  %3835 = vmatpush1.bf16.msra.mxu1 %v8147_v58  ;;  %v525_v56 = vld [vmem:[#allocation3 + $0xd78] sm:$0xff]  ;;  %v8209_v58 = vcombine.low %v512_v45, %v516_v46  ;;  %v568_v46 = vld [vmem:[#allocation3 + $0xed0] sm:$0xff] }
 0x20f   :  { %3672 = vmatprep.subr.bf16.mxu0 %v8154_v59  ;;  %3836 = vmatprep.subr.bf16.mxu1 %v8156_v60  ;;  %v8211_v59 = vcombine.low %v513_v15, %v517_v47  ;;  %v8218_v60 = vcombine.high %v520_v51, %v524_v52  ;;  %v8220_v61 = vcombine.high %v521_v54, %v525_v56 }
 0x212   :  { %3673 = vmatpush1.bf16.msra.mxu0 %v8153_v1  ;;  %3837 = vmatpush1.bf16.msra.mxu1 %v8155_v2  ;;  %v533_v1 = vld [vmem:[#allocation3 + $0xdb8] sm:$0xff]  ;;  %v8217_v2 = vcombine.low %v520_v51, %v524_v52  ;;  %v576_v52 = vld [vmem:[#allocation3 + $0xf10] sm:$0xff] }
 0x213   :  { %3674 = vmatprep.subr.bf16.mxu0 %v8162_v39  ;;  %3838 = vmatprep.subr.bf16.mxu1 %v8164_v3  ;;  %v8219_v39 = vcombine.low %v521_v54, %v525_v56  ;;  %v8226_v3 = vcombine.high %v528_v62, %v532_v63  ;;  %v8228_v5 = vcombine.high %v529_v0, %v533_v1  ;;  %v580_v54 = vld [vmem:[#allocation3 + $0xf30] sm:$0xff]  ;;  %v608_v56 = vlaneseq }
 0x214   :  { %v8274_v62 = vcombine.high %v576_v52, %v580_v54 }
 0x216   :  { %3675 = vmatpush1.bf16.msra.mxu0 %v8161_v8  ;;  %3839 = vmatpush1.bf16.msra.mxu1 %v8163_v9 }
 0x217   :  { %3676 = vmatprep.subr.bf16.mxu0 %v8170_v10  ;;  %3840 = vmatprep.subr.bf16.mxu1 %v8172_v11  ;;  %v537_v10 = vld [vmem:[#allocation3 + $0xdd8] sm:$0xff] }
 0x218   :  { %v541_v11 = vld [vmem:[#allocation3 + $0xdf8] sm:$0xff] }
 0x219   :  { %v8236_v23 = vcombine.high %v537_v10, %v541_v11 }
 0x21a   :  { %3677 = vmatpush1.bf16.msra.mxu0 %v8169_v18  ;;  %3841 = vmatpush1.bf16.msra.mxu1 %v8171_v19  ;;  %v8227_v19 = vcombine.low %v529_v0, %v533_v1  ;;  %v584_v0 = vld [vmem:[#allocation3 + $0xf50] sm:$0xff] }
 0x21b   :  { %3687 = vmatprep.subr.bf16.mxu0 %v8178_v20  ;;  %3851 = vmatprep.subr.bf16.mxu1 %v8180_v21  ;;  %v8234_v20 = vcombine.high %v536_v6, %v540_v7  ;;  %v588_v1 = vld [vmem:[#allocation3 + $0xf70] sm:$0xff] }
 0x21d   :  { %3679 = vmatmul.mubr.bf16.vlgmr.msra.gmra.mrb[4].mxu0 %v9241_v36  ;;  %3843 = vmatmul.mubr.bf16.vlgmr.msra.gmra.mrb[4].mxu1 %v9241_v36  ;;  %v8195_v36 = vcombine.low %v497_v32, %v501_v33  ;;  %v556_v32 = vld [vmem:[#allocation3 + $0xe70] sm:$0xff]  ;;  %v553_v33 = vld [vmem:[#allocation3 + $0xe58] sm:$0xff] }
 0x21e   :  { %3688 = vmatpush1.bf16.msra.mxu0 %v8177_v27  ;;  %3852 = vmatpush1.bf16.msra.mxu1 %v8179_v12  ;;  %v549_v27 = vld [vmem:[#allocation3 + $0xe38] sm:$0xff]  ;;  %v8233_v12 = vcombine.low %v536_v6, %v540_v7  ;;  %v8282_v7 = vcombine.high %v584_v0, %v588_v1 }
 0x21f   :  { %3689 = vmatprep.subr.bf16.mxu0 %v8186_v28  ;;  %3853 = vmatprep.subr.bf16.mxu1 %v8188_v29  ;;  %v8235_v28 = vcombine.low %v537_v10, %v541_v11  ;;  %v8242_v29 = vcombine.high %v544_v57, %v548_v24  ;;  %v8244_v30 = vcombine.high %v545_v26, %v549_v27  ;;  %v592_v11 = vld [vmem:[#allocation3 + $0xf90] sm:$0xff] }
 0x220   :  { %3719 = vmatprep.mubr.bf16.mxu0 %v9250_v25  ;;  %3883 = vmatprep.mubr.bf16.mxu1 %v9250_v25  ;;  %v8212_v25 = vcombine.high %v513_v15, %v517_v47  ;;  %v572_v15 = vld [vmem:[#allocation3 + $0xef0] sm:$0xff]  ;;  %v569_v47 = vld [vmem:[#allocation3 + $0xed8] sm:$0xff] }
 0x222   :  { %3690 = vmatpush1.bf16.msra.mxu0 %v8185_v34  ;;  %3854 = vmatpush1.bf16.msra.mxu1 %v8187_v35  ;;  %v557_v34 = vld [vmem:[#allocation3 + $0xe78] sm:$0xff]  ;;  %v8241_v35 = vcombine.low %v544_v57, %v548_v24  ;;  %v600_v24 = vld [vmem:[#allocation3 + $0xfd0] sm:$0xff] }
 0x223   :  { %3691 = vmatprep.subr.bf16.mxu0 %v8194_v37  ;;  %3855 = vmatprep.subr.bf16.mxu1 %v8196_v22  ;;  %v8243_v37 = vcombine.low %v545_v26, %v549_v27  ;;  %v8250_v22 = vcombine.high %v552_v31, %v556_v32  ;;  %v8252_v53 = vcombine.high %v553_v33, %v557_v34  ;;  %v604_v26 = vld [vmem:[#allocation3 + $0xff0] sm:$0xff] }
 0x226   :  { %3692 = vmatpush1.bf16.msra.mxu0 %v8193_v42  ;;  %3856 = vmatpush1.bf16.msra.mxu1 %v8195_v36  ;;  %v565_v42 = vld [vmem:[#allocation3 + $0xeb8] sm:$0xff]  ;;  %v8249_v36 = vcombine.low %v552_v31, %v556_v32  ;;  %v8298_v31 = vcombine.high %v600_v24, %v604_v26 }
 0x227   :  { %3693 = vmatprep.subr.bf16.mxu0 %v8202_v43  ;;  %3857 = vmatprep.subr.bf16.mxu1 %v8204_v44  ;;  %v8251_v43 = vcombine.low %v553_v33, %v557_v34  ;;  %v8258_v44 = vcombine.high %v560_v38, %v564_v40  ;;  %v8260_v45 = vcombine.high %v561_v41, %v565_v42  ;;  %v3908_v33 = vld [vmem:[#allocation8] sm:$0xff] }
 0x228   :  { %v3912_v34 = vld [vmem:[#allocation8 + $0x20] sm:$0xff] }
 0x22a   :  { %3694 = vmatpush1.bf16.msra.mxu0 %v8201_v48  ;;  %3858 = vmatpush1.bf16.msra.mxu1 %v8203_v49  ;;  %v573_v48 = vld [vmem:[#allocation3 + $0xef8] sm:$0xff]  ;;  %v8257_v49 = vcombine.low %v560_v38, %v564_v40  ;;  %v8302_v40 = vcombine.high %v3908_v33, %v3912_v34 }
 0x22b   :  { %3695 = vmatprep.subr.bf16.mxu0 %v8210_v50  ;;  %3859 = vmatprep.subr.bf16.mxu1 %v8212_v25  ;;  %v8259_v50 = vcombine.low %v561_v41, %v565_v42  ;;  %v8266_v25 = vcombine.high %v568_v46, %v572_v15  ;;  %v8268_v51 = vcombine.high %v569_v47, %v573_v48 }
 0x22e   :  { %3696 = vmatpush1.bf16.msra.mxu0 %v8209_v58  ;;  %3860 = vmatpush1.bf16.msra.mxu1 %v8211_v59  ;;  %v577_v58 = vld [vmem:[#allocation3 + $0xf18] sm:$0xff] }
 0x22f   :  { %3697 = vmatprep.subr.bf16.mxu0 %v8218_v60  ;;  %3861 = vmatprep.subr.bf16.mxu1 %v8220_v61  ;;  %v581_v59 = vld [vmem:[#allocation3 + $0xf38] sm:$0xff]  ;;  %v8265_v60 = vcombine.low %v568_v46, %v572_v15  ;;  %v8267_v61 = vcombine.low %v569_v47, %v573_v48  ;;  %v3921_v46 = vld [vmem:[#allocation8 + $0x68] sm:$0xff]  ;;  %v3924_v47 = vld [vmem:[#allocation8 + $0x80] sm:$0xff] }
 0x230   :  { %v9276_v4 = vpop.f32.mrb[0].mxu0  ;;  %v9278_v8 = vpop.f32.mrb[0].mxu1  ;;  %v8276_v63 = vcombine.high %v577_v58, %v581_v59  ;;  %v8275_v6 = vcombine.low %v577_v58, %v581_v59  ;;  %v3928_v48 = vld [vmem:[#allocation8 + $0xa0] sm:$0xff] }
 0x231   :  { %v9280_v9 = vpop.f32.mrb[1].mxu0  ;;  %v9282_v13 = vpop.f32.mrb[1].mxu1  ;;  %v8318_v58 = vcombine.high %v3924_v47, %v3928_v48 }
 0x232   :  { %v3397_v14 = vpop.f32.mrb[2].mxu0  ;;  %3698 = vmatpush1.bf16.msra.mxu0 %v8217_v2  ;;  %v3561_v17 = vpop.f32.mrb[2].mxu1  ;;  %3862 = vmatpush1.bf16.msra.mxu1 %v8219_v39  ;;  %v9285_v2 = vshrl.u32 %v608_v56, 7  ;;  %v585_v39 = vld [vmem:[#allocation3 + $0xf58] sm:$0xff] }
 0x233   :  { %v3398_v18 = vpop.f32.mrb[3].mxu0  ;;  %3699 = vmatprep.subr.bf16.mxu0 %v8226_v3  ;;  %v3562_v21 = vpop.f32.mrb[3].mxu1  ;;  %3863 = vmatprep.subr.bf16.mxu1 %v8228_v5  ;;  %v589_v3 = vld [vmem:[#allocation3 + $0xf78] sm:$0xff]  ;;  %v8273_v5 = vcombine.low %v576_v52, %v580_v54  ;;  %v596_v14 = vld [vmem:[#allocation3 + $0xfb0] sm:$0xff] }
 0x234   :  { %v8284_v10 = vcombine.high %v585_v39, %v589_v3  ;;  %v593_v17 = vld [vmem:[#allocation3 + $0xf98] sm:$0xff]  ;;  %v8283_v21 = vcombine.low %v585_v39, %v589_v3  ;;  %v3940_v3 = vld [vmem:[#allocation8 + $0x100] sm:$0xff] }
 0x235   :  { %v597_v18 = vld [vmem:[#allocation3 + $0xfb8] sm:$0xff] }
 0x236   :  { %3700 = vmatpush1.bf16.msra.mxu0 %v8225_v16  ;;  %3864 = vmatpush1.bf16.msra.mxu1 %v8227_v19  ;;  %v9288_v16 = vsub.s32 1, %v9285_v2  ;;  %v9290_v19 = vld [vmem:[#allocation6] sm:$0xff]  ;;  %v8292_v57 = vcombine.high %v593_v17, %v597_v18 }
 0x237   :  { %3701 = vmatprep.subr.bf16.mxu0 %v8234_v20  ;;  %3865 = vmatprep.subr.bf16.mxu1 %v8236_v23  ;;  %v8281_v20 = vcombine.low %v584_v0, %v588_v1  ;;  %v8290_v23 = vcombine.high %v592_v11, %v596_v14  ;;  %v8317_v0 = vcombine.low %v3924_v47, %v3928_v48  ;;  %v3980_v48 = vld [vmem:[#allocation8 + $0x240] sm:$0xff] }
 0x238   :  { %v615_v27 = vrot.slane %v9290_v19, %v9288_v16 }
 0x23a   :  { %3702 = vmatpush1.bf16.msra.mxu0 %v8233_v12  ;;  %3866 = vmatpush1.bf16.msra.mxu1 %v8235_v28  ;;  %v601_v12 = vld [vmem:[#allocation3 + $0xfd8] sm:$0xff] }
 0x23b   :  { %3703 = vmatprep.subr.bf16.mxu0 %v8242_v29  ;;  %3867 = vmatprep.subr.bf16.mxu1 %v8244_v30  ;;  %v605_v28 = vld [vmem:[#allocation3 + $0xff8] sm:$0xff]  ;;  %v8289_v29 = vcombine.low %v592_v11, %v596_v14  ;;  %v8291_v30 = vcombine.low %v593_v17, %v597_v18  ;;  %v3948_v18 = vld [vmem:[#allocation8 + $0x140] sm:$0xff] }
 0x23c   :  { %v8300_v32 = vcombine.high %v601_v12, %v605_v28  ;;  %v8299_v38 = vcombine.low %v601_v12, %v605_v28  ;;  %v3956_v12 = vld [vmem:[#allocation8 + $0x180] sm:$0xff] }
 0x23d   :  { %v3960_v28 = vld [vmem:[#allocation8 + $0x1a0] sm:$0xff] }
 0x23e   :  { %3704 = vmatpush1.bf16.msra.mxu0 %v8241_v35  ;;  %3868 = vmatpush1.bf16.msra.mxu1 %v8243_v37  ;;  %v8814_v35 = vadd.f32 %v9280_v9, %v615_v27  ;;  %v3909_v37 = vld [vmem:[#allocation8 + $0x8] sm:$0xff] }
 0x23f   :  { %3705 = vmatprep.subr.bf16.mxu0 %v8250_v22  ;;  %3869 = vmatprep.subr.bf16.mxu1 %v8252_v53  ;;  %v3913_v22 = vld [vmem:[#allocation8 + $0x28] sm:$0xff]  ;;  %v8297_v53 = vcombine.low %v600_v24, %v604_v26 }
 0x240   :  { %v8304_v41 = vcombine.high %v3909_v37, %v3913_v22  ;;  %v3893_v42 = vmax.f32 %v8814_v35, 0.0  ;;  %v8303_v9 = vcombine.low %v3909_v37, %v3913_v22  ;;  %v3964_v35 = vld [vmem:[#allocation8 + $0x1c0] sm:$0xff]  ;;  %v3965_v22 = vld [vmem:[#allocation8 + $0x1c8] sm:$0xff] }
 0x241   :  { %v3968_v37 = vld [vmem:[#allocation8 + $0x1e0] sm:$0xff] }
 0x242   :  { %3706 = vmatpush1.bf16.msra.mxu0 %v8249_v36  ;;  %3870 = vmatpush1.bf16.msra.mxu1 %v8251_v43  ;;  %v3916_v36 = vld [vmem:[#allocation8 + $0x40] sm:$0xff] }
 0x243   :  { %3707 = vmatprep.subr.bf16.mxu0 %v8258_v44  ;;  %3871 = vmatprep.subr.bf16.mxu1 %v8260_v45  ;;  %v3920_v43 = vld [vmem:[#allocation8 + $0x60] sm:$0xff]  ;;  %v8301_v44 = vcombine.low %v3908_v33, %v3912_v34  ;;  %v3917_v45 = vld [vmem:[#allocation8 + $0x48] sm:$0xff]  ;;  %v8350_v33 = vcombine.high %v3956_v12, %v3960_v28 }
 0x244   :  { %v8310_v15 = vcombine.high %v3916_v36, %v3920_v43  ;;  %v8309_v52 = vcombine.low %v3916_v36, %v3920_v43  ;;  %v8311_v54 = vcombine.low %v3917_v45, %v3921_v46  ;;  %v3972_v36 = vld [vmem:[#allocation8 + $0x200] sm:$0xff] }
 0x245   :  { %v3976_v43 = vld [vmem:[#allocation8 + $0x220] sm:$0xff] }
 0x246   :  { %3708 = vmatpush1.bf16.msra.mxu0 %v8257_v49  ;;  %3872 = vmatpush1.bf16.msra.mxu1 %v8259_v50  ;;  %v9295_v49 = vpack.c.bf16 %v3893_v42, %v3893_v42  ;;  %v8312_v50 = vcombine.high %v3917_v45, %v3921_v46  ;;  %v3977_v45 = vld [vmem:[#allocation8 + $0x228] sm:$0xff]  ;;  %v8357_v46 = vcombine.low %v3964_v35, %v3968_v37 }
 0x247   :  { %3709 = vmatprep.subr.bf16.mxu0 %v8266_v25  ;;  %3873 = vmatprep.subr.bf16.mxu1 %v8268_v51  ;;  %v3925_v25 = vld [vmem:[#allocation8 + $0x88] sm:$0xff] }
 0x248   :  { %v3929_v51 = vld [vmem:[#allocation8 + $0xa8] sm:$0xff] }
 0x249   :  { %v8320_v59 = vcombine.high %v3925_v25, %v3929_v51 }
 0x24a   :  { %3710 = vmatpush1.bf16.msra.mxu0 %v8265_v60  ;;  %3874 = vmatpush1.bf16.msra.mxu1 %v8267_v61  ;;  %v3932_v60 = vld [vmem:[#allocation8 + $0xc0] sm:$0xff] }
 0x24b   :  { %3711 = vmatprep.subr.bf16.mxu0 %v8274_v62  ;;  %3875 = vmatprep.subr.bf16.mxu1 %v8276_v63  ;;  %v3936_v61 = vld [vmem:[#allocation8 + $0xe0] sm:$0xff]  ;;  %v3933_v62 = vld [vmem:[#allocation8 + $0xc8] sm:$0xff] }
 0x24c   :  { %v3937_v63 = vld [vmem:[#allocation8 + $0xe8] sm:$0xff]  ;;  %v8326_v1 = vcombine.high %v3932_v60, %v3936_v61 }
 0x24d   :  { %v8328_v39 = vcombine.high %v3933_v62, %v3937_v63  ;;  %v8327_v11 = vcombine.low %v3933_v62, %v3937_v63  ;;  %v3989_v62 = vld [vmem:[#allocation8 + $0x288] sm:$0xff] }
 0x24e   :  { %3712 = vmatpush1.bf16.msra.mxu0 %v8273_v5  ;;  %3876 = vmatpush1.bf16.msra.mxu1 %v8275_v6  ;;  %v3944_v5 = vld [vmem:[#allocation8 + $0x120] sm:$0xff]  ;;  %v3941_v6 = vld [vmem:[#allocation8 + $0x108] sm:$0xff] }
 0x24f   :  { %3713 = vmatprep.subr.bf16.mxu0 %v8282_v7  ;;  %3877 = vmatprep.subr.bf16.mxu1 %v8284_v10  ;;  %v3945_v7 = vld [vmem:[#allocation8 + $0x128] sm:$0xff]  ;;  %v8325_v10 = vcombine.low %v3932_v60, %v3936_v61  ;;  %v8334_v14 = vcombine.high %v3940_v3, %v3944_v5  ;;  %v3988_v60 = vld [vmem:[#allocation8 + $0x280] sm:$0xff] }
 0x250   :  { %v8336_v17 = vcombine.high %v3941_v6, %v3945_v7  ;;  %v8335_v24 = vcombine.low %v3941_v6, %v3945_v7  ;;  %v3992_v61 = vld [vmem:[#allocation8 + $0x2a0] sm:$0xff]  ;;  %v3993_v63 = vld [vmem:[#allocation8 + $0x2a8] sm:$0xff] }
 0x251   :  { %v3997_v6 = vld [vmem:[#allocation8 + $0x2c8] sm:$0xff] }
 0x252   :  { %3714 = vmatpush1.bf16.msra.mxu0 %v8281_v20  ;;  %3878 = vmatpush1.bf16.msra.mxu1 %v8283_v21  ;;  %v3952_v20 = vld [vmem:[#allocation8 + $0x160] sm:$0xff]  ;;  %v3949_v21 = vld [vmem:[#allocation8 + $0x148] sm:$0xff] }
 0x253   :  { %3715 = vmatprep.subr.bf16.mxu0 %v8290_v23  ;;  %3879 = vmatprep.subr.bf16.mxu1 %v8292_v57  ;;  %v3953_v23 = vld [vmem:[#allocation8 + $0x168] sm:$0xff]  ;;  %v8333_v57 = vcombine.low %v3940_v3, %v3944_v5  ;;  %v8342_v26 = vcombine.high %v3948_v18, %v3952_v20  ;;  %v3996_v3 = vld [vmem:[#allocation8 + $0x2c0] sm:$0xff] }
 0x254   :  { %v8344_v27 = vcombine.high %v3949_v21, %v3953_v23  ;;  %v4000_v5 = vld [vmem:[#allocation8 + $0x2e0] sm:$0xff]  ;;  %v4001_v7 = vld [vmem:[#allocation8 + $0x2e8] sm:$0xff] }
 0x256   :  { %3716 = vmatpush1.bf16.msra.mxu0 %v8289_v29  ;;  %3880 = vmatpush1.bf16.msra.mxu1 %v8291_v30  ;;  %v3957_v29 = vld [vmem:[#allocation8 + $0x188] sm:$0xff] }
 0x257   :  { %3717 = vmatprep.subr.bf16.mxu0 %v8298_v31  ;;  %3881 = vmatprep.subr.bf16.mxu1 %v8300_v32  ;;  %v3961_v30 = vld [vmem:[#allocation8 + $0x1a8] sm:$0xff]  ;;  %v8341_v31 = vcombine.low %v3948_v18, %v3952_v20  ;;  %v8343_v32 = vcombine.low %v3949_v21, %v3953_v23  ;;  %v4004_v18 = vld [vmem:[#allocation8 + $0x300] sm:$0xff] }
 0x258   :  { %v8352_v34 = vcombine.high %v3957_v29, %v3961_v30  ;;  %v4008_v20 = vld [vmem:[#allocation8 + $0x320] sm:$0xff]  ;;  %v4005_v21 = vld [vmem:[#allocation8 + $0x308] sm:$0xff] }
 0x259   :  { %v4009_v23 = vld [vmem:[#allocation8 + $0x328] sm:$0xff] }
 0x25a   :  { %3718 = vmatpush1.bf16.msra.mxu0 %v8297_v53  ;;  %3882 = vmatpush1.bf16.msra.mxu1 %v8299_v38  ;;  %v3969_v53 = vld [vmem:[#allocation8 + $0x1e8] sm:$0xff]  ;;  %v8349_v38 = vcombine.low %v3956_v12, %v3960_v28  ;;  %v4012_v12 = vld [vmem:[#allocation8 + $0x340] sm:$0xff] }
 0x25b   :  { %7022 = vmatprep.subr.bf16.mxu0 %v8302_v40  ;;  %7186 = vmatprep.subr.bf16.mxu1 %v8304_v41  ;;  %v8351_v40 = vcombine.low %v3957_v29, %v3961_v30  ;;  %v8358_v41 = vcombine.high %v3964_v35, %v3968_v37  ;;  %v8360_v42 = vcombine.high %v3965_v22, %v3969_v53  ;;  %v4016_v28 = vld [vmem:[#allocation8 + $0x360] sm:$0xff]  ;;  %v4013_v29 = vld [vmem:[#allocation8 + $0x348] sm:$0xff] }
 0x25c   :  { %v4017_v30 = vld [vmem:[#allocation8 + $0x368] sm:$0xff]  ;;  %v4020_v37 = vld [vmem:[#allocation8 + $0x380] sm:$0xff] }
 0x25d   :  { %3720 = vmatmul.mubr.bf16.vlgmr.msra.gmra.mrb[4].mxu0 %v9258_v55  ;;  %3884 = vmatmul.mubr.bf16.vlgmr.msra.gmra.mrb[4].mxu1 %v9258_v55  ;;  %v8319_v55 = vcombine.low %v3925_v25, %v3929_v51  ;;  %v3981_v25 = vld [vmem:[#allocation8 + $0x248] sm:$0xff]  ;;  %v8408_v35 = vcombine.high %v4013_v29, %v4017_v30 }
 0x25e   :  { %7023 = vmatpush1.bf16.msra.mxu0 %v8301_v44  ;;  %7054 = vmatprep.mubr.bf16.mxu0 %v9295_v49  ;;  %v3973_v44 = vld [vmem:[#allocation8 + $0x208] sm:$0xff] }
 0x25f   :  { %7187 = vmatpush1.bf16.msra.mxu1 %v8303_v9  ;;  %7218 = vmatprep.mubr.bf16.mxu1 %v9295_v49  ;;  %v8359_v9 = vcombine.low %v3965_v22, %v3969_v53  ;;  %v8368_v47 = vcombine.high %v3973_v44, %v3977_v45  ;;  %v3985_v51 = vld [vmem:[#allocation8 + $0x268] sm:$0xff]  ;;  %v4024_v22 = vld [vmem:[#allocation8 + $0x3a0] sm:$0xff]  ;;  %v9305_v53 = vsub.s32 3, %v9285_v2 }
 0x260   :  { %7024 = vmatprep.subr.bf16.mxu0 %v8310_v15  ;;  %7188 = vmatprep.subr.bf16.mxu1 %v8312_v50  ;;  %v8366_v15 = vcombine.high %v3972_v36, %v3976_v43  ;;  %v3984_v50 = vld [vmem:[#allocation8 + $0x260] sm:$0xff] }
 0x262   :  { %7025 = vmatpush1.bf16.msra.mxu0 %v8309_v52  ;;  %v8365_v52 = vcombine.low %v3972_v36, %v3976_v43  ;;  %v8407_v36 = vcombine.low %v4013_v29, %v4017_v30  ;;  %v8414_v43 = vcombine.high %v4020_v37, %v4024_v22  ;;  %v4061_v29 = vld [vmem:[#allocation8 + $0x4c8] sm:$0xff] }
 0x263   :  { %7189 = vmatpush1.bf16.msra.mxu1 %v8311_v54  ;;  %7026 = vmatprep.subr.bf16.mxu0 %v8318_v58  ;;  %v8367_v54 = vcombine.low %v3973_v44, %v3977_v45  ;;  %v8374_v58 = vcombine.high %v3980_v48, %v3984_v50  ;;  %v4028_v45 = vld [vmem:[#allocation8 + $0x3c0] sm:$0xff]  ;;  %v4065_v30 = vld [vmem:[#allocation8 + $0x4e8] sm:$0xff] }
 0x264   :  { %7190 = vmatprep.subr.bf16.mxu1 %v8320_v59  ;;  %v8376_v59 = vcombine.high %v3981_v25, %v3985_v51 }
 0x266   :  { %7027 = vmatpush1.bf16.msra.mxu0 %v8317_v0  ;;  %v8373_v0 = vcombine.low %v3980_v48, %v3984_v50  ;;  %v8413_v48 = vcombine.low %v4020_v37, %v4024_v22  ;;  %v4068_v37 = vld [vmem:[#allocation8 + $0x500] sm:$0xff] }
 0x267   :  { %7191 = vmatpush1.bf16.msra.mxu1 %v8319_v55  ;;  %7028 = vmatprep.subr.bf16.mxu0 %v8326_v1  ;;  %v8375_v55 = vcombine.low %v3981_v25, %v3985_v51  ;;  %v8382_v1 = vcombine.high %v3988_v60, %v3992_v61  ;;  %v4072_v22 = vld [vmem:[#allocation8 + $0x520] sm:$0xff] }
 0x268   :  { %7192 = vmatprep.subr.bf16.mxu1 %v8328_v39  ;;  %v8384_v39 = vcombine.high %v3989_v62, %v3993_v63 }
 0x26a   :  { %7029 = vmatpush1.bf16.msra.mxu0 %v8325_v10  ;;  %v8381_v10 = vcombine.low %v3988_v60, %v3992_v61  ;;  %v4037_v60 = vld [vmem:[#allocation8 + $0x408] sm:$0xff] }
 0x26b   :  { %7193 = vmatpush1.bf16.msra.mxu1 %v8327_v11  ;;  %7030 = vmatprep.subr.bf16.mxu0 %v8334_v14  ;;  %v8383_v11 = vcombine.low %v3989_v62, %v3993_v63  ;;  %v8390_v14 = vcombine.high %v3996_v3, %v4000_v5  ;;  %v4041_v61 = vld [vmem:[#allocation8 + $0x428] sm:$0xff] }
 0x26c   :  { %7194 = vmatprep.subr.bf16.mxu1 %v8336_v17  ;;  %v8392_v17 = vcombine.high %v3997_v6, %v4001_v7 }
 0x26e   :  { %7031 = vmatpush1.bf16.msra.mxu0 %v8333_v57  ;;  %v8389_v57 = vcombine.low %v3996_v3, %v4000_v5  ;;  %v4048_v3 = vld [vmem:[#allocation8 + $0x460] sm:$0xff] }
 0x26f   :  { %7195 = vmatpush1.bf16.msra.mxu1 %v8335_v24  ;;  %7032 = vmatprep.subr.bf16.mxu0 %v8342_v26  ;;  %v8391_v24 = vcombine.low %v3997_v6, %v4001_v7  ;;  %v8398_v26 = vcombine.high %v4004_v18, %v4008_v20  ;;  %v4045_v6 = vld [vmem:[#allocation8 + $0x448] sm:$0xff] }
 0x270   :  { %7196 = vmatprep.subr.bf16.mxu1 %v8344_v27  ;;  %v8400_v27 = vcombine.high %v4005_v21, %v4009_v23  ;;  %v4049_v7 = vld [vmem:[#allocation8 + $0x468] sm:$0xff] }
 0x272   :  { %7033 = vmatpush1.bf16.msra.mxu0 %v8341_v31  ;;  %v8397_v31 = vcombine.low %v4004_v18, %v4008_v20  ;;  %v8440_v20 = vcombine.high %v4045_v6, %v4049_v7 }
 0x273   :  { %7197 = vmatpush1.bf16.msra.mxu1 %v8343_v32  ;;  %7034 = vmatprep.subr.bf16.mxu0 %v8350_v33  ;;  %v9302_v32 = vsub.s32 0, %v9285_v2  ;;  %v8399_v33 = vcombine.low %v4005_v21, %v4009_v23  ;;  %v4053_v21 = vld [vmem:[#allocation8 + $0x488] sm:$0xff] }
 0x274   :  { %7198 = vmatprep.subr.bf16.mxu1 %v8352_v34  ;;  %v8406_v34 = vcombine.high %v4012_v12, %v4016_v28  ;;  %v4057_v23 = vld [vmem:[#allocation8 + $0x4a8] sm:$0xff] }
 0x276   :  { %7035 = vmatpush1.bf16.msra.mxu0 %v8349_v38  ;;  %v4021_v38 = vld [vmem:[#allocation8 + $0x388] sm:$0xff] }
 0x277   :  { %7199 = vmatpush1.bf16.msra.mxu1 %v8351_v40  ;;  %7036 = vmatprep.subr.bf16.mxu0 %v8358_v41  ;;  %v4025_v40 = vld [vmem:[#allocation8 + $0x3a8] sm:$0xff]  ;;  %v8405_v41 = vcombine.low %v4012_v12, %v4016_v28  ;;  %v4060_v12 = vld [vmem:[#allocation8 + $0x4c0] sm:$0xff] }
 0x278   :  { %7200 = vmatprep.subr.bf16.mxu1 %v8360_v42  ;;  %v611_v42 = vrot.slane %v9290_v19, %v9302_v32  ;;  %v8416_v44 = vcombine.high %v4021_v38, %v4025_v40  ;;  %v8415_v25 = vcombine.low %v4021_v38, %v4025_v40  ;;  %v4064_v28 = vld [vmem:[#allocation8 + $0x4e0] sm:$0xff]  ;;  %v4069_v38 = vld [vmem:[#allocation8 + $0x508] sm:$0xff] }
 0x279   :  { %v4073_v40 = vld [vmem:[#allocation8 + $0x528] sm:$0xff] }
 0x27a   :  { %7037 = vmatpush1.bf16.msra.mxu0 %v8357_v46  ;;  %v4032_v46 = vld [vmem:[#allocation8 + $0x3e0] sm:$0xff]  ;;  %v8813_v50 = vadd.f32 %v9276_v4, %v611_v42  ;;  %v8432_v4 = vcombine.high %v4037_v60, %v4041_v61  ;;  %v8455_v42 = vcombine.low %v4061_v29, %v4065_v30 }
 0x27b   :  { %7201 = vmatpush1.bf16.msra.mxu1 %v8359_v9  ;;  %7038 = vmatprep.subr.bf16.mxu0 %v8366_v15  ;;  %v623_v9 = vrot.slane %v9290_v19, %v9305_v53  ;;  %v4029_v15 = vld [vmem:[#allocation8 + $0x3c8] sm:$0xff]  ;;  %v8422_v51 = vcombine.high %v4028_v45, %v4032_v46  ;;  %v8421_v62 = vcombine.low %v4028_v45, %v4032_v46  ;;  %v4080_v45 = vld [vmem:[#allocation8 + $0x560] sm:$0xff] }
 0x27c   :  { %7202 = vmatprep.subr.bf16.mxu1 %v8368_v47  ;;  %v4033_v47 = vld [vmem:[#allocation8 + $0x3e8] sm:$0xff]  ;;  %v3892_v63 = vmax.f32 %v8813_v50, 0.0 }
 0x27d   :  { %v4077_v46 = vld [vmem:[#allocation8 + $0x548] sm:$0xff] }
 0x27e   :  { %7039 = vmatpush1.bf16.msra.mxu0 %v8365_v52  ;;  %v8424_v52 = vcombine.high %v4029_v15, %v4033_v47 }
 0x27f   :  { %7203 = vmatpush1.bf16.msra.mxu1 %v8367_v54  ;;  %7040 = vmatprep.subr.bf16.mxu0 %v8374_v58  ;;  %v4036_v54 = vld [vmem:[#allocation8 + $0x400] sm:$0xff] }
 0x280   :  { %7204 = vmatprep.subr.bf16.mxu1 %v8376_v59  ;;  %v4040_v58 = vld [vmem:[#allocation8 + $0x420] sm:$0xff]  ;;  %v8816_v59 = vadd.f32 %v9282_v13, %v623_v9  ;;  %v8431_v13 = vcombine.low %v4037_v60, %v4041_v61  ;;  %v4081_v9 = vld [vmem:[#allocation8 + $0x568] sm:$0xff] }
 0x281   :  { %v8429_v5 = vcombine.low %v4036_v54, %v4040_v58  ;;  %v8472_v50 = vcombine.high %v4077_v46, %v4081_v9 }
 0x282   :  { %7041 = vmatpush1.bf16.msra.mxu0 %v8373_v0  ;;  %v8423_v0 = vcombine.low %v4029_v15, %v4033_v47  ;;  %v8461_v15 = vcombine.low %v4068_v37, %v4072_v22  ;;  %v8463_v47 = vcombine.low %v4069_v38, %v4073_v40 }
 0x283   :  { %7205 = vmatpush1.bf16.msra.mxu1 %v8375_v55  ;;  %7042 = vmatprep.subr.bf16.mxu0 %v8382_v1  ;;  %v8430_v55 = vcombine.high %v4036_v54, %v4040_v58  ;;  %v3895_v1 = vmax.f32 %v8816_v59, 0.0  ;;  %v4089_v54 = vld [vmem:[#allocation8 + $0x5a8] sm:$0xff]  ;;  %v8471_v59 = vcombine.low %v4077_v46, %v4081_v9  ;;  %v4132_v46 = vld [vmem:[#allocation8 + $0x700] sm:$0xff] }
 0x284   :  { %7206 = vmatprep.subr.bf16.mxu1 %v8384_v39  ;;  %v4044_v39 = vld [vmem:[#allocation8 + $0x440] sm:$0xff] }
 0x285   :  { %v9315_v18 = vpack.c.bf16 %v3895_v1, %v3895_v1  ;;  %v4136_v9 = vld [vmem:[#allocation8 + $0x720] sm:$0xff] }
 0x286   :  { %7043 = vmatpush1.bf16.msra.mxu0 %v8381_v10  ;;  %v9313_v10 = vpack.c.bf16 %v3892_v63, %v3892_v63  ;;  %v4096_v63 = vld [vmem:[#allocation8 + $0x5e0] sm:$0xff] }
 0x287   :  { %7207 = vmatpush1.bf16.msra.mxu1 %v8383_v11  ;;  %7044 = vmatprep.subr.bf16.mxu0 %v8390_v14  ;;  %v8438_v11 = vcombine.high %v4044_v39, %v4048_v3  ;;  %v4052_v14 = vld [vmem:[#allocation8 + $0x480] sm:$0xff] }
 0x288   :  { %7208 = vmatprep.subr.bf16.mxu1 %v8392_v17  ;;  %v4056_v17 = vld [vmem:[#allocation8 + $0x4a0] sm:$0xff] }
 0x28a   :  { %7045 = vmatpush1.bf16.msra.mxu0 %v8389_v57  ;;  %v8437_v57 = vcombine.low %v4044_v39, %v4048_v3 }
 0x28b   :  { %7209 = vmatpush1.bf16.msra.mxu1 %v8391_v24  ;;  %7046 = vmatprep.subr.bf16.mxu0 %v8398_v26  ;;  %v8439_v24 = vcombine.low %v4045_v6, %v4049_v7  ;;  %v8446_v26 = vcombine.high %v4052_v14, %v4056_v17  ;;  %v4104_v6 = vld [vmem:[#allocation8 + $0x620] sm:$0xff]  ;;  %v4101_v7 = vld [vmem:[#allocation8 + $0x608] sm:$0xff] }
 0x28c   :  { %7210 = vmatprep.subr.bf16.mxu1 %v8400_v27  ;;  %v8448_v27 = vcombine.high %v4053_v21, %v4057_v23 }
 0x28e   :  { %7047 = vmatpush1.bf16.msra.mxu0 %v8397_v31  ;;  %v8445_v31 = vcombine.low %v4052_v14, %v4056_v17 }
 0x28f   :  { %7211 = vmatpush1.bf16.msra.mxu1 %v8399_v33  ;;  %7048 = vmatprep.subr.bf16.mxu0 %v8406_v34  ;;  %v8447_v33 = vcombine.low %v4053_v21, %v4057_v23  ;;  %v8454_v34 = vcombine.high %v4060_v12, %v4064_v28  ;;  %v4108_v21 = vld [vmem:[#allocation8 + $0x640] sm:$0xff] }
 0x290   :  { %7212 = vmatprep.subr.bf16.mxu1 %v8408_v35  ;;  %v8456_v35 = vcombine.high %v4061_v29, %v4065_v30  ;;  %v4112_v23 = vld [vmem:[#allocation8 + $0x660] sm:$0xff] }
 0x291   :  { %v4116_v29 = vld [vmem:[#allocation8 + $0x680] sm:$0xff] }
 0x292   :  { %7049 = vmatpush1.bf16.msra.mxu0 %v8405_v41  ;;  %v8453_v41 = vcombine.low %v4060_v12, %v4064_v28  ;;  %v8502_v12 = vcombine.high %v4108_v21, %v4112_v23  ;;  %v4120_v30 = vld [vmem:[#allocation8 + $0x6a0] sm:$0xff] }
 0x293   :  { %7213 = vmatpush1.bf16.msra.mxu1 %v8407_v36  ;;  %7050 = vmatprep.subr.bf16.mxu0 %v8414_v43  ;;  %v8462_v36 = vcombine.high %v4068_v37, %v4072_v22  ;;  %v8464_v43 = vcombine.high %v4069_v38, %v4073_v40  ;;  %v8510_v37 = vcombine.high %v4116_v29, %v4120_v30  ;;  %v4124_v38 = vld [vmem:[#allocation8 + $0x6c0] sm:$0xff] }
 0x294   :  { %7214 = vmatprep.subr.bf16.mxu1 %v8416_v44  ;;  %v4076_v44 = vld [vmem:[#allocation8 + $0x540] sm:$0xff] }
 0x295   :  { %v8469_v58 = vcombine.low %v4076_v44, %v4080_v45  ;;  %v4128_v40 = vld [vmem:[#allocation8 + $0x6e0] sm:$0xff] }
 0x296   :  { %7051 = vmatpush1.bf16.msra.mxu0 %v8413_v48  ;;  %v8470_v48 = vcombine.high %v4076_v44, %v4080_v45  ;;  %v8518_v44 = vcombine.high %v4124_v38, %v4128_v40 }
 0x297   :  { %7215 = vmatpush1.bf16.msra.mxu1 %v8415_v25  ;;  %7052 = vmatprep.subr.bf16.mxu0 %v8422_v51  ;;  %v4084_v25 = vld [vmem:[#allocation8 + $0x580] sm:$0xff] }
 0x298   :  { %7216 = vmatprep.subr.bf16.mxu1 %v8424_v52  ;;  %v4088_v51 = vld [vmem:[#allocation8 + $0x5a0] sm:$0xff]  ;;  %v4085_v52 = vld [vmem:[#allocation8 + $0x588] sm:$0xff] }
 0x299   :  { %v8478_v60 = vcombine.high %v4084_v25, %v4088_v51  ;;  %v8480_v61 = vcombine.high %v4085_v52, %v4089_v54  ;;  %v8479_v1 = vcombine.low %v4085_v52, %v4089_v54  ;;  %v4140_v52 = vld [vmem:[#allocation8 + $0x740] sm:$0xff] }
 0x29a   :  { %7053 = vmatpush1.bf16.msra.mxu0 %v8421_v62  ;;  %v4092_v62 = vld [vmem:[#allocation8 + $0x5c0] sm:$0xff] }
 0x29b   :  { %7217 = vmatpush1.bf16.msra.mxu1 %v8423_v0  ;;  %7063 = vmatprep.subr.bf16.mxu0 %v8430_v55  ;;  %v4093_v0 = vld [vmem:[#allocation8 + $0x5c8] sm:$0xff]  ;;  %v8486_v39 = vcombine.high %v4092_v62, %v4096_v63  ;;  %v4144_v54 = vld [vmem:[#allocation8 + $0x760] sm:$0xff] }
 0x29c   :  { %7227 = vmatprep.subr.bf16.mxu1 %v8432_v4  ;;  %v4097_v55 = vld [vmem:[#allocation8 + $0x5e8] sm:$0xff]  ;;  %v8477_v4 = vcombine.low %v4084_v25, %v4088_v51  ;;  %v8526_v25 = vcombine.high %v4132_v46, %v4136_v9 }
 0x29d   :  { %7055 = vmatmul.mubr.bf16.vlgmr.msra.gmra.mrb[8].mxu0 %v9313_v10  ;;  %v8488_v3 = vcombine.high %v4093_v0, %v4097_v55  ;;  %v8487_v14 = vcombine.low %v4093_v0, %v4097_v55  ;;  %v4148_v55 = vld [vmem:[#allocation8 + $0x780] sm:$0xff] }
 0x29e   :  { %7219 = vmatmul.mubr.bf16.vlgmr.msra.gmra.mrb[8].mxu1 %v9313_v10  ;;  %7064 = vmatpush1.bf16.msra.mxu0 %v8429_v5  ;;  %v4100_v5 = vld [vmem:[#allocation8 + $0x600] sm:$0xff] }
 0x29f   :  { %7095 = vmatprep.mubr.bf16.mxu0 %v9315_v18  ;;  %7228 = vmatpush1.bf16.msra.mxu1 %v8431_v13  ;;  %v4105_v13 = vld [vmem:[#allocation8 + $0x628] sm:$0xff]  ;;  %v8494_v17 = vcombine.high %v4100_v5, %v4104_v6 }
 0x2a0   :  { %7259 = vmatprep.mubr.bf16.mxu1 %v9315_v18  ;;  %7065 = vmatprep.subr.bf16.mxu0 %v8438_v11  ;;  %v8485_v11 = vcombine.low %v4092_v62, %v4096_v63  ;;  %v8534_v63 = vcombine.high %v4140_v52, %v4144_v54 }
 0x2a1   :  { %7229 = vmatprep.subr.bf16.mxu1 %v8440_v20  ;;  %v8496_v20 = vcombine.high %v4101_v7, %v4105_v13 }
 0x2a2   :  { %7066 = vmatpush1.bf16.msra.mxu0 %v8437_v57  ;;  %v4109_v57 = vld [vmem:[#allocation8 + $0x648] sm:$0xff] }
 0x2a3   :  { %7230 = vmatpush1.bf16.msra.mxu1 %v8439_v24  ;;  %7067 = vmatprep.subr.bf16.mxu0 %v8446_v26  ;;  %v4113_v24 = vld [vmem:[#allocation8 + $0x668] sm:$0xff]  ;;  %v8493_v26 = vcombine.low %v4100_v5, %v4104_v6 }
 0x2a4   :  { %7231 = vmatprep.subr.bf16.mxu1 %v8448_v27  ;;  %v8495_v27 = vcombine.low %v4101_v7, %v4105_v13  ;;  %v8504_v28 = vcombine.high %v4109_v57, %v4113_v24 }
 0x2a6   :  { %7068 = vmatpush1.bf16.msra.mxu0 %v8445_v31  ;;  %v4117_v31 = vld [vmem:[#allocation8 + $0x688] sm:$0xff] }
 0x2a7   :  { %7232 = vmatpush1.bf16.msra.mxu1 %v8447_v33  ;;  %7069 = vmatprep.subr.bf16.mxu0 %v8454_v34  ;;  %v4121_v33 = vld [vmem:[#allocation8 + $0x6a8] sm:$0xff]  ;;  %v8501_v34 = vcombine.low %v4108_v21, %v4112_v23 }
 0x2a8   :  { %7233 = vmatprep.subr.bf16.mxu1 %v8456_v35  ;;  %v8503_v35 = vcombine.low %v4109_v57, %v4113_v24  ;;  %v8512_v22 = vcombine.high %v4117_v31, %v4121_v33 }
 0x2aa   :  { %7070 = vmatpush1.bf16.msra.mxu0 %v8453_v41  ;;  %v4125_v41 = vld [vmem:[#allocation8 + $0x6c8] sm:$0xff] }
 0x2ab   :  { %7234 = vmatpush1.bf16.msra.mxu1 %v8455_v42  ;;  %7071 = vmatprep.subr.bf16.mxu0 %v8462_v36  ;;  %v4129_v42 = vld [vmem:[#allocation8 + $0x6e8] sm:$0xff]  ;;  %v8509_v36 = vcombine.low %v4116_v29, %v4120_v30 }
 0x2ac   :  { %7235 = vmatprep.subr.bf16.mxu1 %v8464_v43  ;;  %v8511_v43 = vcombine.low %v4117_v31, %v4121_v33  ;;  %v8520_v45 = vcombine.high %v4125_v41, %v4129_v42 }
 0x2ae   :  { %7072 = vmatpush1.bf16.msra.mxu0 %v8461_v15  ;;  %v4133_v15 = vld [vmem:[#allocation8 + $0x708] sm:$0xff] }
 0x2af   :  { %7236 = vmatpush1.bf16.msra.mxu1 %v8463_v47  ;;  %7073 = vmatprep.subr.bf16.mxu0 %v8470_v48  ;;  %v4137_v47 = vld [vmem:[#allocation8 + $0x728] sm:$0xff]  ;;  %v8517_v48 = vcombine.low %v4124_v38, %v4128_v40 }
 0x2b0   :  { %7237 = vmatprep.subr.bf16.mxu1 %v8472_v50  ;;  %v8519_v50 = vcombine.low %v4125_v41, %v4129_v42  ;;  %v8528_v51 = vcombine.high %v4133_v15, %v4137_v47  ;;  %v8527_v62 = vcombine.low %v4133_v15, %v4137_v47 }
 0x2b2   :  { %7074 = vmatpush1.bf16.msra.mxu0 %v8469_v58  ;;  %v4141_v58 = vld [vmem:[#allocation8 + $0x748] sm:$0xff] }
 0x2b3   :  { %7238 = vmatpush1.bf16.msra.mxu1 %v8471_v59  ;;  %7075 = vmatprep.subr.bf16.mxu0 %v8478_v60  ;;  %v4145_v59 = vld [vmem:[#allocation8 + $0x768] sm:$0xff]  ;;  %v8525_v60 = vcombine.low %v4132_v46, %v4136_v9 }
 0x2b4   :  { %7239 = vmatprep.subr.bf16.mxu1 %v8480_v61  ;;  %v9322_v61 = vsub.s32 2, %v9285_v2  ;;  %v8536_v0 = vcombine.high %v4141_v58, %v4145_v59  ;;  %v8535_v6 = vcombine.low %v4141_v58, %v4145_v59  ;;  %v4185_v46 = vld [vmem:[#allocation8 + $0x8a8] sm:$0xff] }
 0x2b6   :  { %7076 = vmatpush1.bf16.msra.mxu0 %v8477_v4  ;;  %v4152_v4 = vld [vmem:[#allocation8 + $0x7a0] sm:$0xff]  ;;  %v619_v5 = vrot.slane %v9290_v19, %v9322_v61 }
 0x2b7   :  { %7240 = vmatpush1.bf16.msra.mxu1 %v8479_v1  ;;  %7077 = vmatprep.subr.bf16.mxu0 %v8486_v39  ;;  %v4149_v1 = vld [vmem:[#allocation8 + $0x788] sm:$0xff]  ;;  %v8542_v7 = vcombine.high %v4148_v55, %v4152_v4  ;;  %v8541_v21 = vcombine.low %v4148_v55, %v4152_v4 }
 0x2b8   :  { %7241 = vmatprep.subr.bf16.mxu1 %v8488_v3  ;;  %v4153_v39 = vld [vmem:[#allocation8 + $0x7a8] sm:$0xff]  ;;  %v8533_v3 = vcombine.low %v4140_v52, %v4144_v54  ;;  %v8815_v23 = vadd.f32 %v9278_v8, %v619_v5  ;;  %v4172_v8 = vld [vmem:[#allocation8 + $0x840] sm:$0xff] }
 0x2b9   :  { %v8544_v13 = vcombine.high %v4149_v1, %v4153_v39  ;;  %v8543_v57 = vcombine.low %v4149_v1, %v4153_v39  ;;  %v4193_v52 = vld [vmem:[#allocation8 + $0x8e8] sm:$0xff]  ;;  %v4204_v5 = vld [vmem:[#allocation8 + $0x940] sm:$0xff] }
 0x2ba   :  { %7078 = vmatpush1.bf16.msra.mxu0 %v8485_v11  ;;  %v4156_v11 = vld [vmem:[#allocation8 + $0x7c0] sm:$0xff]  ;;  %v3894_v30 = vmax.f32 %v8815_v23, 0.0  ;;  %v4201_v55 = vld [vmem:[#allocation8 + $0x928] sm:$0xff] }
 0x2bb   :  { %7242 = vmatpush1.bf16.msra.mxu1 %v8487_v14  ;;  %7079 = vmatprep.subr.bf16.mxu0 %v8494_v17  ;;  %v4160_v14 = vld [vmem:[#allocation8 + $0x7e0] sm:$0xff]  ;;  %v4157_v17 = vld [vmem:[#allocation8 + $0x7c8] sm:$0xff] }
 0x2bc   :  { %7243 = vmatprep.subr.bf16.mxu1 %v8496_v20  ;;  %v4161_v20 = vld [vmem:[#allocation8 + $0x7e8] sm:$0xff]  ;;  %v8550_v24 = vcombine.high %v4156_v11, %v4160_v14  ;;  %v8549_v29 = vcombine.low %v4156_v11, %v4160_v14  ;;  %v9327_v40 = vpack.c.bf16 %v3894_v30, %v3894_v30  ;;  %v4216_v23 = vld [vmem:[#allocation8 + $0x9a0] sm:$0xff] }
 0x2bd   :  { %v8552_v19 = vcombine.high %v4157_v17, %v4161_v20  ;;  %v8551_v31 = vcombine.low %v4157_v17, %v4161_v20  ;;  %v4221_v30 = vld [vmem:[#allocation8 + $0x9c8] sm:$0xff] }
 0x2be   :  { %7080 = vmatpush1.bf16.msra.mxu0 %v8493_v26  ;;  %v4164_v26 = vld [vmem:[#allocation8 + $0x800] sm:$0xff] }
 0x2bf   :  { %7244 = vmatpush1.bf16.msra.mxu1 %v8495_v27  ;;  %7081 = vmatprep.subr.bf16.mxu0 %v8502_v12  ;;  %v4168_v27 = vld [vmem:[#allocation8 + $0x820] sm:$0xff]  ;;  %v4165_v12 = vld [vmem:[#allocation8 + $0x808] sm:$0xff] }
 0x2c0   :  { %7245 = vmatprep.subr.bf16.mxu1 %v8504_v28  ;;  %v4169_v28 = vld [vmem:[#allocation8 + $0x828] sm:$0xff]  ;;  %v8558_v33 = vcombine.high %v4164_v26, %v4168_v27  ;;  %v8557_v38 = vcombine.low %v4164_v26, %v4168_v27 }
 0x2c1   :  { %v8559_v41 = vcombine.low %v4165_v12, %v4169_v28 }
 0x2c2   :  { %7082 = vmatpush1.bf16.msra.mxu0 %v8501_v34  ;;  %v8560_v34 = vcombine.high %v4165_v12, %v4169_v28  ;;  %v4220_v28 = vld [vmem:[#allocation8 + $0x9c0] sm:$0xff] }
 0x2c3   :  { %7246 = vmatpush1.bf16.msra.mxu1 %v8503_v35  ;;  %7083 = vmatprep.subr.bf16.mxu0 %v8510_v37  ;;  %v4176_v35 = vld [vmem:[#allocation8 + $0x860] sm:$0xff]  ;;  %v4173_v37 = vld [vmem:[#allocation8 + $0x848] sm:$0xff] }
 0x2c4   :  { %7247 = vmatprep.subr.bf16.mxu1 %v8512_v22  ;;  %v4177_v22 = vld [vmem:[#allocation8 + $0x868] sm:$0xff]  ;;  %v8566_v42 = vcombine.high %v4172_v8, %v4176_v35  ;;  %v8565_v9 = vcombine.low %v4172_v8, %v4176_v35 }
 0x2c5   :  { %v8567_v15 = vcombine.low %v4173_v37, %v4177_v22 }
 0x2c6   :  { %7084 = vmatpush1.bf16.msra.mxu0 %v8509_v36  ;;  %v8568_v36 = vcombine.high %v4173_v37, %v4177_v22  ;;  %v4228_v37 = vld [vmem:[#allocation8 + $0xa00] sm:$0xff] }
 0x2c7   :  { %7248 = vmatpush1.bf16.msra.mxu1 %v8511_v43  ;;  %7085 = vmatprep.subr.bf16.mxu0 %v8518_v44  ;;  %v4180_v43 = vld [vmem:[#allocation8 + $0x880] sm:$0xff] }
 0x2c8   :  { %7249 = vmatprep.subr.bf16.mxu1 %v8520_v45  ;;  %v4184_v44 = vld [vmem:[#allocation8 + $0x8a0] sm:$0xff]  ;;  %v4181_v45 = vld [vmem:[#allocation8 + $0x888] sm:$0xff] }
 0x2c9   :  { %v8574_v47 = vcombine.high %v4180_v43, %v4184_v44  ;;  %v8573_v54 = vcombine.low %v4180_v43, %v4184_v44  ;;  %v8575_v58 = vcombine.low %v4181_v45, %v4185_v46  ;;  %v4232_v22 = vld [vmem:[#allocation8 + $0xa20] sm:$0xff] }
 0x2ca   :  { %7086 = vmatpush1.bf16.msra.mxu0 %v8517_v48  ;;  %v8576_v48 = vcombine.high %v4181_v45, %v4185_v46  ;;  %v8622_v43 = vcombine.high %v4228_v37, %v4232_v22  ;;  %v4236_v45 = vld [vmem:[#allocation8 + $0xa40] sm:$0xff] }
 0x2cb   :  { %7250 = vmatpush1.bf16.msra.mxu1 %v8519_v50  ;;  %7087 = vmatprep.subr.bf16.mxu0 %v8526_v25  ;;  %v4188_v50 = vld [vmem:[#allocation8 + $0x8c0] sm:$0xff] }
 0x2cc   :  { %7251 = vmatprep.subr.bf16.mxu1 %v8528_v51  ;;  %v4192_v25 = vld [vmem:[#allocation8 + $0x8e0] sm:$0xff]  ;;  %v4189_v51 = vld [vmem:[#allocation8 + $0x8c8] sm:$0xff] }
 0x2cd   :  { %v8582_v59 = vcombine.high %v4188_v50, %v4192_v25  ;;  %v8581_v4 = vcombine.low %v4188_v50, %v4192_v25  ;;  %v8583_v1 = vcombine.low %v4189_v51, %v4193_v52  ;;  %v4240_v46 = vld [vmem:[#allocation8 + $0xa60] sm:$0xff] }
 0x2ce   :  { %7088 = vmatpush1.bf16.msra.mxu0 %v8525_v60  ;;  %v8584_v60 = vcombine.high %v4189_v51, %v4193_v52  ;;  %v8630_v50 = vcombine.high %v4236_v45, %v4240_v46  ;;  %v4244_v51 = vld [vmem:[#allocation8 + $0xa80] sm:$0xff] }
 0x2cf   :  { %7252 = vmatpush1.bf16.msra.mxu1 %v8527_v62  ;;  %7089 = vmatprep.subr.bf16.mxu0 %v8534_v63  ;;  %v4196_v62 = vld [vmem:[#allocation8 + $0x900] sm:$0xff] }
 0x2d0   :  { %7253 = vmatprep.subr.bf16.mxu1 %v8536_v0  ;;  %v4200_v63 = vld [vmem:[#allocation8 + $0x920] sm:$0xff]  ;;  %v4197_v0 = vld [vmem:[#allocation8 + $0x908] sm:$0xff] }
 0x2d1   :  { %v8590_v39 = vcombine.high %v4196_v62, %v4200_v63  ;;  %v8589_v11 = vcombine.low %v4196_v62, %v4200_v63  ;;  %v8591_v14 = vcombine.low %v4197_v0, %v4201_v55  ;;  %v4248_v52 = vld [vmem:[#allocation8 + $0xaa0] sm:$0xff] }
 0x2d2   :  { %7090 = vmatpush1.bf16.msra.mxu0 %v8533_v3  ;;  %v8592_v3 = vcombine.high %v4197_v0, %v4201_v55  ;;  %v8638_v62 = vcombine.high %v4244_v51, %v4248_v52  ;;  %v4252_v0 = vld [vmem:[#allocation8 + $0xac0] sm:$0xff] }
 0x2d3   :  { %7254 = vmatpush1.bf16.msra.mxu1 %v8535_v6  ;;  %7091 = vmatprep.subr.bf16.mxu0 %v8542_v7  ;;  %v4208_v6 = vld [vmem:[#allocation8 + $0x960] sm:$0xff]  ;;  %v4205_v7 = vld [vmem:[#allocation8 + $0x948] sm:$0xff] }
 0x2d4   :  { %7255 = vmatprep.subr.bf16.mxu1 %v8544_v13  ;;  %v4209_v13 = vld [vmem:[#allocation8 + $0x968] sm:$0xff]  ;;  %v8598_v17 = vcombine.high %v4204_v5, %v4208_v6  ;;  %v4256_v55 = vld [vmem:[#allocation8 + $0xae0] sm:$0xff] }
 0x2d5   :  { %v8600_v20 = vcombine.high %v4205_v7, %v4209_v13  ;;  %v8599_v26 = vcombine.low %v4205_v7, %v4209_v13  ;;  %v4260_v7 = vld [vmem:[#allocation8 + $0xb00] sm:$0xff] }
 0x2d6   :  { %7092 = vmatpush1.bf16.msra.mxu0 %v8541_v21  ;;  %v4212_v21 = vld [vmem:[#allocation8 + $0x980] sm:$0xff] }
 0x2d7   :  { %7256 = vmatpush1.bf16.msra.mxu1 %v8543_v57  ;;  %7093 = vmatprep.subr.bf16.mxu0 %v8550_v24  ;;  %v4213_v57 = vld [vmem:[#allocation8 + $0x988] sm:$0xff]  ;;  %v8606_v27 = vcombine.high %v4212_v21, %v4216_v23  ;;  %v4264_v13 = vld [vmem:[#allocation8 + $0xb20] sm:$0xff] }
 0x2d8   :  { %7257 = vmatprep.subr.bf16.mxu1 %v8552_v19  ;;  %v4217_v24 = vld [vmem:[#allocation8 + $0x9a8] sm:$0xff]  ;;  %v8597_v19 = vcombine.low %v4204_v5, %v4208_v6  ;;  %v8646_v5 = vcombine.high %v4252_v0, %v4256_v55 }
 0x2d9   :  { %v8608_v12 = vcombine.high %v4213_v57, %v4217_v24 }
 0x2da   :  { %7094 = vmatpush1.bf16.msra.mxu0 %v8549_v29  ;;  %v4224_v29 = vld [vmem:[#allocation8 + $0x9e0] sm:$0xff] }
 0x2db   :  { %7258 = vmatpush1.bf16.msra.mxu1 %v8551_v31  ;;  %7104 = vmatprep.subr.bf16.mxu0 %v8558_v33  ;;  %v4225_v31 = vld [vmem:[#allocation8 + $0x9e8] sm:$0xff]  ;;  %v8605_v33 = vcombine.low %v4212_v21, %v4216_v23  ;;  %v8614_v8 = vcombine.high %v4220_v28, %v4224_v29  ;;  %v8654_v21 = vcombine.high %v4260_v7, %v4264_v13 }
 0x2dc   :  { %7268 = vmatprep.subr.bf16.mxu1 %v8560_v34  ;;  %v8607_v34 = vcombine.low %v4213_v57, %v4217_v24  ;;  %v8616_v35 = vcombine.high %v4221_v30, %v4225_v31  ;;  %v4268_v57 = vld [vmem:[#allocation8 + $0xb40] sm:$0xff] }
 0x2dd   :  { %7096 = vmatmul.mubr.bf16.vlgmr.msra.gmra.mrb[8].mxu0 %v9327_v40  ;;  %v4272_v24 = vld [vmem:[#allocation8 + $0xb60] sm:$0xff] }
 0x2de   :  { %7260 = vmatmul.mubr.bf16.vlgmr.msra.gmra.mrb[8].mxu1 %v9327_v40  ;;  %7105 = vmatpush1.bf16.msra.mxu0 %v8557_v38  ;;  %v4229_v38 = vld [vmem:[#allocation8 + $0xa08] sm:$0xff] }
 0x2df   :  { %7269 = vmatpush1.bf16.msra.mxu1 %v8559_v41  ;;  %7106 = vmatprep.subr.bf16.mxu0 %v8566_v42  ;;  %v4233_v41 = vld [vmem:[#allocation8 + $0xa28] sm:$0xff]  ;;  %v8613_v42 = vcombine.low %v4220_v28, %v4224_v29  ;;  %v8662_v28 = vcombine.high %v4268_v57, %v4272_v24 }
 0x2e0   :  { %7270 = vmatprep.subr.bf16.mxu1 %v8568_v36  ;;  %v8615_v36 = vcombine.low %v4221_v30, %v4225_v31  ;;  %v8624_v44 = vcombine.high %v4229_v38, %v4233_v41  ;;  %v4276_v30 = vld [vmem:[#allocation8 + $0xb80] sm:$0xff] }
 0x2e1   :  { %v4280_v31 = vld [vmem:[#allocation8 + $0xba0] sm:$0xff] }
 0x2e2   :  { %7107 = vmatpush1.bf16.msra.mxu0 %v8565_v9  ;;  %v4237_v9 = vld [vmem:[#allocation8 + $0xa48] sm:$0xff] }
 0x2e3   :  { %7271 = vmatpush1.bf16.msra.mxu1 %v8567_v15  ;;  %7108 = vmatprep.subr.bf16.mxu0 %v8574_v47  ;;  %v4241_v15 = vld [vmem:[#allocation8 + $0xa68] sm:$0xff]  ;;  %v8621_v47 = vcombine.low %v4228_v37, %v4232_v22  ;;  %v8670_v37 = vcombine.high %v4276_v30, %v4280_v31 }
 0x2e4   :  { %7272 = vmatprep.subr.bf16.mxu1 %v8576_v48  ;;  %v8623_v48 = vcombine.low %v4229_v38, %v4233_v41  ;;  %v8632_v25 = vcombine.high %v4237_v9, %v4241_v15  ;;  %v4284_v38 = vld [vmem:[#allocation8 + $0xbc0] sm:$0xff] }
 0x2e5   :  { %v4288_v41 = vld [vmem:[#allocation8 + $0xbe0] sm:$0xff] }
 0x2e6   :  { %7109 = vmatpush1.bf16.msra.mxu0 %v8573_v54  ;;  %v4245_v54 = vld [vmem:[#allocation8 + $0xa88] sm:$0xff] }
 0x2e7   :  { %7273 = vmatpush1.bf16.msra.mxu1 %v8575_v58  ;;  %7110 = vmatprep.subr.bf16.mxu0 %v8582_v59  ;;  %v4249_v58 = vld [vmem:[#allocation8 + $0xaa8] sm:$0xff]  ;;  %v8629_v59 = vcombine.low %v4236_v45, %v4240_v46  ;;  %v8678_v45 = vcombine.high %v4284_v38, %v4288_v41 }
 0x2e8   :  { %7274 = vmatprep.subr.bf16.mxu1 %v8584_v60  ;;  %v8631_v60 = vcombine.low %v4237_v9, %v4241_v15  ;;  %v8640_v63 = vcombine.high %v4245_v54, %v4249_v58  ;;  %v4292_v9 = vld [vmem:[#allocation8 + $0xc00] sm:$0xff] }
 0x2e9   :  { %v4296_v15 = vld [vmem:[#allocation8 + $0xc20] sm:$0xff] }
 0x2ea   :  { %7111 = vmatpush1.bf16.msra.mxu0 %v8581_v4  ;;  %v4253_v4 = vld [vmem:[#allocation8 + $0xac8] sm:$0xff] }
 0x2eb   :  { %7275 = vmatpush1.bf16.msra.mxu1 %v8583_v1  ;;  %7112 = vmatprep.subr.bf16.mxu0 %v8590_v39  ;;  %v4257_v1 = vld [vmem:[#allocation8 + $0xae8] sm:$0xff]  ;;  %v8637_v39 = vcombine.low %v4244_v51, %v4248_v52  ;;  %v8686_v51 = vcombine.high %v4292_v9, %v4296_v15 }
 0x2ec   :  { %7276 = vmatprep.subr.bf16.mxu1 %v8592_v3  ;;  %v8639_v3 = vcombine.low %v4245_v54, %v4249_v58  ;;  %v8648_v6 = vcombine.high %v4253_v4, %v4257_v1  ;;  %v9332_v54 = vsub.s32 4, %v9285_v2  ;;  %v9335_v58 = vsub.s32 5, %v9285_v2 }
 0x2ee   :  { %7113 = vmatpush1.bf16.msra.mxu0 %v8589_v11  ;;  %v4261_v11 = vld [vmem:[#allocation8 + $0xb08] sm:$0xff] }
 0x2ef   :  { %7277 = vmatpush1.bf16.msra.mxu1 %v8591_v14  ;;  %7114 = vmatprep.subr.bf16.mxu0 %v8598_v17  ;;  %v4265_v14 = vld [vmem:[#allocation8 + $0xb28] sm:$0xff]  ;;  %v8645_v17 = vcombine.low %v4252_v0, %v4256_v55 }
 0x2f0   :  { %7278 = vmatprep.subr.bf16.mxu1 %v8600_v20  ;;  %v8647_v20 = vcombine.low %v4253_v4, %v4257_v1  ;;  %v8656_v23 = vcombine.high %v4261_v11, %v4265_v14 }
 0x2f2   :  { %7115 = vmatpush1.bf16.msra.mxu0 %v8597_v19  ;;  %v4269_v19 = vld [vmem:[#allocation8 + $0xb48] sm:$0xff] }
 0x2f3   :  { %7279 = vmatpush1.bf16.msra.mxu1 %v8599_v26  ;;  %7116 = vmatprep.subr.bf16.mxu0 %v8606_v27  ;;  %v4273_v26 = vld [vmem:[#allocation8 + $0xb68] sm:$0xff]  ;;  %v8653_v27 = vcombine.low %v4260_v7, %v4264_v13 }
 0x2f4   :  { %7280 = vmatprep.subr.bf16.mxu1 %v8608_v12  ;;  %v8655_v12 = vcombine.low %v4261_v11, %v4265_v14  ;;  %v8664_v29 = vcombine.high %v4269_v19, %v4273_v26 }
 0x2f6   :  { %7117 = vmatpush1.bf16.msra.mxu0 %v8605_v33  ;;  %v4277_v33 = vld [vmem:[#allocation8 + $0xb88] sm:$0xff] }
 0x2f7   :  { %7281 = vmatpush1.bf16.msra.mxu1 %v8607_v34  ;;  %7118 = vmatprep.subr.bf16.mxu0 %v8614_v8  ;;  %v4281_v34 = vld [vmem:[#allocation8 + $0xba8] sm:$0xff]  ;;  %v8661_v8 = vcombine.low %v4268_v57, %v4272_v24  ;;  %v4304_v57 = vld [vmem:[#allocation8 + $0xc60] sm:$0xff] }
 0x2f8   :  { %7282 = vmatprep.subr.bf16.mxu1 %v8616_v35  ;;  %v8663_v35 = vcombine.low %v4269_v19, %v4273_v26  ;;  %v8672_v22 = vcombine.high %v4277_v33, %v4281_v34  ;;  %v4301_v24 = vld [vmem:[#allocation8 + $0xc48] sm:$0xff] }
 0x2f9   :  { %v4305_v19 = vld [vmem:[#allocation8 + $0xc68] sm:$0xff] }
 0x2fa   :  { %7119 = vmatpush1.bf16.msra.mxu0 %v8613_v42  ;;  %v4285_v42 = vld [vmem:[#allocation8 + $0xbc8] sm:$0xff] }
 0x2fb   :  { %7283 = vmatpush1.bf16.msra.mxu1 %v8615_v36  ;;  %7120 = vmatprep.subr.bf16.mxu0 %v8622_v43  ;;  %v4289_v36 = vld [vmem:[#allocation8 + $0xbe8] sm:$0xff]  ;;  %v8669_v43 = vcombine.low %v4276_v30, %v4280_v31  ;;  %v8696_v31 = vcombine.high %v4301_v24, %v4305_v19 }
 0x2fc   :  { %7284 = vmatprep.subr.bf16.mxu1 %v8624_v44  ;;  %v8671_v44 = vcombine.low %v4277_v33, %v4281_v34  ;;  %v8680_v46 = vcombine.high %v4285_v42, %v4289_v36  ;;  %v4312_v33 = vld [vmem:[#allocation8 + $0xca0] sm:$0xff]  ;;  %v4309_v34 = vld [vmem:[#allocation8 + $0xc88] sm:$0xff] }
 0x2fe   :  { %7121 = vmatpush1.bf16.msra.mxu0 %v8621_v47  ;;  %v4293_v47 = vld [vmem:[#allocation8 + $0xc08] sm:$0xff] }
 0x2ff   :  { %7285 = vmatpush1.bf16.msra.mxu1 %v8623_v48  ;;  %7122 = vmatprep.subr.bf16.mxu0 %v8630_v50  ;;  %v4297_v48 = vld [vmem:[#allocation8 + $0xc28] sm:$0xff]  ;;  %v8677_v50 = vcombine.low %v4284_v38, %v4288_v41 }
 0x300   :  { %7286 = vmatprep.subr.bf16.mxu1 %v8632_v25  ;;  %v8679_v25 = vcombine.low %v4285_v42, %v4289_v36  ;;  %v8688_v52 = vcombine.high %v4293_v47, %v4297_v48  ;;  %v4316_v42 = vld [vmem:[#allocation8 + $0xcc0] sm:$0xff] }
 0x301   :  { %v4320_v36 = vld [vmem:[#allocation8 + $0xce0] sm:$0xff] }
 0x302   :  { %7123 = vmatpush1.bf16.msra.mxu0 %v8629_v59  ;;  %v9338_v59 = vsub.s32 7, %v9285_v2 }
 0x303   :  { %7287 = vmatpush1.bf16.msra.mxu1 %v8631_v60  ;;  %7124 = vmatprep.subr.bf16.mxu0 %v8638_v62  ;;  %v9340_v60 = vld [vmem:[#allocation6] sm:$0xff] }
 0x304   :  { %7288 = vmatprep.subr.bf16.mxu1 %v8640_v63  ;;  %v627_v62 = vrot.slane %v9340_v60, %v9332_v54  ;;  %v631_v63 = vrot.slane %v9340_v60, %v9335_v58  ;;  %v639_v0 = vrot.slane %v9340_v60, %v9338_v59 }
 0x306   :  { %7125 = vmatpush1.bf16.msra.mxu0 %v8637_v39 }
 0x307   :  { %7289 = vmatpush1.bf16.msra.mxu1 %v8639_v3  ;;  %7126 = vmatprep.subr.bf16.mxu0 %v8646_v5 }
 0x308   :  { %7290 = vmatprep.subr.bf16.mxu1 %v8648_v6 }
 0x30a   :  { %7127 = vmatpush1.bf16.msra.mxu0 %v8645_v17 }
 0x30b   :  { %7291 = vmatpush1.bf16.msra.mxu1 %v8647_v20  ;;  %7128 = vmatprep.subr.bf16.mxu0 %v8654_v21  ;;  %v4300_v21 = vld [vmem:[#allocation8 + $0xc40] sm:$0xff] }
 0x30c   :  { %7292 = vmatprep.subr.bf16.mxu1 %v8656_v23  ;;  %v8694_v30 = vcombine.high %v4300_v21, %v4304_v57 }
 0x30e   :  { %7129 = vmatpush1.bf16.msra.mxu0 %v8653_v27  ;;  %v8685_v27 = vcombine.low %v4292_v9, %v4296_v15  ;;  %v8710_v9 = vcombine.high %v4316_v42, %v4320_v36 }
 0x30f   :  { %7293 = vmatpush1.bf16.msra.mxu1 %v8655_v12  ;;  %7130 = vmatprep.subr.bf16.mxu0 %v8662_v28  ;;  %v8687_v12 = vcombine.low %v4293_v47, %v4297_v48  ;;  %v4324_v47 = vld [vmem:[#allocation8 + $0xd00] sm:$0xff] }
 0x310   :  { %7294 = vmatprep.subr.bf16.mxu1 %v8664_v29  ;;  %v4308_v29 = vld [vmem:[#allocation8 + $0xc80] sm:$0xff] }
 0x311   :  { %v8702_v38 = vcombine.high %v4308_v29, %v4312_v33  ;;  %v4328_v48 = vld [vmem:[#allocation8 + $0xd20] sm:$0xff] }
 0x312   :  { %7131 = vmatpush1.bf16.msra.mxu0 %v8661_v8  ;;  %v4313_v8 = vld [vmem:[#allocation8 + $0xca8] sm:$0xff] }
 0x313   :  { %7295 = vmatpush1.bf16.msra.mxu1 %v8663_v35  ;;  %7132 = vmatprep.subr.bf16.mxu0 %v8670_v37  ;;  %v8693_v37 = vcombine.low %v4300_v21, %v4304_v57  ;;  %v8704_v41 = vcombine.high %v4309_v34, %v4313_v8 }
 0x314   :  { %7296 = vmatprep.subr.bf16.mxu1 %v8672_v22  ;;  %v8695_v22 = vcombine.low %v4301_v24, %v4305_v19  ;;  %v4348_v24 = vld [vmem:[#allocation8 + $0xdc0] sm:$0xff] }
 0x315   :  { %v4352_v19 = vld [vmem:[#allocation8 + $0xde0] sm:$0xff] }
 0x316   :  { %7133 = vmatpush1.bf16.msra.mxu0 %v8669_v43  ;;  %v4317_v43 = vld [vmem:[#allocation8 + $0xcc8] sm:$0xff] }
 0x317   :  { %7297 = vmatpush1.bf16.msra.mxu1 %v8671_v44  ;;  %7134 = vmatprep.subr.bf16.mxu0 %v8678_v45  ;;  %v4321_v44 = vld [vmem:[#allocation8 + $0xce8] sm:$0xff]  ;;  %v8701_v45 = vcombine.low %v4308_v29, %v4312_v33 }
 0x318   :  { %7298 = vmatprep.subr.bf16.mxu1 %v8680_v46  ;;  %v8703_v46 = vcombine.low %v4309_v34, %v4313_v8  ;;  %v8712_v15 = vcombine.high %v4317_v43, %v4321_v44  ;;  %v4356_v34 = vld [vmem:[#allocation8 + $0xe00] sm:$0xff] }
 0x319   :  { %v4360_v8 = vld [vmem:[#allocation8 + $0xe20] sm:$0xff] }
 0x31a   :  { %7135 = vmatpush1.bf16.msra.mxu0 %v8677_v50  ;;  %v4325_v50 = vld [vmem:[#allocation8 + $0xd08] sm:$0xff] }
 0x31b   :  { %7299 = vmatpush1.bf16.msra.mxu1 %v8679_v25  ;;  %7145 = vmatprep.subr.bf16.mxu0 %v8686_v51  ;;  %v4329_v25 = vld [vmem:[#allocation8 + $0xd28] sm:$0xff]  ;;  %v8709_v51 = vcombine.low %v4316_v42, %v4320_v36  ;;  %v8750_v42 = vcombine.high %v4356_v34, %v4360_v8 }
 0x31c   :  { %7309 = vmatprep.subr.bf16.mxu1 %v8688_v52  ;;  %v8711_v52 = vcombine.low %v4317_v43, %v4321_v44  ;;  %v4364_v43 = vld [vmem:[#allocation8 + $0xe40] sm:$0xff] }
 0x31d   :  { %v4368_v44 = vld [vmem:[#allocation8 + $0xe60] sm:$0xff] }
 0x330   :  { %v3721_v55 = vpop.f32.mrb[4].mxu0  ;;  %v9348_v1 = vpop.f32.mrb[4].mxu1 }
 0x331   :  { %v8817_v4 = vadd.f32 %v3721_v55, %v627_v62  ;;  %v3723_v39 = vpop.f32.mrb[5].mxu0  ;;  %v3887_v5 = vpop.f32.mrb[5].mxu1  ;;  %v8718_v62 = vcombine.high %v4324_v47, %v4328_v48  ;;  %v4336_v55 = vld [vmem:[#allocation8 + $0xd60] sm:$0xff] }
 0x332   :  { %v8818_v3 = vadd.f32 %v3723_v39, %v631_v63  ;;  %v3725_v6 = vpop.f32.mrb[6].mxu0  ;;  %v8820_v13 = vadd.f32 %v3887_v5, %v639_v0  ;;  %v3889_v11 = vpop.f32.mrb[6].mxu1  ;;  %v8720_v63 = vcombine.high %v4325_v50, %v4329_v25  ;;  %v4332_v0 = vld [vmem:[#allocation8 + $0xd40] sm:$0xff]  ;;  %v4337_v39 = vld [vmem:[#allocation8 + $0xd68] sm:$0xff]  ;;  %v8719_v5 = vcombine.low %v4325_v50, %v4329_v25 }
 0x333   :  { %v3896_v7 = vmax.f32 %v8817_v4, 0.0  ;;  %v3726_v14 = vpop.f32.mrb[7].mxu0  ;;  %v3890_v20 = vpop.f32.mrb[7].mxu1  ;;  %v4333_v4 = vld [vmem:[#allocation8 + $0xd48] sm:$0xff]  ;;  %v8726_v6 = vcombine.high %v4332_v0, %v4336_v55  ;;  %v4344_v11 = vld [vmem:[#allocation8 + $0xda0] sm:$0xff] }
 0x334   :  { %v3897_v17 = vmax.f32 %v8818_v3, 0.0  ;;  %v3899_v23 = vmax.f32 %v8820_v13, 0.0  ;;  %v8717_v3 = vcombine.low %v4324_v47, %v4328_v48  ;;  %v4340_v13 = vld [vmem:[#allocation8 + $0xd80] sm:$0xff]  ;;  %v4341_v14 = vld [vmem:[#allocation8 + $0xd88] sm:$0xff]  ;;  %v8725_v20 = vcombine.low %v4332_v0, %v4336_v55 }
 0x335   :  { %v9352_v28 = vpack.c.bf16 %v3896_v7, %v3896_v7  ;;  %v8728_v7 = vcombine.high %v4333_v4, %v4337_v39  ;;  %v8727_v21 = vcombine.low %v4333_v4, %v4337_v39  ;;  %v8733_v29 = vcombine.low %v4340_v13, %v4344_v11  ;;  %v4372_v50 = vld [vmem:[#allocation8 + $0xe80] sm:$0xff] }
 0x336   :  { %v9350_v26 = vpack.c.bf16 %v3897_v17, %v3897_v17  ;;  %v9356_v35 = vpack.c.bf16 %v3899_v23, %v3899_v23  ;;  %v4345_v17 = vld [vmem:[#allocation8 + $0xda8] sm:$0xff]  ;;  %v8734_v23 = vcombine.high %v4340_v13, %v4344_v11  ;;  %v8758_v47 = vcombine.high %v4364_v43, %v4368_v44  ;;  %v4376_v25 = vld [vmem:[#allocation8 + $0xea0] sm:$0xff] }
 0x337   :  { %v8736_v57 = vcombine.high %v4341_v14, %v4345_v17  ;;  %v8766_v0 = vcombine.high %v4372_v50, %v4376_v25  ;;  %v4380_v4 = vld [vmem:[#allocation8 + $0xec0] sm:$0xff] }
 0x338   :  { %7136 = vmatprep.mubr.bf16.mxu0 %v9350_v26  ;;  %7300 = vmatprep.mubr.bf16.mxu1 %v9350_v26  ;;  %v4384_v39 = vld [vmem:[#allocation8 + $0xee0] sm:$0xff] }
 0x339   :  { %7137 = vmatmul.mubr.bf16.vlgmr.msra.gmra.mrb[8].mxu0 %v9352_v28  ;;  %7301 = vmatmul.mubr.bf16.vlgmr.msra.gmra.mrb[8].mxu1 %v9352_v28  ;;  %v8774_v13 = vcombine.high %v4380_v4, %v4384_v39 }
 0x33a   :  { %7146 = vmatpush1.bf16.msra.mxu0 %v8685_v27  ;;  %7310 = vmatpush1.bf16.msra.mxu1 %v8687_v12  ;;  %v4349_v27 = vld [vmem:[#allocation8 + $0xdc8] sm:$0xff] }
 0x33b   :  { %7177 = vmatprep.mubr.bf16.mxu0 %v9356_v35  ;;  %7341 = vmatprep.mubr.bf16.mxu1 %v9356_v35  ;;  %v4353_v12 = vld [vmem:[#allocation8 + $0xde8] sm:$0xff] }
 0x33c   :  { %7147 = vmatprep.subr.bf16.mxu0 %v8694_v30  ;;  %7311 = vmatprep.subr.bf16.mxu1 %v8696_v31  ;;  %v8735_v30 = vcombine.low %v4341_v14, %v4345_v17  ;;  %v8742_v31 = vcombine.high %v4348_v24, %v4352_v19  ;;  %v8744_v33 = vcombine.high %v4349_v27, %v4353_v12  ;;  %v4388_v14 = vld [vmem:[#allocation8 + $0xf00] sm:$0xff] }
 0x33d   :  { %v4392_v17 = vld [vmem:[#allocation8 + $0xf20] sm:$0xff] }
 0x33e   :  { %7148 = vmatpush1.bf16.msra.mxu0 %v8693_v37  ;;  %7312 = vmatpush1.bf16.msra.mxu1 %v8695_v22  ;;  %v4357_v37 = vld [vmem:[#allocation8 + $0xe08] sm:$0xff] }
 0x33f   :  { %7149 = vmatprep.subr.bf16.mxu0 %v8702_v38  ;;  %7313 = vmatprep.subr.bf16.mxu1 %v8704_v41  ;;  %v4361_v22 = vld [vmem:[#allocation8 + $0xe28] sm:$0xff]  ;;  %v8741_v38 = vcombine.low %v4348_v24, %v4352_v19  ;;  %v8743_v41 = vcombine.low %v4349_v27, %v4353_v12  ;;  %v8782_v24 = vcombine.high %v4388_v14, %v4392_v17  ;;  %v4396_v27 = vld [vmem:[#allocation8 + $0xf40] sm:$0xff] }
 0x340   :  { %v8752_v36 = vcombine.high %v4357_v37, %v4361_v22  ;;  %v4400_v12 = vld [vmem:[#allocation8 + $0xf60] sm:$0xff] }
 0x342   :  { %7150 = vmatpush1.bf16.msra.mxu0 %v8701_v45  ;;  %7314 = vmatpush1.bf16.msra.mxu1 %v8703_v46  ;;  %v4365_v45 = vld [vmem:[#allocation8 + $0xe48] sm:$0xff] }
 0x343   :  { %7151 = vmatprep.subr.bf16.mxu0 %v8710_v9  ;;  %7315 = vmatprep.subr.bf16.mxu1 %v8712_v15  ;;  %v4369_v46 = vld [vmem:[#allocation8 + $0xe68] sm:$0xff]  ;;  %v8749_v9 = vcombine.low %v4356_v34, %v4360_v8  ;;  %v8751_v15 = vcombine.low %v4357_v37, %v4361_v22  ;;  %v9363_v34 = vsub.s32 6, %v9285_v2  ;;  %v8790_v8 = vcombine.high %v4396_v27, %v4400_v12  ;;  %v4404_v22 = vld [vmem:[#allocation8 + $0xf80] sm:$0xff] }
 0x344   :  { %v8760_v48 = vcombine.high %v4365_v45, %v4369_v46 }
 0x346   :  { %7152 = vmatpush1.bf16.msra.mxu0 %v8709_v51  ;;  %7316 = vmatpush1.bf16.msra.mxu1 %v8711_v52  ;;  %v4373_v51 = vld [vmem:[#allocation8 + $0xe88] sm:$0xff] }
 0x347   :  { %7153 = vmatprep.subr.bf16.mxu0 %v8718_v62  ;;  %7317 = vmatprep.subr.bf16.mxu1 %v8720_v63  ;;  %v4377_v52 = vld [vmem:[#allocation8 + $0xea8] sm:$0xff]  ;;  %v8757_v62 = vcombine.low %v4364_v43, %v4368_v44  ;;  %v8759_v63 = vcombine.low %v4365_v45, %v4369_v46  ;;  %v635_v44 = vrot.slane %v9340_v60, %v9363_v34  ;;  %v3914_v60 = vld [vmem:[#allocation8 + $0x30] sm:$0xff] }
 0x348   :  { %v8768_v55 = vcombine.high %v4373_v51, %v4377_v52 }
 0x34a   :  { %7154 = vmatpush1.bf16.msra.mxu0 %v8717_v3  ;;  %7318 = vmatpush1.bf16.msra.mxu1 %v8719_v5  ;;  %v4381_v3 = vld [vmem:[#allocation8 + $0xec8] sm:$0xff] }
 0x34b   :  { %7155 = vmatprep.subr.bf16.mxu0 %v8726_v6  ;;  %7319 = vmatprep.subr.bf16.mxu1 %v8728_v7  ;;  %v4385_v5 = vld [vmem:[#allocation8 + $0xee8] sm:$0xff]  ;;  %v8765_v6 = vcombine.low %v4372_v50, %v4376_v25  ;;  %v8767_v7 = vcombine.low %v4373_v51, %v4377_v52  ;;  %v8819_v51 = vadd.f32 %v9348_v1, %v635_v44  ;;  %v3919_v1 = vld [vmem:[#allocation8 + $0x58] sm:$0xff]  ;;  %v3946_v44 = vld [vmem:[#allocation8 + $0x130] sm:$0xff] }
 0x34c   :  { %v8776_v11 = vcombine.high %v4381_v3, %v4385_v5 }
 0x34e   :  { %7156 = vmatpush1.bf16.msra.mxu0 %v8725_v20  ;;  %7320 = vmatpush1.bf16.msra.mxu1 %v8727_v21  ;;  %v4389_v20 = vld [vmem:[#allocation8 + $0xf08] sm:$0xff] }
 0x34f   :  { %7157 = vmatprep.subr.bf16.mxu0 %v8734_v23  ;;  %7321 = vmatprep.subr.bf16.mxu1 %v8736_v57  ;;  %v4393_v21 = vld [vmem:[#allocation8 + $0xf28] sm:$0xff]  ;;  %v8773_v23 = vcombine.low %v4380_v4, %v4384_v39  ;;  %v8775_v57 = vcombine.low %v4381_v3, %v4385_v5  ;;  %v3898_v3 = vmax.f32 %v8819_v51, 0.0  ;;  %v3955_v51 = vld [vmem:[#allocation8 + $0x178] sm:$0xff] }
 0x350   :  { %v8784_v19 = vcombine.high %v4389_v20, %v4393_v21 }
 0x352   :  { %7158 = vmatpush1.bf16.msra.mxu0 %v8733_v29  ;;  %7322 = vmatpush1.bf16.msra.mxu1 %v8735_v30  ;;  %v4397_v29 = vld [vmem:[#allocation8 + $0xf48] sm:$0xff] }
 0x353   :  { %7159 = vmatprep.subr.bf16.mxu0 %v8742_v31  ;;  %7323 = vmatprep.subr.bf16.mxu1 %v8744_v33  ;;  %v4401_v30 = vld [vmem:[#allocation8 + $0xf68] sm:$0xff]  ;;  %v8781_v31 = vcombine.low %v4388_v14, %v4392_v17  ;;  %v8783_v33 = vcombine.low %v4389_v20, %v4393_v21  ;;  %v9368_v17 = vpack.c.bf16 %v3898_v3, %v3898_v3 }
 0x354   :  { %v8792_v37 = vcombine.high %v4397_v29, %v4401_v30  ;;  %v8791_v43 = vcombine.low %v4397_v29, %v4401_v30 }
 0x356   :  { %7160 = vmatpush1.bf16.msra.mxu0 %v8741_v38  ;;  %7324 = vmatpush1.bf16.msra.mxu1 %v8743_v41  ;;  %v4408_v38 = vld [vmem:[#allocation8 + $0xfa0] sm:$0xff]  ;;  %v4405_v41 = vld [vmem:[#allocation8 + $0xf88] sm:$0xff] }
 0x357   :  { %7161 = vmatprep.subr.bf16.mxu0 %v8750_v42  ;;  %7325 = vmatprep.subr.bf16.mxu1 %v8752_v36  ;;  %v4409_v42 = vld [vmem:[#allocation8 + $0xfa8] sm:$0xff]  ;;  %v8789_v36 = vcombine.low %v4396_v27, %v4400_v12  ;;  %v8798_v45 = vcombine.high %v4404_v22, %v4408_v38  ;;  %v8797_v50 = vcombine.low %v4404_v22, %v4408_v38  ;;  %v3931_v27 = vld [vmem:[#allocation8 + $0xb8] sm:$0xff] }
 0x358   :  { %v8800_v46 = vcombine.high %v4405_v41, %v4409_v42  ;;  %v8799_v25 = vcombine.low %v4405_v41, %v4409_v42  ;;  %v3939_v22 = vld [vmem:[#allocation8 + $0xf8] sm:$0xff] }
 0x35a   :  { %7162 = vmatpush1.bf16.msra.mxu0 %v8749_v9  ;;  %7326 = vmatpush1.bf16.msra.mxu1 %v8751_v15  ;;  %v4412_v9 = vld [vmem:[#allocation8 + $0xfc0] sm:$0xff] }
 0x35b   :  { %7163 = vmatprep.subr.bf16.mxu0 %v8758_v47  ;;  %7327 = vmatprep.subr.bf16.mxu1 %v8760_v48  ;;  %v4416_v15 = vld [vmem:[#allocation8 + $0xfe0] sm:$0xff]  ;;  %v4413_v47 = vld [vmem:[#allocation8 + $0xfc8] sm:$0xff] }
 0x35c   :  { %v4417_v48 = vld [vmem:[#allocation8 + $0xfe8] sm:$0xff]  ;;  %v8806_v52 = vcombine.high %v4412_v9, %v4416_v15  ;;  %v8805_v4 = vcombine.low %v4412_v9, %v4416_v15 }
 0x35d   :  { %v8807_v39 = vcombine.low %v4413_v47, %v4417_v48 }
 0x35e   :  { %7164 = vmatpush1.bf16.msra.mxu0 %v8757_v62  ;;  %7328 = vmatpush1.bf16.msra.mxu1 %v8759_v63  ;;  %v8808_v62 = vcombine.high %v4413_v47, %v4417_v48  ;;  %v3910_v63 = vld [vmem:[#allocation8 + $0x10] sm:$0xff] }
 0x35f   :  { %7165 = vmatprep.subr.bf16.mxu0 %v8766_v0  ;;  %7329 = vmatprep.subr.bf16.mxu1 %v8768_v55  ;;  %v3911_v0 = vld [vmem:[#allocation8 + $0x18] sm:$0xff]  ;;  %v8306_v5 = vcombine.high %v3910_v63, %v3914_v60  ;;  %v8305_v14 = vcombine.low %v3910_v63, %v3914_v60  ;;  %v3950_v48 = vld [vmem:[#allocation8 + $0x150] sm:$0xff] }
 0x360   :  { %v3915_v55 = vld [vmem:[#allocation8 + $0x38] sm:$0xff] }
 0x361   :  { %v8307_v20 = vcombine.low %v3911_v0, %v3915_v55 }
 0x362   :  { %7166 = vmatpush1.bf16.msra.mxu0 %v8765_v6  ;;  %7330 = vmatpush1.bf16.msra.mxu1 %v8767_v7  ;;  %v8308_v6 = vcombine.high %v3911_v0, %v3915_v55  ;;  %v3918_v7 = vld [vmem:[#allocation8 + $0x50] sm:$0xff] }
 0x363   :  { %7167 = vmatprep.subr.bf16.mxu0 %v8774_v13  ;;  %7331 = vmatprep.subr.bf16.mxu1 %v8776_v11  ;;  %v3922_v13 = vld [vmem:[#allocation8 + $0x70] sm:$0xff]  ;;  %v3923_v11 = vld [vmem:[#allocation8 + $0x78] sm:$0xff] }
 0x364   :  { %v8314_v21 = vcombine.high %v3918_v7, %v3922_v13  ;;  %v8313_v12 = vcombine.low %v3918_v7, %v3922_v13  ;;  %v8315_v29 = vcombine.low %v3919_v1, %v3923_v11  ;;  %v3958_v0 = vld [vmem:[#allocation8 + $0x190] sm:$0xff] }
 0x365   :  { %v3962_v55 = vld [vmem:[#allocation8 + $0x1b0] sm:$0xff] }
 0x366   :  { %7168 = vmatpush1.bf16.msra.mxu0 %v8773_v23  ;;  %7332 = vmatpush1.bf16.msra.mxu1 %v8775_v57  ;;  %v8316_v23 = vcombine.high %v3919_v1, %v3923_v11  ;;  %v3926_v57 = vld [vmem:[#allocation8 + $0x90] sm:$0xff]  ;;  %v3967_v11 = vld [vmem:[#allocation8 + $0x1d8] sm:$0xff] }
 0x367   :  { %7169 = vmatprep.subr.bf16.mxu0 %v8782_v24  ;;  %7333 = vmatprep.subr.bf16.mxu1 %v8784_v19  ;;  %v3930_v24 = vld [vmem:[#allocation8 + $0xb0] sm:$0xff]  ;;  %v3927_v19 = vld [vmem:[#allocation8 + $0x98] sm:$0xff] }
 0x368   :  { %v8322_v30 = vcombine.high %v3926_v57, %v3930_v24  ;;  %v8321_v38 = vcombine.low %v3926_v57, %v3930_v24  ;;  %v8323_v41 = vcombine.low %v3927_v19, %v3931_v27  ;;  %v3966_v13 = vld [vmem:[#allocation8 + $0x1d0] sm:$0xff] }
 0x369   :  { %v3970_v1 = vld [vmem:[#allocation8 + $0x1f0] sm:$0xff] }
 0x36a   :  { %7170 = vmatpush1.bf16.msra.mxu0 %v8781_v31  ;;  %7334 = vmatpush1.bf16.msra.mxu1 %v8783_v33  ;;  %v8324_v31 = vcombine.high %v3927_v19, %v3931_v27  ;;  %v3934_v33 = vld [vmem:[#allocation8 + $0xd0] sm:$0xff]  ;;  %v3975_v27 = vld [vmem:[#allocation8 + $0x218] sm:$0xff] }
 0x36b   :  { %7171 = vmatprep.subr.bf16.mxu0 %v8790_v8  ;;  %7335 = vmatprep.subr.bf16.mxu1 %v8792_v37  ;;  %v3938_v8 = vld [vmem:[#allocation8 + $0xf0] sm:$0xff]  ;;  %v3935_v37 = vld [vmem:[#allocation8 + $0xd8] sm:$0xff] }
 0x36c   :  { %v8330_v42 = vcombine.high %v3934_v33, %v3938_v8  ;;  %v8331_v9 = vcombine.low %v3935_v37, %v3939_v22  ;;  %v3974_v24 = vld [vmem:[#allocation8 + $0x210] sm:$0xff] }
 0x36d   :  { %v3978_v19 = vld [vmem:[#allocation8 + $0x230] sm:$0xff] }
 0x36e   :  { %7172 = vmatpush1.bf16.msra.mxu0 %v8789_v36  ;;  %7336 = vmatpush1.bf16.msra.mxu1 %v8791_v43  ;;  %v8332_v36 = vcombine.high %v3935_v37, %v3939_v22  ;;  %v3942_v43 = vld [vmem:[#allocation8 + $0x110] sm:$0xff]  ;;  %v3983_v22 = vld [vmem:[#allocation8 + $0x258] sm:$0xff] }
 0x36f   :  { %7173 = vmatprep.subr.bf16.mxu0 %v8798_v45  ;;  %7337 = vmatprep.subr.bf16.mxu1 %v8800_v46  ;;  %v3947_v45 = vld [vmem:[#allocation8 + $0x138] sm:$0xff]  ;;  %v8329_v46 = vcombine.low %v3934_v33, %v3938_v8  ;;  %v8338_v15 = vcombine.high %v3942_v43, %v3946_v44  ;;  %v3982_v8 = vld [vmem:[#allocation8 + $0x250] sm:$0xff] }
 0x370   :  { %v3986_v37 = vld [vmem:[#allocation8 + $0x270] sm:$0xff] }
 0x372   :  { %7174 = vmatpush1.bf16.msra.mxu0 %v8797_v50  ;;  %7338 = vmatpush1.bf16.msra.mxu1 %v8799_v25  ;;  %v3954_v50 = vld [vmem:[#allocation8 + $0x170] sm:$0xff]  ;;  %v3951_v25 = vld [vmem:[#allocation8 + $0x158] sm:$0xff] }
 0x373   :  { %7175 = vmatprep.subr.bf16.mxu0 %v8806_v52  ;;  %7339 = vmatprep.subr.bf16.mxu1 %v8808_v62  ;;  %v8337_v52 = vcombine.low %v3942_v43, %v3946_v44  ;;  %v8346_v63 = vcombine.high %v3950_v48, %v3954_v50  ;;  %v8348_v60 = vcombine.high %v3951_v25, %v3955_v51  ;;  %v3990_v44 = vld [vmem:[#allocation8 + $0x290] sm:$0xff] }
 0x374   :  { %v8345_v3 = vcombine.low %v3950_v48, %v3954_v50  ;;  %v3998_v50 = vld [vmem:[#allocation8 + $0x2d0] sm:$0xff] }
 0x376   :  { %7176 = vmatpush1.bf16.msra.mxu0 %v8805_v4  ;;  %7340 = vmatpush1.bf16.msra.mxu1 %v8807_v39  ;;  %v3959_v4 = vld [vmem:[#allocation8 + $0x198] sm:$0xff] }
 0x377   :  { %7350 = vmatprep.subr.bf16.mxu0 %v8306_v5  ;;  %7514 = vmatprep.subr.bf16.mxu1 %v8308_v6  ;;  %v3963_v39 = vld [vmem:[#allocation8 + $0x1b8] sm:$0xff]  ;;  %v8347_v5 = vcombine.low %v3951_v25, %v3955_v51  ;;  %v8354_v6 = vcombine.high %v3958_v0, %v3962_v55  ;;  %v4002_v25 = vld [vmem:[#allocation8 + $0x2f0] sm:$0xff] }
 0x378   :  { %v8356_v7 = vcombine.high %v3959_v4, %v3963_v39  ;;  %v3999_v51 = vld [vmem:[#allocation8 + $0x2d8] sm:$0xff] }
 0x379   :  { %7178 = vmatmul.mubr.bf16.vlgmr.msra.gmra.mrb[8].mxu0 %v9368_v17  ;;  %7342 = vmatmul.mubr.bf16.vlgmr.msra.gmra.mrb[8].mxu1 %v9368_v17 }
 0x37a   :  { %7351 = vmatpush1.bf16.msra.mxu0 %v8305_v14  ;;  %7382 = vmatprep.mubr.bf16.mxu0 %v9295_v49  ;;  %v3971_v14 = vld [vmem:[#allocation8 + $0x1f8] sm:$0xff] }
 0x37b   :  { %7515 = vmatpush1.bf16.msra.mxu1 %v8307_v20  ;;  %7546 = vmatprep.mubr.bf16.mxu1 %v9295_v49  ;;  %v3943_v49 = vld [vmem:[#allocation8 + $0x118] sm:$0xff]  ;;  %v8353_v20 = vcombine.low %v3958_v0, %v3962_v55  ;;  %v8364_v57 = vcombine.high %v3967_v11, %v3971_v14  ;;  %v4006_v55 = vld [vmem:[#allocation8 + $0x310] sm:$0xff] }
 0x37c   :  { %7352 = vmatprep.subr.bf16.mxu0 %v8314_v21  ;;  %7516 = vmatprep.subr.bf16.mxu1 %v8316_v23  ;;  %v8340_v47 = vcombine.high %v3943_v49, %v3947_v45  ;;  %v8339_v62 = vcombine.low %v3943_v49, %v3947_v45  ;;  %v8355_v21 = vcombine.low %v3959_v4, %v3963_v39  ;;  %v3994_v49 = vld [vmem:[#allocation8 + $0x2b0] sm:$0xff]  ;;  %v3991_v45 = vld [vmem:[#allocation8 + $0x298] sm:$0xff] }
 0x37d   :  { %v8362_v23 = vcombine.high %v3966_v13, %v3970_v1  ;;  %v4010_v4 = vld [vmem:[#allocation8 + $0x330] sm:$0xff]  ;;  %v4007_v39 = vld [vmem:[#allocation8 + $0x318] sm:$0xff] }
 0x37e   :  { %7353 = vmatpush1.bf16.msra.mxu0 %v8313_v12  ;;  %v3979_v12 = vld [vmem:[#allocation8 + $0x238] sm:$0xff] }
 0x37f   :  { %7517 = vmatpush1.bf16.msra.mxu1 %v8315_v29  ;;  %7354 = vmatprep.subr.bf16.mxu0 %v8322_v30  ;;  %v8361_v29 = vcombine.low %v3966_v13, %v3970_v1  ;;  %v8363_v30 = vcombine.low %v3967_v11, %v3971_v14  ;;  %v8372_v33 = vcombine.high %v3975_v27, %v3979_v12  ;;  %v4014_v1 = vld [vmem:[#allocation8 + $0x350] sm:$0xff]  ;;  %v4015_v14 = vld [vmem:[#allocation8 + $0x358] sm:$0xff] }
 0x380   :  { %7518 = vmatprep.subr.bf16.mxu1 %v8324_v31  ;;  %v8370_v31 = vcombine.high %v3974_v24, %v3978_v19  ;;  %v4018_v11 = vld [vmem:[#allocation8 + $0x370] sm:$0xff] }
 0x382   :  { %7355 = vmatpush1.bf16.msra.mxu0 %v8321_v38  ;;  %v3987_v38 = vld [vmem:[#allocation8 + $0x278] sm:$0xff] }
 0x383   :  { %7519 = vmatpush1.bf16.msra.mxu1 %v8323_v41  ;;  %7356 = vmatprep.subr.bf16.mxu0 %v8330_v42  ;;  %v8369_v41 = vcombine.low %v3974_v24, %v3978_v19  ;;  %v8371_v42 = vcombine.low %v3975_v27, %v3979_v12  ;;  %v8380_v43 = vcombine.high %v3983_v22, %v3987_v38  ;;  %v4022_v19 = vld [vmem:[#allocation8 + $0x390] sm:$0xff]  ;;  %v4023_v12 = vld [vmem:[#allocation8 + $0x398] sm:$0xff] }
 0x384   :  { %7520 = vmatprep.subr.bf16.mxu1 %v8332_v36  ;;  %v8378_v36 = vcombine.high %v3982_v8, %v3986_v37  ;;  %v4026_v27 = vld [vmem:[#allocation8 + $0x3b0] sm:$0xff] }
 0x386   :  { %7357 = vmatpush1.bf16.msra.mxu0 %v8329_v46  ;;  %v3995_v46 = vld [vmem:[#allocation8 + $0x2b8] sm:$0xff] }
 0x387   :  { %7521 = vmatpush1.bf16.msra.mxu1 %v8331_v9  ;;  %7358 = vmatprep.subr.bf16.mxu0 %v8338_v15  ;;  %v8377_v9 = vcombine.low %v3982_v8, %v3986_v37  ;;  %v8379_v15 = vcombine.low %v3983_v22, %v3987_v38  ;;  %v8388_v48 = vcombine.high %v3991_v45, %v3995_v46  ;;  %v4030_v37 = vld [vmem:[#allocation8 + $0x3d0] sm:$0xff]  ;;  %v4031_v38 = vld [vmem:[#allocation8 + $0x3d8] sm:$0xff] }
 0x388   :  { %7522 = vmatprep.subr.bf16.mxu1 %v8340_v47  ;;  %v8386_v47 = vcombine.high %v3990_v44, %v3994_v49  ;;  %v4034_v22 = vld [vmem:[#allocation8 + $0x3f0] sm:$0xff] }
 0x38a   :  { %7359 = vmatpush1.bf16.msra.mxu0 %v8337_v52  ;;  %v4003_v52 = vld [vmem:[#allocation8 + $0x2f8] sm:$0xff] }
 0x38b   :  { %7523 = vmatpush1.bf16.msra.mxu1 %v8339_v62  ;;  %7360 = vmatprep.subr.bf16.mxu0 %v8346_v63  ;;  %v8385_v62 = vcombine.low %v3990_v44, %v3994_v49  ;;  %v8387_v63 = vcombine.low %v3991_v45, %v3995_v46  ;;  %v8396_v0 = vcombine.high %v3999_v51, %v4003_v52  ;;  %v4038_v49 = vld [vmem:[#allocation8 + $0x410] sm:$0xff]  ;;  %v4039_v46 = vld [vmem:[#allocation8 + $0x418] sm:$0xff] }
 0x38c   :  { %7524 = vmatprep.subr.bf16.mxu1 %v8348_v60  ;;  %v8394_v60 = vcombine.high %v3998_v50, %v4002_v25  ;;  %v4042_v45 = vld [vmem:[#allocation8 + $0x430] sm:$0xff] }
 0x38e   :  { %7361 = vmatpush1.bf16.msra.mxu0 %v8345_v3  ;;  %v4011_v3 = vld [vmem:[#allocation8 + $0x338] sm:$0xff] }
 0x38f   :  { %7525 = vmatpush1.bf16.msra.mxu1 %v8347_v5  ;;  %7362 = vmatprep.subr.bf16.mxu0 %v8354_v6  ;;  %v8393_v5 = vcombine.low %v3998_v50, %v4002_v25  ;;  %v8395_v6 = vcombine.low %v3999_v51, %v4003_v52  ;;  %v8404_v13 = vcombine.high %v4007_v39, %v4011_v3  ;;  %v4046_v25 = vld [vmem:[#allocation8 + $0x450] sm:$0xff] }
 0x390   :  { %7526 = vmatprep.subr.bf16.mxu1 %v8356_v7  ;;  %v8402_v7 = vcombine.high %v4006_v55, %v4010_v4  ;;  %v4050_v51 = vld [vmem:[#allocation8 + $0x470] sm:$0xff]  ;;  %v8433_v52 = vcombine.low %v4038_v49, %v4042_v45 }
 0x392   :  { %7363 = vmatpush1.bf16.msra.mxu0 %v8353_v20  ;;  %v4019_v20 = vld [vmem:[#allocation8 + $0x378] sm:$0xff] }
 0x393   :  { %7527 = vmatpush1.bf16.msra.mxu1 %v8355_v21  ;;  %7364 = vmatprep.subr.bf16.mxu0 %v8362_v23  ;;  %v8401_v21 = vcombine.low %v4006_v55, %v4010_v4  ;;  %v8403_v23 = vcombine.low %v4007_v39, %v4011_v3  ;;  %v8412_v24 = vcombine.high %v4015_v14, %v4019_v20  ;;  %v4054_v55 = vld [vmem:[#allocation8 + $0x490] sm:$0xff]  ;;  %v4055_v3 = vld [vmem:[#allocation8 + $0x498] sm:$0xff] }
 0x394   :  { %7528 = vmatprep.subr.bf16.mxu1 %v8364_v57  ;;  %v8410_v57 = vcombine.high %v4014_v1, %v4018_v11  ;;  %v4058_v4 = vld [vmem:[#allocation8 + $0x4b0] sm:$0xff] }
 0x396   :  { %7365 = vmatpush1.bf16.msra.mxu0 %v8361_v29  ;;  %v4027_v29 = vld [vmem:[#allocation8 + $0x3b8] sm:$0xff] }
 0x397   :  { %7529 = vmatpush1.bf16.msra.mxu1 %v8363_v30  ;;  %7366 = vmatprep.subr.bf16.mxu0 %v8370_v31  ;;  %v8409_v30 = vcombine.low %v4014_v1, %v4018_v11  ;;  %v8411_v31 = vcombine.low %v4015_v14, %v4019_v20  ;;  %v8420_v8 = vcombine.high %v4023_v12, %v4027_v29  ;;  %v4062_v11 = vld [vmem:[#allocation8 + $0x4d0] sm:$0xff]  ;;  %v4063_v20 = vld [vmem:[#allocation8 + $0x4d8] sm:$0xff] }
 0x398   :  { %7530 = vmatprep.subr.bf16.mxu1 %v8372_v33  ;;  %v8418_v33 = vcombine.high %v4022_v19, %v4026_v27  ;;  %v4066_v14 = vld [vmem:[#allocation8 + $0x4f0] sm:$0xff] }
 0x39a   :  { %7367 = vmatpush1.bf16.msra.mxu0 %v8369_v41  ;;  %v4035_v41 = vld [vmem:[#allocation8 + $0x3f8] sm:$0xff] }
 0x39b   :  { %7531 = vmatpush1.bf16.msra.mxu1 %v8371_v42  ;;  %7368 = vmatprep.subr.bf16.mxu0 %v8378_v36  ;;  %v8417_v42 = vcombine.low %v4022_v19, %v4026_v27  ;;  %v8419_v36 = vcombine.low %v4023_v12, %v4027_v29  ;;  %v8428_v44 = vcombine.high %v4031_v38, %v4035_v41  ;;  %v4070_v19 = vld [vmem:[#allocation8 + $0x510] sm:$0xff]  ;;  %v4071_v12 = vld [vmem:[#allocation8 + $0x518] sm:$0xff] }
 0x39c   :  { %7532 = vmatprep.subr.bf16.mxu1 %v8380_v43  ;;  %v8426_v43 = vcombine.high %v4030_v37, %v4034_v22  ;;  %v4074_v27 = vld [vmem:[#allocation8 + $0x530] sm:$0xff]  ;;  %v4075_v29 = vld [vmem:[#allocation8 + $0x538] sm:$0xff] }
 0x39e   :  { %7369 = vmatpush1.bf16.msra.mxu0 %v8377_v9  ;;  %v4043_v9 = vld [vmem:[#allocation8 + $0x438] sm:$0xff] }
 0x39f   :  { %7533 = vmatpush1.bf16.msra.mxu1 %v8379_v15  ;;  %7370 = vmatprep.subr.bf16.mxu0 %v8386_v47  ;;  %v8425_v15 = vcombine.low %v4030_v37, %v4034_v22  ;;  %v8427_v47 = vcombine.low %v4031_v38, %v4035_v41  ;;  %v8436_v50 = vcombine.high %v4039_v46, %v4043_v9  ;;  %v4082_v37 = vld [vmem:[#allocation8 + $0x570] sm:$0xff]  ;;  %v4079_v22 = vld [vmem:[#allocation8 + $0x558] sm:$0xff] }
 0x3a0   :  { %7534 = vmatprep.subr.bf16.mxu1 %v8388_v48  ;;  %v8434_v48 = vcombine.high %v4038_v49, %v4042_v45  ;;  %v4083_v38 = vld [vmem:[#allocation8 + $0x578] sm:$0xff]  ;;  %v8465_v41 = vcombine.low %v4070_v19, %v4074_v27  ;;  %v4090_v49 = vld [vmem:[#allocation8 + $0x5b0] sm:$0xff] }
 0x3a1   :  { %v4087_v45 = vld [vmem:[#allocation8 + $0x598] sm:$0xff] }
 0x3a2   :  { %7371 = vmatpush1.bf16.msra.mxu0 %v8385_v62  ;;  %v4047_v62 = vld [vmem:[#allocation8 + $0x458] sm:$0xff] }
 0x3a3   :  { %7535 = vmatpush1.bf16.msra.mxu1 %v8387_v63  ;;  %7372 = vmatprep.subr.bf16.mxu0 %v8394_v60  ;;  %v4051_v63 = vld [vmem:[#allocation8 + $0x478] sm:$0xff]  ;;  %v8435_v60 = vcombine.low %v4039_v46, %v4043_v9 }
 0x3a4   :  { %7536 = vmatprep.subr.bf16.mxu1 %v8396_v0  ;;  %v8442_v0 = vcombine.high %v4046_v25, %v4050_v51  ;;  %v8444_v39 = vcombine.high %v4047_v62, %v4051_v63  ;;  %v4091_v46 = vld [vmem:[#allocation8 + $0x5b8] sm:$0xff] }
 0x3a6   :  { %7373 = vmatpush1.bf16.msra.mxu0 %v8393_v5  ;;  %v4059_v5 = vld [vmem:[#allocation8 + $0x4b8] sm:$0xff] }
 0x3a7   :  { %7537 = vmatpush1.bf16.msra.mxu1 %v8395_v6  ;;  %7374 = vmatprep.subr.bf16.mxu0 %v8402_v7  ;;  %v8441_v6 = vcombine.low %v4046_v25, %v4050_v51  ;;  %v8443_v7 = vcombine.low %v4047_v62, %v4051_v63  ;;  %v8452_v1 = vcombine.high %v4055_v3, %v4059_v5  ;;  %v4098_v25 = vld [vmem:[#allocation8 + $0x5f0] sm:$0xff]  ;;  %v4095_v51 = vld [vmem:[#allocation8 + $0x5d8] sm:$0xff] }
 0x3a8   :  { %7538 = vmatprep.subr.bf16.mxu1 %v8404_v13  ;;  %v8450_v13 = vcombine.high %v4054_v55, %v4058_v4  ;;  %v8483_v63 = vcombine.low %v4087_v45, %v4091_v46 }
 0x3aa   :  { %7375 = vmatpush1.bf16.msra.mxu0 %v8401_v21  ;;  %v4067_v21 = vld [vmem:[#allocation8 + $0x4f8] sm:$0xff] }
 0x3ab   :  { %7539 = vmatpush1.bf16.msra.mxu1 %v8403_v23  ;;  %7376 = vmatprep.subr.bf16.mxu0 %v8410_v57  ;;  %v8449_v23 = vcombine.low %v4054_v55, %v4058_v4  ;;  %v8458_v57 = vcombine.high %v4062_v11, %v4066_v14  ;;  %v4102_v55 = vld [vmem:[#allocation8 + $0x610] sm:$0xff] }
 0x3ac   :  { %7540 = vmatprep.subr.bf16.mxu1 %v8412_v24  ;;  %v8460_v24 = vcombine.high %v4063_v20, %v4067_v21  ;;  %v4106_v4 = vld [vmem:[#allocation8 + $0x630] sm:$0xff] }
 0x3ae   :  { %7377 = vmatpush1.bf16.msra.mxu0 %v8409_v30  ;;  %v8459_v30 = vcombine.low %v4063_v20, %v4067_v21  ;;  %v4115_v20 = vld [vmem:[#allocation8 + $0x678] sm:$0xff]  ;;  %v8497_v21 = vcombine.low %v4102_v55, %v4106_v4 }
 0x3af   :  { %7541 = vmatpush1.bf16.msra.mxu1 %v8411_v31  ;;  %7378 = vmatprep.subr.bf16.mxu0 %v8418_v33  ;;  %v8466_v31 = vcombine.high %v4070_v19, %v4074_v27  ;;  %v8468_v33 = vcombine.high %v4071_v12, %v4075_v29  ;;  %v4122_v19 = vld [vmem:[#allocation8 + $0x6b0] sm:$0xff]  ;;  %v4119_v27 = vld [vmem:[#allocation8 + $0x698] sm:$0xff] }
 0x3b0   :  { %7542 = vmatprep.subr.bf16.mxu1 %v8420_v8  ;;  %v4078_v8 = vld [vmem:[#allocation8 + $0x550] sm:$0xff] }
 0x3b1   :  { %v8473_v9 = vcombine.low %v4078_v8, %v4082_v37 }
 0x3b2   :  { %7379 = vmatpush1.bf16.msra.mxu0 %v8417_v42  ;;  %v8467_v42 = vcombine.low %v4071_v12, %v4075_v29  ;;  %v4123_v12 = vld [vmem:[#allocation8 + $0x6b8] sm:$0xff] }
 0x3b3   :  { %7543 = vmatpush1.bf16.msra.mxu1 %v8419_v36  ;;  %7380 = vmatprep.subr.bf16.mxu0 %v8426_v43  ;;  %v8474_v36 = vcombine.high %v4078_v8, %v4082_v37  ;;  %v8476_v43 = vcombine.high %v4079_v22, %v4083_v38  ;;  %v4130_v8 = vld [vmem:[#allocation8 + $0x6f0] sm:$0xff]  ;;  %v4127_v37 = vld [vmem:[#allocation8 + $0x6d8] sm:$0xff] }
 0x3b4   :  { %7544 = vmatprep.subr.bf16.mxu1 %v8428_v44  ;;  %v4086_v44 = vld [vmem:[#allocation8 + $0x590] sm:$0xff] }
 0x3b5   :  { %v8481_v62 = vcombine.low %v4086_v44, %v4090_v49 }
 0x3b6   :  { %7381 = vmatpush1.bf16.msra.mxu0 %v8425_v15  ;;  %v8475_v15 = vcombine.low %v4079_v22, %v4083_v38  ;;  %v4131_v22 = vld [vmem:[#allocation8 + $0x6f8] sm:$0xff] }
 0x3b7   :  { %7545 = vmatpush1.bf16.msra.mxu1 %v8427_v47  ;;  %7391 = vmatprep.subr.bf16.mxu0 %v8434_v48  ;;  %v8482_v47 = vcombine.high %v4086_v44, %v4090_v49  ;;  %v8484_v48 = vcombine.high %v4087_v45, %v4091_v46  ;;  %v4138_v44 = vld [vmem:[#allocation8 + $0x730] sm:$0xff]  ;;  %v4135_v49 = vld [vmem:[#allocation8 + $0x718] sm:$0xff] }
 0x3b8   :  { %7555 = vmatprep.subr.bf16.mxu1 %v8436_v50  ;;  %v4094_v50 = vld [vmem:[#allocation8 + $0x5d0] sm:$0xff]  ;;  %v4139_v45 = vld [vmem:[#allocation8 + $0x738] sm:$0xff] }
 0x3b9   :  { %7383 = vmatmul.mubr.bf16.vlgmr.msra.gmra.mrb[12].mxu0 %v9313_v10 }
 0x3ba   :  { %7547 = vmatmul.mubr.bf16.vlgmr.msra.gmra.mrb[12].mxu1 %v9313_v10  ;;  %7392 = vmatpush1.bf16.msra.mxu0 %v8433_v52  ;;  %v8451_v10 = vcombine.low %v4055_v3, %v4059_v5  ;;  %v4099_v52 = vld [vmem:[#allocation8 + $0x5f8] sm:$0xff]  ;;  %v8489_v5 = vcombine.low %v4094_v50, %v4098_v25 }
 0x3bb   :  { %7423 = vmatprep.mubr.bf16.mxu0 %v9315_v18  ;;  %7556 = vmatpush1.bf16.msra.mxu1 %v8435_v60  ;;  %v8490_v60 = vcombine.high %v4094_v50, %v4098_v25  ;;  %v4107_v3 = vld [vmem:[#allocation8 + $0x638] sm:$0xff]  ;;  %v4146_v50 = vld [vmem:[#allocation8 + $0x770] sm:$0xff] }
 0x3bc   :  { %7587 = vmatprep.mubr.bf16.mxu1 %v9315_v18  ;;  %7393 = vmatprep.subr.bf16.mxu0 %v8442_v0  ;;  %v8457_v18 = vcombine.low %v4062_v11, %v4066_v14  ;;  %v8492_v0 = vcombine.high %v4095_v51, %v4099_v52  ;;  %v4114_v11 = vld [vmem:[#allocation8 + $0x670] sm:$0xff]  ;;  %v4111_v14 = vld [vmem:[#allocation8 + $0x658] sm:$0xff] }
 0x3bd   :  { %7557 = vmatprep.subr.bf16.mxu1 %v8444_v39  ;;  %v4103_v39 = vld [vmem:[#allocation8 + $0x618] sm:$0xff] }
 0x3be   :  { %7394 = vmatpush1.bf16.msra.mxu0 %v8441_v6  ;;  %v8491_v6 = vcombine.low %v4095_v51, %v4099_v52  ;;  %v4143_v25 = vld [vmem:[#allocation8 + $0x758] sm:$0xff] }
 0x3bf   :  { %7558 = vmatpush1.bf16.msra.mxu1 %v8443_v7  ;;  %7395 = vmatprep.subr.bf16.mxu0 %v8450_v13  ;;  %v8498_v7 = vcombine.high %v4102_v55, %v4106_v4  ;;  %v8500_v13 = vcombine.high %v4103_v39, %v4107_v3  ;;  %v4147_v51 = vld [vmem:[#allocation8 + $0x778] sm:$0xff]  ;;  %v4154_v55 = vld [vmem:[#allocation8 + $0x7b0] sm:$0xff] }
 0x3c0   :  { %7559 = vmatprep.subr.bf16.mxu1 %v8452_v1  ;;  %v4110_v1 = vld [vmem:[#allocation8 + $0x650] sm:$0xff]  ;;  %v4151_v4 = vld [vmem:[#allocation8 + $0x798] sm:$0xff] }
 0x3c1   :  { %v8505_v29 = vcombine.low %v4110_v1, %v4114_v11 }
 0x3c2   :  { %7396 = vmatpush1.bf16.msra.mxu0 %v8449_v23  ;;  %v8499_v23 = vcombine.low %v4103_v39, %v4107_v3  ;;  %v4155_v39 = vld [vmem:[#allocation8 + $0x7b8] sm:$0xff] }
 0x3c3   :  { %7560 = vmatpush1.bf16.msra.mxu1 %v8451_v10  ;;  %7397 = vmatprep.subr.bf16.mxu0 %v8458_v57  ;;  %v8506_v10 = vcombine.high %v4110_v1, %v4114_v11  ;;  %v8508_v57 = vcombine.high %v4111_v14, %v4115_v20  ;;  %v4162_v1 = vld [vmem:[#allocation8 + $0x7f0] sm:$0xff]  ;;  %v4159_v11 = vld [vmem:[#allocation8 + $0x7d8] sm:$0xff] }
 0x3c4   :  { %7561 = vmatprep.subr.bf16.mxu1 %v8460_v24  ;;  %v4118_v24 = vld [vmem:[#allocation8 + $0x690] sm:$0xff] }
 0x3c5   :  { %v8513_v38 = vcombine.low %v4118_v24, %v4122_v19 }
 0x3c6   :  { %7398 = vmatpush1.bf16.msra.mxu0 %v8457_v18  ;;  %v8507_v18 = vcombine.low %v4111_v14, %v4115_v20  ;;  %v4163_v14 = vld [vmem:[#allocation8 + $0x7f8] sm:$0xff] }
 0x3c7   :  { %7562 = vmatpush1.bf16.msra.mxu1 %v8459_v30  ;;  %7399 = vmatprep.subr.bf16.mxu0 %v8466_v31  ;;  %v8514_v30 = vcombine.high %v4118_v24, %v4122_v19  ;;  %v8516_v31 = vcombine.high %v4119_v27, %v4123_v12  ;;  %v4170_v24 = vld [vmem:[#allocation8 + $0x830] sm:$0xff]  ;;  %v4167_v19 = vld [vmem:[#allocation8 + $0x818] sm:$0xff] }
 0x3c8   :  { %7563 = vmatprep.subr.bf16.mxu1 %v8468_v33  ;;  %v4126_v33 = vld [vmem:[#allocation8 + $0x6d0] sm:$0xff] }
 0x3c9   :  { %v8521_v46 = vcombine.low %v4126_v33, %v4130_v8 }
 0x3ca   :  { %7400 = vmatpush1.bf16.msra.mxu0 %v8465_v41  ;;  %v8515_v41 = vcombine.low %v4119_v27, %v4123_v12  ;;  %v4171_v27 = vld [vmem:[#allocation8 + $0x838] sm:$0xff] }
 0x3cb   :  { %7564 = vmatpush1.bf16.msra.mxu1 %v8467_v42  ;;  %7401 = vmatprep.subr.bf16.mxu0 %v8474_v36  ;;  %v8522_v42 = vcombine.high %v4126_v33, %v4130_v8  ;;  %v8524_v36 = vcombine.high %v4127_v37, %v4131_v22  ;;  %v4178_v33 = vld [vmem:[#allocation8 + $0x870] sm:$0xff] }
 0x3cc   :  { %7565 = vmatprep.subr.bf16.mxu1 %v8476_v43  ;;  %v4134_v43 = vld [vmem:[#allocation8 + $0x710] sm:$0xff] }
 0x3cd   :  { %v8529_v52 = vcombine.low %v4134_v43, %v4138_v44 }
 0x3ce   :  { %7402 = vmatpush1.bf16.msra.mxu0 %v8473_v9  ;;  %v8523_v9 = vcombine.low %v4127_v37, %v4131_v22  ;;  %v4175_v37 = vld [vmem:[#allocation8 + $0x858] sm:$0xff] }
 0x3cf   :  { %7566 = vmatpush1.bf16.msra.mxu1 %v8475_v15  ;;  %7403 = vmatprep.subr.bf16.mxu0 %v8482_v47  ;;  %v8530_v15 = vcombine.high %v4134_v43, %v4138_v44  ;;  %v8532_v47 = vcombine.high %v4135_v49, %v4139_v45  ;;  %v4179_v22 = vld [vmem:[#allocation8 + $0x878] sm:$0xff] }
 0x3d0   :  { %7567 = vmatprep.subr.bf16.mxu1 %v8484_v48  ;;  %v4142_v48 = vld [vmem:[#allocation8 + $0x750] sm:$0xff]  ;;  %v8572_v43 = vcombine.high %v4175_v37, %v4179_v22  ;;  %v4183_v44 = vld [vmem:[#allocation8 + $0x898] sm:$0xff] }
 0x3d1   :  { %v8537_v3 = vcombine.low %v4142_v48, %v4146_v50 }
 0x3d2   :  { %7404 = vmatpush1.bf16.msra.mxu0 %v8481_v62  ;;  %v8531_v62 = vcombine.low %v4135_v49, %v4139_v45  ;;  %v4187_v49 = vld [vmem:[#allocation8 + $0x8b8] sm:$0xff] }
 0x3d3   :  { %7568 = vmatpush1.bf16.msra.mxu1 %v8483_v63  ;;  %7405 = vmatprep.subr.bf16.mxu0 %v8490_v60  ;;  %v8538_v63 = vcombine.high %v4142_v48, %v4146_v50  ;;  %v8540_v60 = vcombine.high %v4143_v25, %v4147_v51  ;;  %v4194_v48 = vld [vmem:[#allocation8 + $0x8f0] sm:$0xff]  ;;  %v4191_v50 = vld [vmem:[#allocation8 + $0x8d8] sm:$0xff] }
 0x3d4   :  { %7569 = vmatprep.subr.bf16.mxu1 %v8492_v0  ;;  %v4150_v0 = vld [vmem:[#allocation8 + $0x790] sm:$0xff] }
 0x3d5   :  { %v8545_v20 = vcombine.low %v4150_v0, %v4154_v55 }
 0x3d6   :  { %7406 = vmatpush1.bf16.msra.mxu0 %v8489_v5  ;;  %v8539_v5 = vcombine.low %v4143_v25, %v4147_v51  ;;  %v4195_v25 = vld [vmem:[#allocation8 + $0x8f8] sm:$0xff] }
 0x3d7   :  { %7570 = vmatpush1.bf16.msra.mxu1 %v8491_v6  ;;  %7407 = vmatprep.subr.bf16.mxu0 %v8498_v7  ;;  %v8546_v6 = vcombine.high %v4150_v0, %v4154_v55  ;;  %v8548_v7 = vcombine.high %v4151_v4, %v4155_v39  ;;  %v4199_v0 = vld [vmem:[#allocation8 + $0x918] sm:$0xff] }
 0x3d8   :  { %7571 = vmatprep.subr.bf16.mxu1 %v8500_v13  ;;  %v4158_v13 = vld [vmem:[#allocation8 + $0x7d0] sm:$0xff]  ;;  %v4203_v55 = vld [vmem:[#allocation8 + $0x938] sm:$0xff] }
 0x3d9   :  { %v8553_v12 = vcombine.low %v4158_v13, %v4162_v1 }
 0x3da   :  { %7408 = vmatpush1.bf16.msra.mxu0 %v8497_v21  ;;  %v8547_v21 = vcombine.low %v4151_v4, %v4155_v39  ;;  %v8587_v4 = vcombine.low %v4191_v50, %v4195_v25 }
 0x3db   :  { %7572 = vmatpush1.bf16.msra.mxu1 %v8499_v23  ;;  %7409 = vmatprep.subr.bf16.mxu0 %v8506_v10  ;;  %v8554_v23 = vcombine.high %v4158_v13, %v4162_v1  ;;  %v8556_v10 = vcombine.high %v4159_v11, %v4163_v14  ;;  %v4211_v13 = vld [vmem:[#allocation8 + $0x978] sm:$0xff] }
 0x3dc   :  { %7573 = vmatprep.subr.bf16.mxu1 %v8508_v57  ;;  %v4166_v57 = vld [vmem:[#allocation8 + $0x810] sm:$0xff] }
 0x3dd   :  { %v8561_v8 = vcombine.low %v4166_v57, %v4170_v24 }
 0x3de   :  { %7410 = vmatpush1.bf16.msra.mxu0 %v8505_v29  ;;  %v8555_v29 = vcombine.low %v4159_v11, %v4163_v14  ;;  %v8595_v11 = vcombine.low %v4199_v0, %v4203_v55 }
 0x3df   :  { %7574 = vmatpush1.bf16.msra.mxu1 %v8507_v18  ;;  %7411 = vmatprep.subr.bf16.mxu0 %v8514_v30  ;;  %v8562_v18 = vcombine.high %v4166_v57, %v4170_v24  ;;  %v8564_v30 = vcombine.high %v4167_v19, %v4171_v27  ;;  %v4219_v57 = vld [vmem:[#allocation8 + $0x9b8] sm:$0xff] }
 0x3e0   :  { %7575 = vmatprep.subr.bf16.mxu1 %v8516_v31  ;;  %v4174_v31 = vld [vmem:[#allocation8 + $0x850] sm:$0xff] }
 0x3e1   :  { %v8569_v45 = vcombine.low %v4174_v31, %v4178_v33 }
 0x3e2   :  { %7412 = vmatpush1.bf16.msra.mxu0 %v8513_v38  ;;  %v8563_v38 = vcombine.low %v4167_v19, %v4171_v27 }
 0x3e3   :  { %7576 = vmatpush1.bf16.msra.mxu1 %v8515_v41  ;;  %7413 = vmatprep.subr.bf16.mxu0 %v8522_v42  ;;  %v8570_v41 = vcombine.high %v4174_v31, %v4178_v33  ;;  %v4182_v42 = vld [vmem:[#allocation8 + $0x890] sm:$0xff]  ;;  %v4227_v31 = vld [vmem:[#allocation8 + $0x9f8] sm:$0xff] }
 0x3e4   :  { %7577 = vmatprep.subr.bf16.mxu1 %v8524_v36  ;;  %v4186_v36 = vld [vmem:[#allocation8 + $0x8b0] sm:$0xff] }
 0x3e5   :  { %v8577_v51 = vcombine.low %v4182_v42, %v4186_v36 }
 0x3e6   :  { %7414 = vmatpush1.bf16.msra.mxu0 %v8521_v46  ;;  %v8571_v46 = vcombine.low %v4175_v37, %v4179_v22 }
 0x3e7   :  { %7578 = vmatpush1.bf16.msra.mxu1 %v8523_v9  ;;  %7415 = vmatprep.subr.bf16.mxu0 %v8530_v15  ;;  %v8578_v9 = vcombine.high %v4182_v42, %v4186_v36  ;;  %v8580_v15 = vcombine.high %v4183_v44, %v4187_v49  ;;  %v4231_v42 = vld [vmem:[#allocation8 + $0xa18] sm:$0xff] }
 0x3e8   :  { %7579 = vmatprep.subr.bf16.mxu1 %v8532_v47  ;;  %v4190_v47 = vld [vmem:[#allocation8 + $0x8d0] sm:$0xff]  ;;  %v4235_v36 = vld [vmem:[#allocation8 + $0xa38] sm:$0xff] }
 0x3ea   :  { %7416 = vmatpush1.bf16.msra.mxu0 %v8529_v52  ;;  %v8586_v52 = vcombine.high %v4190_v47, %v4194_v48 }
 0x3eb   :  { %7580 = vmatpush1.bf16.msra.mxu1 %v8531_v62  ;;  %7417 = vmatprep.subr.bf16.mxu0 %v8538_v63  ;;  %v8588_v62 = vcombine.high %v4191_v50, %v4195_v25  ;;  %v4198_v63 = vld [vmem:[#allocation8 + $0x910] sm:$0xff]  ;;  %v8627_v50 = vcombine.low %v4231_v42, %v4235_v36 }
 0x3ec   :  { %7581 = vmatprep.subr.bf16.mxu1 %v8540_v60  ;;  %v4202_v60 = vld [vmem:[#allocation8 + $0x930] sm:$0xff] }
 0x3ed   :  { %v8594_v39 = vcombine.high %v4198_v63, %v4202_v60  ;;  %v8593_v1 = vcombine.low %v4198_v63, %v4202_v60  ;;  %v4251_v63 = vld [vmem:[#allocation8 + $0xab8] sm:$0xff] }
 0x3ee   :  { %7418 = vmatpush1.bf16.msra.mxu0 %v8537_v3  ;;  %v8596_v3 = vcombine.high %v4199_v0, %v4203_v55 }
 0x3ef   :  { %7582 = vmatpush1.bf16.msra.mxu1 %v8539_v5  ;;  %7419 = vmatprep.subr.bf16.mxu0 %v8546_v6  ;;  %v4206_v5 = vld [vmem:[#allocation8 + $0x950] sm:$0xff] }
 0x3f0   :  { %7583 = vmatprep.subr.bf16.mxu1 %v8548_v7  ;;  %v4210_v6 = vld [vmem:[#allocation8 + $0x970] sm:$0xff]  ;;  %v4207_v7 = vld [vmem:[#allocation8 + $0x958] sm:$0xff] }
 0x3f1   :  { %v8602_v14 = vcombine.high %v4206_v5, %v4210_v6  ;;  %v8601_v24 = vcombine.low %v4206_v5, %v4210_v6  ;;  %v8603_v19 = vcombine.low %v4207_v7, %v4211_v13  ;;  %v4259_v5 = vld [vmem:[#allocation8 + $0xaf8] sm:$0xff] }
 0x3f2   :  { %7420 = vmatpush1.bf16.msra.mxu0 %v8545_v20  ;;  %v8604_v20 = vcombine.high %v4207_v7, %v4211_v13 }
 0x3f3   :  { %7584 = vmatpush1.bf16.msra.mxu1 %v8547_v21  ;;  %7421 = vmatprep.subr.bf16.mxu0 %v8554_v23  ;;  %v4214_v21 = vld [vmem:[#allocation8 + $0x990] sm:$0xff] }
 0x3f4   :  { %7585 = vmatprep.subr.bf16.mxu1 %v8556_v10  ;;  %v4218_v23 = vld [vmem:[#allocation8 + $0x9b0] sm:$0xff]  ;;  %v4215_v10 = vld [vmem:[#allocation8 + $0x998] sm:$0xff] }
 0x3f5   :  { %v8610_v27 = vcombine.high %v4214_v21, %v4218_v23  ;;  %v8609_v33 = vcombine.low %v4214_v21, %v4218_v23  ;;  %v4267_v21 = vld [vmem:[#allocation8 + $0xb38] sm:$0xff] }
 0x3f6   :  { %7422 = vmatpush1.bf16.msra.mxu0 %v8553_v12  ;;  %v8612_v12 = vcombine.high %v4215_v10, %v4219_v57 }
 0x3f7   :  { %7586 = vmatpush1.bf16.msra.mxu1 %v8555_v29  ;;  %7432 = vmatprep.subr.bf16.mxu0 %v8562_v18  ;;  %v4222_v29 = vld [vmem:[#allocation8 + $0x9d0] sm:$0xff] }
 0x3f8   :  { %7596 = vmatprep.subr.bf16.mxu1 %v8564_v30  ;;  %v4226_v18 = vld [vmem:[#allocation8 + $0x9f0] sm:$0xff]  ;;  %v4223_v30 = vld [vmem:[#allocation8 + $0x9d8] sm:$0xff] }
 0x3f9   :  { %7424 = vmatmul.mubr.bf16.vlgmr.msra.gmra.mrb[12].mxu0 %v9327_v40  ;;  %v8618_v37 = vcombine.high %v4222_v29, %v4226_v18  ;;  %v8620_v22 = vcombine.high %v4223_v30, %v4227_v31 }
 0x3fa   :  { %7588 = vmatmul.mubr.bf16.vlgmr.msra.gmra.mrb[12].mxu1 %v9327_v40  ;;  %7433 = vmatpush1.bf16.msra.mxu0 %v8561_v8  ;;  %v8579_v40 = vcombine.low %v4183_v44, %v4187_v49  ;;  %v8611_v8 = vcombine.low %v4215_v10, %v4219_v57  ;;  %v8619_v44 = vcombine.low %v4223_v30, %v4227_v31 }
 0x3fb   :  { %7464 = vmatprep.mubr.bf16.mxu0 %v9350_v26  ;;  %7597 = vmatpush1.bf16.msra.mxu1 %v8563_v38  ;;  %v4230_v38 = vld [vmem:[#allocation8 + $0xa10] sm:$0xff] }
 0x3fc   :  { %7628 = vmatprep.mubr.bf16.mxu1 %v9350_v26  ;;  %7434 = vmatprep.subr.bf16.mxu0 %v8570_v41  ;;  %v8585_v26 = vcombine.low %v4190_v47, %v4194_v48  ;;  %v4234_v41 = vld [vmem:[#allocation8 + $0xa30] sm:$0xff]  ;;  %v4243_v47 = vld [vmem:[#allocation8 + $0xa78] sm:$0xff] }
 0x3fd   :  { %7598 = vmatprep.subr.bf16.mxu1 %v8572_v43  ;;  %v8617_v43 = vcombine.low %v4222_v29, %v4226_v18  ;;  %v8626_v49 = vcombine.high %v4230_v38, %v4234_v41  ;;  %v8625_v48 = vcombine.low %v4230_v38, %v4234_v41  ;;  %v4275_v29 = vld [vmem:[#allocation8 + $0xb78] sm:$0xff] }
 0x3fe   :  { %7435 = vmatpush1.bf16.msra.mxu0 %v8569_v45  ;;  %v8628_v45 = vcombine.high %v4231_v42, %v4235_v36  ;;  %v4283_v38 = vld [vmem:[#allocation8 + $0xbb8] sm:$0xff] }
 0x3ff   :  { %7599 = vmatpush1.bf16.msra.mxu1 %v8571_v46  ;;  %7436 = vmatprep.subr.bf16.mxu0 %v8578_v9  ;;  %v4238_v46 = vld [vmem:[#allocation8 + $0xa50] sm:$0xff] }
 0x400   :  { %7600 = vmatprep.subr.bf16.mxu1 %v8580_v15  ;;  %v4242_v9 = vld [vmem:[#allocation8 + $0xa70] sm:$0xff]  ;;  %v4239_v15 = vld [vmem:[#allocation8 + $0xa58] sm:$0xff] }
 0x401   :  { %v8634_v25 = vcombine.high %v4238_v46, %v4242_v9  ;;  %v8633_v60 = vcombine.low %v4238_v46, %v4242_v9  ;;  %v8635_v0 = vcombine.low %v4239_v15, %v4243_v47  ;;  %v4291_v46 = vld [vmem:[#allocation8 + $0xbf8] sm:$0xff] }
 0x402   :  { %7437 = vmatpush1.bf16.msra.mxu0 %v8577_v51  ;;  %v8636_v51 = vcombine.high %v4239_v15, %v4243_v47 }
 0x403   :  { %7601 = vmatpush1.bf16.msra.mxu1 %v8579_v40  ;;  %7438 = vmatprep.subr.bf16.mxu0 %v8586_v52  ;;  %v4246_v40 = vld [vmem:[#allocation8 + $0xa90] sm:$0xff] }
 0x404   :  { %7602 = vmatprep.subr.bf16.mxu1 %v8588_v62  ;;  %v4250_v52 = vld [vmem:[#allocation8 + $0xab0] sm:$0xff]  ;;  %v4247_v62 = vld [vmem:[#allocation8 + $0xa98] sm:$0xff] }
 0x405   :  { %v8642_v55 = vcombine.high %v4246_v40, %v4250_v52  ;;  %v8641_v6 = vcombine.low %v4246_v40, %v4250_v52  ;;  %v8643_v7 = vcombine.low %v4247_v62, %v4251_v63  ;;  %v4299_v40 = vld [vmem:[#allocation8 + $0xc38] sm:$0xff] }
 0x406   :  { %7439 = vmatpush1.bf16.msra.mxu0 %v8585_v26  ;;  %v8644_v26 = vcombine.high %v4247_v62, %v4251_v63 }
 0x407   :  { %7603 = vmatpush1.bf16.msra.mxu1 %v8587_v4  ;;  %7440 = vmatprep.subr.bf16.mxu0 %v8594_v39  ;;  %v4254_v4 = vld [vmem:[#allocation8 + $0xad0] sm:$0xff] }
 0x408   :  { %7604 = vmatprep.subr.bf16.mxu1 %v8596_v3  ;;  %v4258_v39 = vld [vmem:[#allocation8 + $0xaf0] sm:$0xff]  ;;  %v4255_v3 = vld [vmem:[#allocation8 + $0xad8] sm:$0xff] }
 0x409   :  { %v8650_v13 = vcombine.high %v4254_v4, %v4258_v39  ;;  %v8649_v23 = vcombine.low %v4254_v4, %v4258_v39  ;;  %v8651_v10 = vcombine.low %v4255_v3, %v4259_v5  ;;  %v4303_v4 = vld [vmem:[#allocation8 + $0xc58] sm:$0xff] }
 0x40a   :  { %7441 = vmatpush1.bf16.msra.mxu0 %v8593_v1  ;;  %v8652_v1 = vcombine.high %v4255_v3, %v4259_v5  ;;  %v4307_v39 = vld [vmem:[#allocation8 + $0xc78] sm:$0xff] }
 0x40b   :  { %7605 = vmatpush1.bf16.msra.mxu1 %v8595_v11  ;;  %7442 = vmatprep.subr.bf16.mxu0 %v8602_v14  ;;  %v4262_v11 = vld [vmem:[#allocation8 + $0xb10] sm:$0xff] }
 0x40c   :  { %7606 = vmatprep.subr.bf16.mxu1 %v8604_v20  ;;  %v4266_v14 = vld [vmem:[#allocation8 + $0xb30] sm:$0xff]  ;;  %v4263_v20 = vld [vmem:[#allocation8 + $0xb18] sm:$0xff] }
 0x40d   :  { %v8658_v57 = vcombine.high %v4262_v11, %v4266_v14  ;;  %v8657_v18 = vcombine.low %v4262_v11, %v4266_v14  ;;  %v8659_v30 = vcombine.low %v4263_v20, %v4267_v21  ;;  %v4315_v11 = vld [vmem:[#allocation8 + $0xcb8] sm:$0xff] }
 0x40e   :  { %7443 = vmatpush1.bf16.msra.mxu0 %v8601_v24  ;;  %v8660_v24 = vcombine.high %v4263_v20, %v4267_v21  ;;  %v8699_v20 = vcombine.low %v4303_v4, %v4307_v39 }
 0x40f   :  { %7607 = vmatpush1.bf16.msra.mxu1 %v8603_v19  ;;  %7444 = vmatprep.subr.bf16.mxu0 %v8610_v27  ;;  %v4270_v19 = vld [vmem:[#allocation8 + $0xb50] sm:$0xff] }
 0x410   :  { %7608 = vmatprep.subr.bf16.mxu1 %v8612_v12  ;;  %v4274_v27 = vld [vmem:[#allocation8 + $0xb70] sm:$0xff]  ;;  %v4271_v12 = vld [vmem:[#allocation8 + $0xb58] sm:$0xff] }
 0x411   :  { %v8666_v31 = vcombine.high %v4270_v19, %v4274_v27  ;;  %v8665_v41 = vcombine.low %v4270_v19, %v4274_v27  ;;  %v8667_v42 = vcombine.low %v4271_v12, %v4275_v29  ;;  %v4323_v19 = vld [vmem:[#allocation8 + $0xcf8] sm:$0xff] }
 0x412   :  { %7445 = vmatpush1.bf16.msra.mxu0 %v8609_v33  ;;  %v8668_v33 = vcombine.high %v4271_v12, %v4275_v29 }
 0x413   :  { %7609 = vmatpush1.bf16.msra.mxu1 %v8611_v8  ;;  %7446 = vmatprep.subr.bf16.mxu0 %v8618_v37  ;;  %v4278_v8 = vld [vmem:[#allocation8 + $0xb90] sm:$0xff] }
 0x414   :  { %7610 = vmatprep.subr.bf16.mxu1 %v8620_v22  ;;  %v4282_v37 = vld [vmem:[#allocation8 + $0xbb0] sm:$0xff]  ;;  %v4279_v22 = vld [vmem:[#allocation8 + $0xb98] sm:$0xff] }
 0x415   :  { %v8674_v36 = vcombine.high %v4278_v8, %v4282_v37  ;;  %v8673_v9 = vcombine.low %v4278_v8, %v4282_v37  ;;  %v8675_v15 = vcombine.low %v4279_v22, %v4283_v38 }
 0x416   :  { %7447 = vmatpush1.bf16.msra.mxu0 %v8617_v43  ;;  %v8676_v43 = vcombine.high %v4279_v22, %v4283_v38  ;;  %v4334_v38 = vld [vmem:[#allocation8 + $0xd50] sm:$0xff] }
 0x417   :  { %7611 = vmatpush1.bf16.msra.mxu1 %v8619_v44  ;;  %7448 = vmatprep.subr.bf16.mxu0 %v8626_v49  ;;  %v4286_v44 = vld [vmem:[#allocation8 + $0xbd0] sm:$0xff] }
 0x418   :  { %7612 = vmatprep.subr.bf16.mxu1 %v8628_v45  ;;  %v4290_v49 = vld [vmem:[#allocation8 + $0xbf0] sm:$0xff]  ;;  %v4287_v45 = vld [vmem:[#allocation8 + $0xbd8] sm:$0xff] }
 0x419   :  { %v8682_v47 = vcombine.high %v4286_v44, %v4290_v49  ;;  %v8681_v52 = vcombine.low %v4286_v44, %v4290_v49  ;;  %v8683_v62 = vcombine.low %v4287_v45, %v4291_v46  ;;  %v9386_v44 = vld [vmem:[#allocation9] sm:$0xff] }
 0x41a   :  { %7449 = vmatpush1.bf16.msra.mxu0 %v8625_v48  ;;  %v8684_v48 = vcombine.high %v4287_v45, %v4291_v46 }
 0x41b   :  { %7613 = vmatpush1.bf16.msra.mxu1 %v8627_v50  ;;  %7450 = vmatprep.subr.bf16.mxu0 %v8634_v25  ;;  %v4294_v50 = vld [vmem:[#allocation8 + $0xc10] sm:$0xff] }
 0x41c   :  { %7614 = vmatprep.subr.bf16.mxu1 %v8636_v51  ;;  %v4298_v25 = vld [vmem:[#allocation8 + $0xc30] sm:$0xff]  ;;  %v4295_v51 = vld [vmem:[#allocation8 + $0xc18] sm:$0xff] }
 0x41d   :  { %v8690_v63 = vcombine.high %v4294_v50, %v4298_v25  ;;  %v8691_v3 = vcombine.low %v4295_v51, %v4299_v40 }
 0x41e   :  { %7451 = vmatpush1.bf16.msra.mxu0 %v8633_v60  ;;  %v8692_v60 = vcombine.high %v4295_v51, %v4299_v40  ;;  %v9392_v51 = vld [vmem:[#allocation11] sm:$0xff]  ;;  %v4429_v40 = vrot.slane %v9386_v44, %v9288_v16 }
 0x41f   :  { %7615 = vmatpush1.bf16.msra.mxu1 %v8635_v0  ;;  %7452 = vmatprep.subr.bf16.mxu0 %v8642_v55  ;;  %v4302_v0 = vld [vmem:[#allocation8 + $0xc50] sm:$0xff] }
 0x420   :  { %7616 = vmatprep.subr.bf16.mxu1 %v8644_v26  ;;  %v4306_v55 = vld [vmem:[#allocation8 + $0xc70] sm:$0xff]  ;;  %v8689_v26 = vcombine.low %v4294_v50, %v4298_v25  ;;  %v4343_v50 = vld [vmem:[#allocation8 + $0xd98] sm:$0xff] }
 0x421   :  { %v8698_v5 = vcombine.high %v4302_v0, %v4306_v55  ;;  %v8697_v14 = vcombine.low %v4302_v0, %v4306_v55  ;;  %v4347_v25 = vld [vmem:[#allocation8 + $0xdb8] sm:$0xff] }
 0x422   :  { %7453 = vmatpush1.bf16.msra.mxu0 %v8641_v6  ;;  %v4310_v6 = vld [vmem:[#allocation8 + $0xc90] sm:$0xff] }
 0x423   :  { %7617 = vmatpush1.bf16.msra.mxu1 %v8643_v7  ;;  %7454 = vmatprep.subr.bf16.mxu0 %v8650_v13  ;;  %v4314_v7 = vld [vmem:[#allocation8 + $0xcb0] sm:$0xff]  ;;  %v8700_v13 = vcombine.high %v4303_v4, %v4307_v39 }
 0x424   :  { %7618 = vmatprep.subr.bf16.mxu1 %v8652_v1  ;;  %v4311_v1 = vld [vmem:[#allocation8 + $0xc98] sm:$0xff]  ;;  %v8706_v21 = vcombine.high %v4310_v6, %v4314_v7  ;;  %v8705_v27 = vcombine.low %v4310_v6, %v4314_v7  ;;  %v4350_v4 = vld [vmem:[#allocation8 + $0xdd0] sm:$0xff] }
 0x425   :  { %v4354_v39 = vld [vmem:[#allocation8 + $0xdf0] sm:$0xff] }
 0x426   :  { %7455 = vmatpush1.bf16.msra.mxu0 %v8649_v23  ;;  %v8708_v23 = vcombine.high %v4311_v1, %v4315_v11 }
 0x427   :  { %7619 = vmatpush1.bf16.msra.mxu1 %v8651_v10  ;;  %7456 = vmatprep.subr.bf16.mxu0 %v8658_v57  ;;  %v4318_v10 = vld [vmem:[#allocation8 + $0xcd0] sm:$0xff] }
 0x428   :  { %7620 = vmatprep.subr.bf16.mxu1 %v8660_v24  ;;  %v4322_v57 = vld [vmem:[#allocation8 + $0xcf0] sm:$0xff]  ;;  %v4319_v24 = vld [vmem:[#allocation8 + $0xcd8] sm:$0xff] }
 0x429   :  { %v8714_v12 = vcombine.high %v4318_v10, %v4322_v57  ;;  %v8716_v29 = vcombine.high %v4319_v24, %v4323_v19  ;;  %v8715_v8 = vcombine.low %v4319_v24, %v4323_v19 }
 0x42a   :  { %7457 = vmatpush1.bf16.msra.mxu0 %v8657_v18  ;;  %v4326_v18 = vld [vmem:[#allocation8 + $0xd10] sm:$0xff] }
 0x42b   :  { %7621 = vmatpush1.bf16.msra.mxu1 %v8659_v30  ;;  %7458 = vmatprep.subr.bf16.mxu0 %v8666_v31  ;;  %v4330_v30 = vld [vmem:[#allocation8 + $0xd30] sm:$0xff]  ;;  %v4327_v31 = vld [vmem:[#allocation8 + $0xd18] sm:$0xff] }
 0x42c   :  { %7622 = vmatprep.subr.bf16.mxu1 %v8668_v33  ;;  %v4331_v33 = vld [vmem:[#allocation8 + $0xd38] sm:$0xff]  ;;  %v8722_v37 = vcombine.high %v4326_v18, %v4330_v30 }
 0x42d   :  { %v8724_v22 = vcombine.high %v4327_v31, %v4331_v33  ;;  %v8723_v49 = vcombine.low %v4327_v31, %v4331_v33  ;;  %v4362_v31 = vld [vmem:[#allocation8 + $0xe30] sm:$0xff] }
 0x42e   :  { %7459 = vmatpush1.bf16.msra.mxu0 %v8665_v41  ;;  %v4338_v41 = vld [vmem:[#allocation8 + $0xd70] sm:$0xff] }
 0x42f   :  { %7623 = vmatpush1.bf16.msra.mxu1 %v8667_v42  ;;  %7460 = vmatprep.subr.bf16.mxu0 %v8674_v36  ;;  %v4335_v42 = vld [vmem:[#allocation8 + $0xd58] sm:$0xff]  ;;  %v8730_v45 = vcombine.high %v4334_v38, %v4338_v41 }
 0x430   :  { %7624 = vmatprep.subr.bf16.mxu1 %v8676_v43  ;;  %v4339_v36 = vld [vmem:[#allocation8 + $0xd78] sm:$0xff]  ;;  %v8721_v43 = vcombine.low %v4326_v18, %v4330_v30 }
 0x431   :  { %v8732_v46 = vcombine.high %v4335_v42, %v4339_v36 }
 0x432   :  { %7461 = vmatpush1.bf16.msra.mxu0 %v8673_v9  ;;  %v4342_v9 = vld [vmem:[#allocation8 + $0xd90] sm:$0xff] }
 0x433   :  { %7625 = vmatpush1.bf16.msra.mxu1 %v8675_v15  ;;  %7462 = vmatprep.subr.bf16.mxu0 %v8682_v47  ;;  %v4346_v15 = vld [vmem:[#allocation8 + $0xdb0] sm:$0xff]  ;;  %v4425_v47 = vrot.slane %v9386_v44, %v9302_v32 }
 0x434   :  { %7626 = vmatprep.subr.bf16.mxu1 %v8684_v48  ;;  %v4433_v48 = vrot.slane %v9386_v44, %v9322_v61 }
 0x436   :  { %7463 = vmatpush1.bf16.msra.mxu0 %v8681_v52  ;;  %v4437_v52 = vrot.slane %v9386_v44, %v9305_v53 }
 0x437   :  { %7627 = vmatpush1.bf16.msra.mxu1 %v8683_v62  ;;  %7473 = vmatprep.subr.bf16.mxu0 %v8690_v63  ;;  %v8729_v62 = vcombine.low %v4334_v38, %v4338_v41  ;;  %v8731_v63 = vcombine.low %v4335_v42, %v4339_v36  ;;  %v7703_v38 = vrot.slane %v9392_v51, %v9305_v53 }
 0x438   :  { %7637 = vmatprep.subr.bf16.mxu1 %v8692_v60  ;;  %v8738_v60 = vcombine.high %v4342_v9, %v4346_v15  ;;  %v8745_v41 = vcombine.low %v4350_v4, %v4354_v39 }
 0x439   :  { %7465 = vmatmul.mubr.bf16.vlgmr.msra.gmra.mrb[12].mxu0 %v9352_v28 }
 0x43a   :  { %7629 = vmatmul.mubr.bf16.vlgmr.msra.gmra.mrb[12].mxu1 %v9352_v28  ;;  %7474 = vmatpush1.bf16.msra.mxu0 %v8689_v26  ;;  %v8707_v28 = vcombine.low %v4311_v1, %v4315_v11  ;;  %v8740_v26 = vcombine.high %v4343_v50, %v4347_v25  ;;  %v4351_v1 = vld [vmem:[#allocation8 + $0xdd8] sm:$0xff] }
 0x43b   :  { %7505 = vmatprep.mubr.bf16.mxu0 %v9356_v35  ;;  %7638 = vmatpush1.bf16.msra.mxu1 %v8691_v3  ;;  %v4355_v11 = vld [vmem:[#allocation8 + $0xdf8] sm:$0xff] }
 0x43c   :  { %7669 = vmatprep.mubr.bf16.mxu1 %v9356_v35  ;;  %7475 = vmatprep.subr.bf16.mxu0 %v8698_v5  ;;  %v8713_v35 = vcombine.low %v4318_v10, %v4322_v57  ;;  %v7691_v5 = vrot.slane %v9392_v51, %v9302_v32  ;;  %v8737_v57 = vcombine.low %v4342_v9, %v4346_v15  ;;  %v4367_v9 = vld [vmem:[#allocation8 + $0xe58] sm:$0xff] }
 0x43d   :  { %7639 = vmatprep.subr.bf16.mxu1 %v8700_v13  ;;  %v8739_v32 = vcombine.low %v4343_v50, %v4347_v25  ;;  %v8748_v30 = vcombine.high %v4351_v1, %v4355_v11  ;;  %v8747_v42 = vcombine.low %v4351_v1, %v4355_v11  ;;  %v4371_v15 = vld [vmem:[#allocation8 + $0xe78] sm:$0xff] }
 0x43e   :  { %7476 = vmatpush1.bf16.msra.mxu0 %v8697_v14 }
 0x43f   :  { %7640 = vmatpush1.bf16.msra.mxu1 %v8699_v20  ;;  %7477 = vmatprep.subr.bf16.mxu0 %v8706_v21  ;;  %v7695_v20 = vrot.slane %v9392_v51, %v9288_v16  ;;  %v4358_v16 = vld [vmem:[#allocation8 + $0xe10] sm:$0xff] }
 0x440   :  { %7641 = vmatprep.subr.bf16.mxu1 %v8708_v23  ;;  %v8754_v36 = vcombine.high %v4358_v16, %v4362_v31  ;;  %v8753_v50 = vcombine.low %v4358_v16, %v4362_v31 }
 0x442   :  { %7478 = vmatpush1.bf16.msra.mxu0 %v8705_v27 }
 0x443   :  { %7642 = vmatpush1.bf16.msra.mxu1 %v8707_v28  ;;  %7479 = vmatprep.subr.bf16.mxu0 %v8714_v12  ;;  %v8746_v28 = vcombine.high %v4350_v4, %v4354_v39 }
 0x444   :  { %7643 = vmatprep.subr.bf16.mxu1 %v8716_v29  ;;  %v7699_v29 = vrot.slane %v9392_v51, %v9322_v61 }
 0x446   :  { %7480 = vmatpush1.bf16.msra.mxu0 %v8713_v35  ;;  %v4359_v35 = vld [vmem:[#allocation8 + $0xe18] sm:$0xff] }
 0x447   :  { %7644 = vmatpush1.bf16.msra.mxu1 %v8715_v8  ;;  %7481 = vmatprep.subr.bf16.mxu0 %v8722_v37  ;;  %v4363_v8 = vld [vmem:[#allocation8 + $0xe38] sm:$0xff] }
 0x448   :  { %7645 = vmatprep.subr.bf16.mxu1 %v8724_v22  ;;  %v8755_v53 = vcombine.low %v4359_v35, %v4363_v8 }
 0x44a   :  { %7482 = vmatpush1.bf16.msra.mxu0 %v8721_v43 }
 0x44b   :  { %7646 = vmatpush1.bf16.msra.mxu1 %v8723_v49  ;;  %7483 = vmatprep.subr.bf16.mxu0 %v8730_v45  ;;  %v8756_v49 = vcombine.high %v4359_v35, %v4363_v8  ;;  %v4366_v45 = vld [vmem:[#allocation8 + $0xe50] sm:$0xff]  ;;  %v4407_v8 = vld [vmem:[#allocation8 + $0xf98] sm:$0xff] }
 0x44c   :  { %v7179_v0 = vpop.f32.mrb[8].mxu0  ;;  %v7343_v55 = vpop.f32.mrb[8].mxu1  ;;  %7647 = vmatprep.subr.bf16.mxu1 %v8732_v46  ;;  %v4370_v46 = vld [vmem:[#allocation8 + $0xe70] sm:$0xff] }
 0x44d   :  { %v8821_v3 = vadd.f32 %v7179_v0, %v4425_v47  ;;  %v8823_v6 = vadd.f32 %v7343_v55, %v4433_v48  ;;  %v7181_v7 = vpop.f32.mrb[9].mxu0  ;;  %v7345_v13 = vpop.f32.mrb[9].mxu1  ;;  %v8762_v25 = vcombine.high %v4366_v45, %v4370_v46  ;;  %v4379_v0 = vld [vmem:[#allocation8 + $0xeb8] sm:$0xff]  ;;  %v8761_v55 = vcombine.low %v4366_v45, %v4370_v46  ;;  %v4410_v35 = vld [vmem:[#allocation8 + $0xfb0] sm:$0xff] }
 0x44e   :  { %v8822_v14 = vadd.f32 %v7181_v7, %v4429_v40  ;;  %v8824_v21 = vadd.f32 %v7345_v13, %v4437_v52  ;;  %v7183_v23 = vpop.f32.mrb[10].mxu0  ;;  %v7347_v10 = vpop.f32.mrb[10].mxu1  ;;  %7484 = vmatpush1.bf16.msra.mxu0 %v8729_v62  ;;  %v8764_v52 = vcombine.high %v4367_v9, %v4371_v15  ;;  %v4374_v62 = vld [vmem:[#allocation8 + $0xe90] sm:$0xff]  ;;  %v4387_v7 = vld [vmem:[#allocation8 + $0xef8] sm:$0xff] }
 0x44f   :  { %v7678_v24 = vmax.f32 %v8821_v3, 0.0  ;;  %7648 = vmatpush1.bf16.msra.mxu1 %v8731_v63  ;;  %v7184_v19 = vpop.f32.mrb[11].mxu0  ;;  %v7348_v27 = vpop.f32.mrb[11].mxu1  ;;  %7485 = vmatprep.subr.bf16.mxu0 %v8738_v60  ;;  %v7680_v12 = vmax.f32 %v8823_v6, 0.0  ;;  %v4378_v63 = vld [vmem:[#allocation8 + $0xeb0] sm:$0xff]  ;;  %v4375_v60 = vld [vmem:[#allocation8 + $0xe98] sm:$0xff] }
 0x450   :  { %v7679_v18 = vmax.f32 %v8822_v14, 0.0  ;;  %7649 = vmatprep.subr.bf16.mxu1 %v8740_v26  ;;  %v7681_v22 = vmax.f32 %v8824_v21, 0.0  ;;  %v8763_v26 = vcombine.low %v4367_v9, %v4371_v15  ;;  %v8770_v4 = vcombine.high %v4374_v62, %v4378_v63  ;;  %v4382_v3 = vld [vmem:[#allocation8 + $0xed0] sm:$0xff]  ;;  %v4383_v6 = vld [vmem:[#allocation8 + $0xed8] sm:$0xff] }
 0x451   :  { %v7728_v33 = vmul.f32 %v7691_v5, %v7678_v24  ;;  %v7730_v61 = vmul.f32 %v7699_v29, %v7680_v12  ;;  %v8772_v39 = vcombine.high %v4375_v60, %v4379_v0  ;;  %v4386_v5 = vld [vmem:[#allocation8 + $0xef0] sm:$0xff]  ;;  %v8769_v13 = vcombine.low %v4374_v62, %v4378_v63  ;;  %v4391_v23 = vld [vmem:[#allocation8 + $0xf18] sm:$0xff] }
 0x452   :  { %v7729_v37 = vmul.f32 %v7695_v20, %v7679_v18  ;;  %7486 = vmatpush1.bf16.msra.mxu0 %v8737_v57  ;;  %v7731_v47 = vmul.f32 %v7703_v38, %v7681_v22  ;;  %v8771_v1 = vcombine.low %v4375_v60, %v4379_v0  ;;  %v8778_v11 = vcombine.high %v4382_v3, %v4386_v5  ;;  %v4390_v20 = vld [vmem:[#allocation8 + $0xf10] sm:$0xff]  ;;  %v4395_v10 = vld [vmem:[#allocation8 + $0xf38] sm:$0xff] }
 0x453   :  { %7650 = vmatpush1.bf16.msra.mxu1 %v8739_v32  ;;  %7487 = vmatprep.subr.bf16.mxu0 %v8746_v28  ;;  %v8780_v14 = vcombine.high %v4383_v6, %v4387_v7  ;;  %v4394_v21 = vld [vmem:[#allocation8 + $0xf30] sm:$0xff]  ;;  %v8777_v57 = vcombine.low %v4382_v3, %v4386_v5  ;;  %v8779_v24 = vcombine.low %v4383_v6, %v4387_v7  ;;  %v4399_v12 = vld [vmem:[#allocation8 + $0xf58] sm:$0xff] }
 0x454   :  { %v7736_v43 = vadd.f32 %v7729_v37, %v7728_v33  ;;  %7651 = vmatprep.subr.bf16.mxu1 %v8748_v30  ;;  %v8786_v19 = vcombine.high %v4390_v20, %v4394_v21  ;;  %v8788_v27 = vcombine.high %v4391_v23, %v4395_v10  ;;  %v4398_v32 = vld [vmem:[#allocation8 + $0xf50] sm:$0xff]  ;;  %v4403_v29 = vld [vmem:[#allocation8 + $0xf78] sm:$0xff]  ;;  %v8785_v18 = vcombine.low %v4390_v20, %v4394_v21 }
 0x455   :  { %v4402_v28 = vld [vmem:[#allocation8 + $0xf70] sm:$0xff]  ;;  %v8787_v30 = vcombine.low %v4391_v23, %v4395_v10  ;;  %v8796_v31 = vcombine.high %v4399_v12, %v4403_v29  ;;  %v4411_v37 = vld [vmem:[#allocation8 + $0xfb8] sm:$0xff]  ;;  %v8795_v38 = vcombine.low %v4399_v12, %v4403_v29  ;;  %v7707_v60 = vrot.slane %v9392_v51, %v9332_v54 }
 0x456   :  { %v7737_v48 = vadd.f32 %v7736_v43, %v7730_v61  ;;  %7488 = vmatpush1.bf16.msra.mxu0 %v8745_v41  ;;  %v8794_v16 = vcombine.high %v4398_v32, %v4402_v28  ;;  %v4406_v33 = vld [vmem:[#allocation8 + $0xf90] sm:$0xff]  ;;  %v8793_v22 = vcombine.low %v4398_v32, %v4402_v28  ;;  %v4415_v43 = vld [vmem:[#allocation8 + $0xfd8] sm:$0xff]  ;;  %v8803_v46 = vcombine.low %v4407_v8, %v4411_v37 }
 0x457   :  { %7652 = vmatpush1.bf16.msra.mxu1 %v8747_v42  ;;  %7489 = vmatprep.subr.bf16.mxu0 %v8754_v36  ;;  %v8802_v41 = vcombine.high %v4406_v33, %v4410_v35  ;;  %v8804_v42 = vcombine.high %v4407_v8, %v4411_v37  ;;  %v4414_v36 = vld [vmem:[#allocation8 + $0xfd0] sm:$0xff]  ;;  %v8801_v45 = vcombine.low %v4406_v33, %v4410_v35  ;;  %v7746_v32 = vstv %s9450_s6  ;;  %s9056_s6 = scalar_lea.vmem %s7771_s20, 16 }
 0x458   :  { %v9406_v40 = vadd.f32 %v7737_v48, %v7731_v47  ;;  %7653 = vmatprep.subr.bf16.mxu1 %v8756_v49  ;;  %v4418_v61 = vld [vmem:[#allocation8 + $0xff0] sm:$0xff]  ;;  %v4419_v49 = vld [vmem:[#allocation8 + $0xff8] sm:$0xff]  ;;  %p9057_p12 = scmp.ne.s32.totalorder %s7771_s20, %s9056_s6  ;;  %p9062_p0 = scmp.lt.s32.totalorder %s9060_s21, %s9056_s6 }
 0x459   :  { %v8810_v9 = vcombine.high %v4414_v36, %v4418_v61  ;;  %v8812_v15 = vcombine.high %v4415_v43, %v4419_v49  ;;  %v8809_v47 = vcombine.low %v4414_v36, %v4418_v61  ;;  %v8811_v48 = vcombine.low %v4415_v43, %v4419_v49 }
 0x45a   :  { %7490 = vmatpush1.bf16.msra.mxu0 %v8753_v50  ;;  %v4441_v50 = vrot.slane %v9386_v44, %v9332_v54  ;;  %v7715_v54 = vrot.slane %v9392_v51, %v9363_v34  ;;  %p9063_p1 = por %p9062_p0, %p9061_p13 }
 0x45b   :  { %7654 = vmatpush1.bf16.msra.mxu1 %v8755_v53  ;;  %7491 = vmatprep.subr.bf16.mxu0 %v8762_v25  ;;  %v4449_v53 = vrot.slane %v9386_v44, %v9363_v34  ;;  %v4445_v25 = vrot.slane %v9386_v44, %v9335_v58 }
 0x45c   :  { %7655 = vmatprep.subr.bf16.mxu1 %v8764_v52  ;;  %v4453_v52 = vrot.slane %v9386_v44, %v9338_v59  ;;  %p9064_p2 = pnand %p9063_p1, %p9057_p12 }
 0x45e   :  { %7492 = vmatpush1.bf16.msra.mxu0 %v8761_v55 }
 0x45f   :  { %7656 = vmatpush1.bf16.msra.mxu1 %v8763_v26  ;;  %7493 = vmatprep.subr.bf16.mxu0 %v8770_v4  ;;  %v7711_v4 = vrot.slane %v9392_v51, %v9335_v58  ;;  %v7719_v58 = vrot.slane %v9392_v51, %v9338_v59  ;;  %v7756_v59 = vand.u32 127, %v608_v56 }
 0x460   :  { %7657 = vmatprep.subr.bf16.mxu1 %v8772_v39 }
 0x461   :  { %v7759_v51 = vsub.s32 %v7756_v59, %v9285_v2 }
 0x462   :  { %7494 = vmatpush1.bf16.msra.mxu0 %v8769_v13 }
 0x463   :  { %7658 = vmatpush1.bf16.msra.mxu1 %v8771_v1  ;;  %7495 = vmatprep.subr.bf16.mxu0 %v8778_v11 }
 0x464   :  { %7659 = vmatprep.subr.bf16.mxu1 %v8780_v14 }
 0x466   :  { %7496 = vmatpush1.bf16.msra.mxu0 %v8777_v57 }
 0x467   :  { %7660 = vmatpush1.bf16.msra.mxu1 %v8779_v24  ;;  %7497 = vmatprep.subr.bf16.mxu0 %v8786_v19 }
 0x468   :  { %7661 = vmatprep.subr.bf16.mxu1 %v8788_v27 }
 0x46a   :  { %7498 = vmatpush1.bf16.msra.mxu0 %v8785_v18 }
 0x46b   :  { %7662 = vmatpush1.bf16.msra.mxu1 %v8787_v30  ;;  %7499 = vmatprep.subr.bf16.mxu0 %v8794_v16 }
 0x46c   :  { %7663 = vmatprep.subr.bf16.mxu1 %v8796_v31 }
 0x46e   :  { %7500 = vmatpush1.bf16.msra.mxu0 %v8793_v22 }
 0x46f   :  { %7664 = vmatpush1.bf16.msra.mxu1 %v8795_v38  ;;  %7501 = vmatprep.subr.bf16.mxu0 %v8802_v41 }
 0x470   :  { %7665 = vmatprep.subr.bf16.mxu1 %v8804_v42 }
 0x472   :  { %7502 = vmatpush1.bf16.msra.mxu0 %v8801_v45 }
 0x473   :  { %7666 = vmatpush1.bf16.msra.mxu1 %v8803_v46  ;;  %7503 = vmatprep.subr.bf16.mxu0 %v8810_v9 }
 0x474   :  { %7667 = vmatprep.subr.bf16.mxu1 %v8812_v15 }
 0x476   :  { %7504 = vmatpush1.bf16.msra.mxu0 %v8809_v47 }
 0x477   :  { %7668 = vmatpush1.bf16.msra.mxu1 %v8811_v48 }
 0x479   :  { %7506 = vmatmul.mubr.bf16.vlgmr.msra.gmra.mrb[12].mxu0 %v9368_v17 }
 0x47a   :  { %7670 = vmatmul.mubr.bf16.vlgmr.msra.gmra.mrb[12].mxu1 %v9368_v17 }
 0x54c   :  { %v7507_v62 = vpop.f32.mrb[12].mxu0 }
 0x54d   :  { %v8825_v63 = vadd.f32 %v7507_v62, %v4441_v50  ;;  %v7671_v0 = vpop.f32.mrb[12].mxu1  ;;  %v7509_v55 = vpop.f32.mrb[13].mxu0 }
 0x54e   :  { %v8827_v17 = vadd.f32 %v7671_v0, %v4449_v53  ;;  %v8826_v26 = vadd.f32 %v7509_v55, %v4445_v25  ;;  %v7673_v39 = vpop.f32.mrb[13].mxu1  ;;  %v7511_v3 = vpop.f32.mrb[14].mxu0 }
 0x54f   :  { %v7682_v5 = vmax.f32 %v8825_v63, 0.0  ;;  %v8828_v6 = vadd.f32 %v7673_v39, %v4453_v52  ;;  %v7675_v7 = vpop.f32.mrb[14].mxu1  ;;  %v7512_v13 = vpop.f32.mrb[15].mxu0 }
 0x550   :  { %v7683_v1 = vmax.f32 %v8826_v26, 0.0  ;;  %v7676_v44 = vpop.f32.mrb[15].mxu1  ;;  %v7684_v14 = vmax.f32 %v8827_v17, 0.0 }
 0x551   :  { %v7732_v11 = vmul.f32 %v7707_v60, %v7682_v5  ;;  %v7685_v23 = vmax.f32 %v8828_v6, 0.0 }
 0x552   :  { %v7733_v20 = vmul.f32 %v7711_v4, %v7683_v1  ;;  %v7734_v10 = vmul.f32 %v7715_v54, %v7684_v14 }
 0x553   :  { %v7739_v21 = vadd.f32 %v9406_v40, %v7732_v11  ;;  %v7735_v24 = vmul.f32 %v7719_v58, %v7685_v23 }
 0x555   :  { %v7740_v57 = vadd.f32 %v7739_v21, %v7733_v20 }
 0x557   :  { %v7741_v19 = vadd.f32 %v7740_v57, %v7734_v10 }
 0x559   :  { %v7742_v27 = vadd.f32 %v7741_v19, %v7735_v24 }
 0x55b   :  { %7743 = vadd.xlane.f32.xlu0 %v7742_v27 }
 0x5e8   :  { %v7744_v28 = vpop.xlane.xlu0 %7743 }
 0x5e9   :  { %v7747_v12 = vadd.f32 %v7746_v32, %v7744_v28 }
 0x5eb   :  { %v7748_v34 = vmax.f32 %v7747_v12, 0.0 }
 0x5ed   :  { %v7749_v29 = vsub.f32 0.0, %v7748_v34 }
 0x5ef   :  { %v7750_v18 = vmul.f32 1.442695, %v7749_v29 }
 0x5f1   :  { %8941 = vpow2.f32 %v7750_v18 }
 0x5fb   :  { %v8942_v40 = vpop.eup %8941 }
 0x5fc   :  { %v7752_v30 = vadd.f32 1.0, %v8942_v40 }
 0x5fe   :  { %8943 = vrcp.f32 %v7752_v30 }
 0x608   :  { %v8944_v16 = vpop.eup %8943 }
 0x609   :  { %v7760_v31 = vrot.slane %v8944_v16, %v7759_v51 }
 0x60b   :  { %7763 = vst.msk [vmem:[#allocation12] sm:$0x1] %vm7762_vm0, %v7760_v31 }
 0x60c   :  { %9067 = shalt.err (!%p9064_p2)
}
 0x60d   :  { %s9068_s23 = scalar_lea.hbm %s9451_s7, 16 }
 0x60e   :  { %p9069_p3 = scmp.ne.s32.totalorder %s9451_s7, %s9068_s23  ;;  %p9072_p4 = scmp.lt.u32.totalorder %s9068_s23, %s9451_s7 }
 0x610   :  { %p9074_p5 = pnand %p9072_p4, %p9069_p3 }
 0x612   :  { %9077 = shalt.err (!%p9074_p5)
}
 0x613   :  { %7773 = dma.vmem_to_hbm [thread:$0]  %s7771_s20, 16, %s9451_s7, [#allocation5]  }
 0x614   :  { %9084 = dma.done.wait [#allocation5], 16  }
 0x615   :  { %9085 = vsyncadd [#allocation5], 4294967280 }
 0x616   :  { %7777 = vsyncpa [#allocation4], 1 }
 0x617   :  { %7778 = vsyncpa [#allocation7], 1 }
 0x618   :  { %7779 = vsyncpa [#allocation10], 1 }
 0x619   :  { %7780 = vsyncpa [#allocation5], 1 }

</bundles_post_ra>
